<compile_context>
chip_gen: v7x
topology: tpu7x:2x2x1
jax: 0.10.0
libtpu: 0.0.40
codegen_flags: <defaults>
</compile_context>

<pallas_src>
import jax
import jax.numpy as jnp
import numpy as np
from jax import lax
from jax.experimental import pallas as pl
from jax.experimental.pallas import tpu as pltpu

NEG_SLOPE = 0.2   # LeakyReLU negative_slope of GATConv
NEG_INF = -1e30   # additive mask for non-edges


def _gat_layer(h, W, ar_exp, al_row, block_mask, bsum, dexp, adj_bias, H, D, N):
    """One GATConv layer, all heads fused, lane-dense intermediates.

    h:          (N, F_in)
    W:          (F_in, H*D)  all heads' projections, column h*D+d
    ar_exp:     (H*D, H*N)   ar_exp[h*D+d, h*N+j] = attn_r[h, d]
    al_row:     (1,  H*D)    al_row[0, h*D+d]     = attn_l[h, d]
    block_mask: (H*N, H*D)   1 on the per-head diagonal blocks
    bsum:       (H*N, H)     1 where lane-block h -> head h (per-head sums)
    dexp:       (H,  H*D)    1 on head h's D columns (denominator expansion)
    adj_bias:   (N,  H*N)    0 on edges, -1e30 on non-edges, tiled per head
    returns     (N,  H*D)    == PyTorch h.flatten(1) after ELU
    """
    feat = jnp.dot(h, W, preferred_element_type=jnp.float32)            # (N, H*D)
    # Block-diagonal per-head feature matrix: one lane-dense aggregation
    # matmul instead of H narrow (N, D) matmuls + a cross-lane concat.
    bdf = jnp.concatenate([feat] * H, axis=0) * block_mask              # (H*N, H*D)
    # Attention logits for all heads, already broadcast into the
    # (dst, head*src) score layout — no per-head lane slices.
    er_b = jnp.dot(feat, ar_exp, preferred_element_type=jnp.float32)    # (N, H*N)
    el_row = lax.dot_general(al_row, bdf, (((1,), (1,)), ((), ())),
                             preferred_element_type=jnp.float32)        # (1, H*N)
    s = er_b + el_row                                                   # (N, H*N)
    s = jnp.where(s > 0, s, NEG_SLOPE * s)                              # LeakyReLU
    s = s + adj_bias                                                    # mask non-edges
    # Edge softmax; one row-max across all heads (equivalent after normalize;
    # self-loops guarantee every head block has a finite entry).
    m = jnp.max(s, axis=-1, keepdims=True)                              # (N, 1)
    p = jnp.exp(s - m)                                                  # non-edges -> 0
    denom = jnp.dot(p, bsum, preferred_element_type=jnp.float32)        # (N, H)
    inv = pl.reciprocal(jnp.maximum(denom, 1e-30), approx=False)        # exact
    scale = jnp.dot(inv, dexp, preferred_element_type=jnp.float32)      # (N, H*D)
    # Aggregate (lane-dense (N, H*D) straight off the MXU), then normalize.
    r = jnp.dot(p, bdf, preferred_element_type=jnp.float32) * scale     # (N, H*D)
    # ELU once on the full layer output (clamp exp arg to avoid inf branch).
    return jnp.where(r > 0, r, jnp.exp(jnp.minimum(r, 0.0)) - 1.0)


def _make_fused_kernel(layer_dims):
    num_layers = len(layer_dims)

    def kernel(*refs):
        # refs = (x, [W, ar_exp, al_row, block_mask, bsum, dexp, adj_bias]*L,
        #         pw, pb, out)
        h = refs[0][...]
        for l, (H, D, N) in enumerate(layer_dims):
            base = 1 + 7 * l
            W, ar_exp, al_row, bm, bs, dx, bias = (r[...] for r in refs[base:base + 7])
            h = _gat_layer(h, W, ar_exp, al_row, bm, bs, dx, bias, H, D, N)
        pw = refs[1 + 7 * num_layers][...]
        pb = refs[2 + 7 * num_layers][...]
        o_ref = refs[-1]
        z = jnp.dot(h, pw, preferred_element_type=jnp.float32) + pb
        m = jnp.max(z, axis=-1, keepdims=True)
        lse = jnp.log(jnp.sum(jnp.exp(z - m), axis=-1, keepdims=True)) + m
        o_ref[...] = (z - lse).astype(o_ref.dtype)                      # log_softmax

    return kernel


def _pack_layer(w, al, ar, num_nodes):
    """Kernel-ready lane-dense operands for one GAT layer (built once at init)."""
    w = np.asarray(w, np.float32)
    al = np.asarray(al, np.float32)
    ar = np.asarray(ar, np.float32)
    H, f_in, D = w.shape
    N = num_nodes
    HD, HN = H * D, H * N

    W_all = np.transpose(w, (1, 0, 2)).reshape(f_in, HD)                 # (F_in, H*D)
    ar_exp = np.zeros((HD, HN), np.float32)
    block_mask = np.zeros((HN, HD), np.float32)
    bsum = np.zeros((HN, H), np.float32)
    dexp = np.zeros((H, HD), np.float32)
    for h in range(H):
        ar_exp[h * D:(h + 1) * D, h * N:(h + 1) * N] = ar[h, 0][:, None]
        block_mask[h * N:(h + 1) * N, h * D:(h + 1) * D] = 1.0
        bsum[h * N:(h + 1) * N, h] = 1.0
        dexp[h, h * D:(h + 1) * D] = 1.0
    al_row = al[:, 0, :].reshape(1, HD)

    return tuple(jnp.asarray(a, jnp.float32)
                 for a in (W_all, ar_exp, al_row, block_mask, bsum, dexp))


@jax.jit
def gat_forward(x, adj, params):
    layers = params["layers"]
    N = x.shape[0]
    C = params["pw"].shape[1]

    # Edge mask -> additive bias, hoisted out of the kernel (identical for all
    # layers/heads; tiled along lanes so the kernel never touches adj itself).
    bias = jnp.where(adj > 0, 0.0, NEG_INF).astype(jnp.float32)          # (N, N)

    operands = [x]
    layer_dims = []
    for (W, ar_exp, al_row, bm, bs, dx) in layers:
        H = dx.shape[0]
        D = dx.shape[1] // H
        layer_dims.append((H, D, N))
        operands.extend([W, ar_exp, al_row, bm, bs, dx, jnp.tile(bias, (1, H))])
    operands.extend([params["pw"], params["pb"]])

    vmem = pl.BlockSpec(memory_space=pltpu.MemorySpace.VMEM)
    return pl.pallas_call(
        _make_fused_kernel(tuple(layer_dims)),
        out_shape=jax.ShapeDtypeStruct((N, C), jnp.float32),
        in_specs=[vmem] * len(operands),
        out_specs=vmem,
        compiler_params=pltpu.CompilerParams(vmem_limit_bytes=32 * 1024 * 1024),
    )(*operands)


def init_params(key, num_layers, in_dim, num_hidden, num_classes, heads, num_nodes):
    """Returns (packed_params_for_kernel, raw_params_for_reference)."""
    raw_layers, packed_layers = [], []
    f_in = in_dim
    for l in range(num_layers):
        H = heads[l]
        key, k1, k2, k3 = jax.random.split(key, 4)
        w = jax.random.normal(k1, (H, f_in, num_hidden), jnp.float32) / np.sqrt(f_in)
        al = jax.random.normal(k2, (H, 1, num_hidden), jnp.float32) * 0.1
        ar = jax.random.normal(k3, (H, 1, num_hidden), jnp.float32) * 0.1
        raw_layers.append((w, al, ar))
        packed_layers.append(_pack_layer(w, al, ar, num_nodes))
        f_in = num_hidden * H
    key, k1, k2 = jax.random.split(key, 3)
    pw = jax.random.normal(k1, (f_in, num_classes), jnp.float32) / np.sqrt(f_in)
    pb = jax.random.normal(k2, (1, num_classes), jnp.float32) * 0.1
    packed = {"layers": packed_layers, "pw": pw, "pb": pb}
    raw = {"layers": raw_layers, "pw": pw, "pb": pb}
    return packed, raw


def reference_forward(x, adj, params):
    """Pure-JAX reference mirroring DGL GATConv math (eval mode)."""
    h = x
    for (w, al, ar) in params["layers"]:
        H, _, D = w.shape
        outs = []
        for hd in range(H):
            feat = h @ w[hd]
            el = feat @ al[hd, 0]
            er = feat @ ar[hd, 0]
            s = er[:, None] + el[None, :]
            s = jnp.where(s > 0, s, NEG_SLOPE * s)
            s = jnp.where(adj > 0, s, NEG_INF)
            p = jnp.exp(s - s.max(-1, keepdims=True)) * adj
            a = p / p.sum(-1, keepdims=True)
            r = a @ feat
            r = jnp.where(r > 0, r, jnp.exp(r) - 1.0)
            outs.append(r)
        h = jnp.concatenate(outs, axis=1)
    z = h @ params["pw"] + params["pb"]
    return jax.nn.log_softmax(z, axis=1)


if __name__ == "__main__":
    key = jax.random.PRNGKey(0)
    N, in_dim, num_hidden, num_classes = 64, 32, 32, 8
    num_layers, heads = 2, [4, 4]

    key, kx, kadj, kp = jax.random.split(key, 4)
    x = jax.random.normal(kx, (N, in_dim), jnp.float32)
    adj = (jax.random.uniform(kadj, (N, N)) < 0.1).astype(jnp.float32)
    adj = jnp.maximum(adj, jnp.eye(N, dtype=jnp.float32))   # self-loops (required)
    packed, raw = init_params(kp, num_layers, in_dim, num_hidden, num_classes,
                              heads, N)

    out = gat_forward(x, adj, packed)
    out = jax.block_until_ready(out)

    ref = reference_forward(x, adj, raw)
    assert out.shape == (N, num_classes)
    assert jnp.allclose(out, ref, rtol=5e-3, atol=5e-3), "Pallas output mismatch"
    print("KERNEL_OK")
</pallas_src>

<mosaic_0001>
module attributes {stable_mosaic.version = 11 : i64} {
  func.func @kernel(%arg0: memref<64x32xf32, #tpu.memory_space<vmem>>, %arg1: memref<32x128xf32, #tpu.memory_space<vmem>>, %arg2: memref<128x256xf32, #tpu.memory_space<vmem>>, %arg3: memref<1x128xf32, #tpu.memory_space<vmem>>, %arg4: memref<256x128xf32, #tpu.memory_space<vmem>>, %arg5: memref<256x4xf32, #tpu.memory_space<vmem>>, %arg6: memref<4x128xf32, #tpu.memory_space<vmem>>, %arg7: memref<64x256xf32, #tpu.memory_space<vmem>>, %arg8: memref<128x128xf32, #tpu.memory_space<vmem>>, %arg9: memref<128x256xf32, #tpu.memory_space<vmem>>, %arg10: memref<1x128xf32, #tpu.memory_space<vmem>>, %arg11: memref<256x128xf32, #tpu.memory_space<vmem>>, %arg12: memref<256x4xf32, #tpu.memory_space<vmem>>, %arg13: memref<4x128xf32, #tpu.memory_space<vmem>>, %arg14: memref<64x256xf32, #tpu.memory_space<vmem>>, %arg15: memref<128x8xf32, #tpu.memory_space<vmem>>, %arg16: memref<1x8xf32, #tpu.memory_space<vmem>>, %arg17: memref<64x8xf32, #tpu.memory_space<vmem>>) attributes {dimension_semantics = [], scalar_prefetch = 0 : i64, scratch_operands = 0 : i64, tpu.core_type = #tpu.core_type<tc>} {
    %c0 = arith.constant 0 : index
    %c0_0 = arith.constant 0 : index
    %0 = vector.load %arg0[%c0, %c0_0] : memref<64x32xf32, #tpu.memory_space<vmem>>, vector<64x32xf32>
    %c0_1 = arith.constant 0 : index
    %c0_2 = arith.constant 0 : index
    %1 = vector.load %arg1[%c0_1, %c0_2] : memref<32x128xf32, #tpu.memory_space<vmem>>, vector<32x128xf32>
    %c0_3 = arith.constant 0 : index
    %c0_4 = arith.constant 0 : index
    %2 = vector.load %arg2[%c0_3, %c0_4] : memref<128x256xf32, #tpu.memory_space<vmem>>, vector<128x256xf32>
    %c0_5 = arith.constant 0 : index
    %c0_6 = arith.constant 0 : index
    %3 = vector.load %arg3[%c0_5, %c0_6] : memref<1x128xf32, #tpu.memory_space<vmem>>, vector<1x128xf32>
    %c0_7 = arith.constant 0 : index
    %c0_8 = arith.constant 0 : index
    %4 = vector.load %arg4[%c0_7, %c0_8] : memref<256x128xf32, #tpu.memory_space<vmem>>, vector<256x128xf32>
    %c0_9 = arith.constant 0 : index
    %c0_10 = arith.constant 0 : index
    %5 = vector.load %arg5[%c0_9, %c0_10] : memref<256x4xf32, #tpu.memory_space<vmem>>, vector<256x4xf32>
    %c0_11 = arith.constant 0 : index
    %c0_12 = arith.constant 0 : index
    %6 = vector.load %arg6[%c0_11, %c0_12] : memref<4x128xf32, #tpu.memory_space<vmem>>, vector<4x128xf32>
    %c0_13 = arith.constant 0 : index
    %c0_14 = arith.constant 0 : index
    %7 = vector.load %arg7[%c0_13, %c0_14] : memref<64x256xf32, #tpu.memory_space<vmem>>, vector<64x256xf32>
    %cst = arith.constant dense<0.000000e+00> : vector<64x128xf32>
    %8 = tpu.matmul %0, %1, %cst {dimension_numbers = #tpu.dot_dimension_numbers<[1], [0], [0], [1], [0, 0, 1, 1], [], []>} : vector<64x32xf32>, vector<32x128xf32>, vector<64x128xf32> -> vector<64x128xf32>
    %9 = tpu.concatenate %8, %8, %8, %8 in 0 : vector<64x128xf32>, vector<64x128xf32>, vector<64x128xf32>, vector<64x128xf32> -> vector<256x128xf32>
    %10 = arith.mulf %9, %4 : vector<256x128xf32>
    %cst_15 = arith.constant dense<0.000000e+00> : vector<64x256xf32>
    %11 = tpu.matmul %8, %2, %cst_15 {dimension_numbers = #tpu.dot_dimension_numbers<[1], [0], [0], [1], [0, 0, 1, 1], [], []>} : vector<64x128xf32>, vector<128x256xf32>, vector<64x256xf32> -> vector<64x256xf32>
    %cst_16 = arith.constant dense<0.000000e+00> : vector<1x256xf32>
    %12 = tpu.matmul %3, %10, %cst_16 {dimension_numbers = #tpu.dot_dimension_numbers<[1], [1], [0], [0], [0, 0, 1, 0], [], []>} : vector<1x128xf32>, vector<256x128xf32>, vector<1x256xf32> -> vector<1x256xf32>
    %13 = vector.broadcast %12 : vector<1x256xf32> to vector<64x256xf32>
    %14 = arith.addf %11, %13 : vector<64x256xf32>
    %cst_17 = arith.constant 0.000000e+00 : f32
    %15 = vector.broadcast %cst_17 : f32 to vector<64x256xf32>
    %16 = arith.cmpf ogt, %14, %15 : vector<64x256xf32>
    %cst_18 = arith.constant 2.000000e-01 : f32
    %17 = vector.broadcast %cst_18 : f32 to vector<64x256xf32>
    %18 = arith.mulf %17, %14 : vector<64x256xf32>
    %19 = arith.select %16, %14, %18 : vector<64x256xi1>, vector<64x256xf32>
    %20 = arith.addf %19, %7 : vector<64x256xf32>
    %cst_19 = arith.constant dense<0xFF800000> : vector<64xf32>
    %21 = vector.multi_reduction <maximumf>, %20, %cst_19 [1] : vector<64x256xf32> to vector<64xf32>
    %22 = vector.shape_cast %21 : vector<64xf32> to vector<64x1xf32>
    %23 = vector.broadcast %22 : vector<64x1xf32> to vector<64x256xf32>
    %24 = arith.subf %20, %23 : vector<64x256xf32>
    %25 = math.exp %24 : vector<64x256xf32>
    %cst_20 = arith.constant dense<0.000000e+00> : vector<64x4xf32>
    %26 = tpu.matmul %25, %5, %cst_20 {dimension_numbers = #tpu.dot_dimension_numbers<[1], [0], [0], [1], [0, 0, 1, 1], [], []>} : vector<64x256xf32>, vector<256x4xf32>, vector<64x4xf32> -> vector<64x4xf32>
    %cst_21 = arith.constant 1.000000e-30 : f32
    %27 = vector.broadcast %cst_21 : f32 to vector<64x4xf32>
    %28 = arith.maximumf %26, %27 : vector<64x4xf32>
    %29 = tpu.reciprocal %28 : vector<64x4xf32> -> vector<64x4xf32>
    %cst_22 = arith.constant dense<0.000000e+00> : vector<64x128xf32>
    %30 = tpu.matmul %29, %6, %cst_22 {dimension_numbers = #tpu.dot_dimension_numbers<[1], [0], [0], [1], [0, 0, 1, 1], [], []>} : vector<64x4xf32>, vector<4x128xf32>, vector<64x128xf32> -> vector<64x128xf32>
    %cst_23 = arith.constant dense<0.000000e+00> : vector<64x128xf32>
    %31 = tpu.matmul %25, %10, %cst_23 {dimension_numbers = #tpu.dot_dimension_numbers<[1], [0], [0], [1], [0, 0, 1, 1], [], []>} : vector<64x256xf32>, vector<256x128xf32>, vector<64x128xf32> -> vector<64x128xf32>
    %32 = arith.mulf %31, %30 : vector<64x128xf32>
    %cst_24 = arith.constant 0.000000e+00 : f32
    %33 = vector.broadcast %cst_24 : f32 to vector<64x128xf32>
    %34 = arith.cmpf ogt, %32, %33 : vector<64x128xf32>
    %cst_25 = arith.constant 0.000000e+00 : f32
    %35 = vector.broadcast %cst_25 : f32 to vector<64x128xf32>
    %36 = arith.minimumf %32, %35 : vector<64x128xf32>
    %37 = math.exp %36 : vector<64x128xf32>
    %cst_26 = arith.constant 1.000000e+00 : f32
    %38 = vector.broadcast %cst_26 : f32 to vector<64x128xf32>
    %39 = arith.subf %37, %38 : vector<64x128xf32>
    %40 = arith.select %34, %32, %39 : vector<64x128xi1>, vector<64x128xf32>
    %c0_27 = arith.constant 0 : index
    %c0_28 = arith.constant 0 : index
    %41 = vector.load %arg8[%c0_27, %c0_28] : memref<128x128xf32, #tpu.memory_space<vmem>>, vector<128x128xf32>
    %c0_29 = arith.constant 0 : index
    %c0_30 = arith.constant 0 : index
    %42 = vector.load %arg9[%c0_29, %c0_30] : memref<128x256xf32, #tpu.memory_space<vmem>>, vector<128x256xf32>
    %c0_31 = arith.constant 0 : index
    %c0_32 = arith.constant 0 : index
    %43 = vector.load %arg10[%c0_31, %c0_32] : memref<1x128xf32, #tpu.memory_space<vmem>>, vector<1x128xf32>
    %c0_33 = arith.constant 0 : index
    %c0_34 = arith.constant 0 : index
    %44 = vector.load %arg11[%c0_33, %c0_34] : memref<256x128xf32, #tpu.memory_space<vmem>>, vector<256x128xf32>
    %c0_35 = arith.constant 0 : index
    %c0_36 = arith.constant 0 : index
    %45 = vector.load %arg12[%c0_35, %c0_36] : memref<256x4xf32, #tpu.memory_space<vmem>>, vector<256x4xf32>
    %c0_37 = arith.constant 0 : index
    %c0_38 = arith.constant 0 : index
    %46 = vector.load %arg13[%c0_37, %c0_38] : memref<4x128xf32, #tpu.memory_space<vmem>>, vector<4x128xf32>
    %c0_39 = arith.constant 0 : index
    %c0_40 = arith.constant 0 : index
    %47 = vector.load %arg14[%c0_39, %c0_40] : memref<64x256xf32, #tpu.memory_space<vmem>>, vector<64x256xf32>
    %cst_41 = arith.constant dense<0.000000e+00> : vector<64x128xf32>
    %48 = tpu.matmul %40, %41, %cst_41 {dimension_numbers = #tpu.dot_dimension_numbers<[1], [0], [0], [1], [0, 0, 1, 1], [], []>} : vector<64x128xf32>, vector<128x128xf32>, vector<64x128xf32> -> vector<64x128xf32>
    %49 = tpu.concatenate %48, %48, %48, %48 in 0 : vector<64x128xf32>, vector<64x128xf32>, vector<64x128xf32>, vector<64x128xf32> -> vector<256x128xf32>
    %50 = arith.mulf %49, %44 : vector<256x128xf32>
    %cst_42 = arith.constant dense<0.000000e+00> : vector<64x256xf32>
    %51 = tpu.matmul %48, %42, %cst_42 {dimension_numbers = #tpu.dot_dimension_numbers<[1], [0], [0], [1], [0, 0, 1, 1], [], []>} : vector<64x128xf32>, vector<128x256xf32>, vector<64x256xf32> -> vector<64x256xf32>
    %cst_43 = arith.constant dense<0.000000e+00> : vector<1x256xf32>
    %52 = tpu.matmul %43, %50, %cst_43 {dimension_numbers = #tpu.dot_dimension_numbers<[1], [1], [0], [0], [0, 0, 1, 0], [], []>} : vector<1x128xf32>, vector<256x128xf32>, vector<1x256xf32> -> vector<1x256xf32>
    %53 = vector.broadcast %52 : vector<1x256xf32> to vector<64x256xf32>
    %54 = arith.addf %51, %53 : vector<64x256xf32>
    %cst_44 = arith.constant 0.000000e+00 : f32
    %55 = vector.broadcast %cst_44 : f32 to vector<64x256xf32>
    %56 = arith.cmpf ogt, %54, %55 : vector<64x256xf32>
    %cst_45 = arith.constant 2.000000e-01 : f32
    %57 = vector.broadcast %cst_45 : f32 to vector<64x256xf32>
    %58 = arith.mulf %57, %54 : vector<64x256xf32>
    %59 = arith.select %56, %54, %58 : vector<64x256xi1>, vector<64x256xf32>
    %60 = arith.addf %59, %47 : vector<64x256xf32>
    %cst_46 = arith.constant dense<0xFF800000> : vector<64xf32>
    %61 = vector.multi_reduction <maximumf>, %60, %cst_46 [1] : vector<64x256xf32> to vector<64xf32>
    %62 = vector.shape_cast %61 : vector<64xf32> to vector<64x1xf32>
    %63 = vector.broadcast %62 : vector<64x1xf32> to vector<64x256xf32>
    %64 = arith.subf %60, %63 : vector<64x256xf32>
    %65 = math.exp %64 : vector<64x256xf32>
    %cst_47 = arith.constant dense<0.000000e+00> : vector<64x4xf32>
    %66 = tpu.matmul %65, %45, %cst_47 {dimension_numbers = #tpu.dot_dimension_numbers<[1], [0], [0], [1], [0, 0, 1, 1], [], []>} : vector<64x256xf32>, vector<256x4xf32>, vector<64x4xf32> -> vector<64x4xf32>
    %cst_48 = arith.constant 1.000000e-30 : f32
    %67 = vector.broadcast %cst_48 : f32 to vector<64x4xf32>
    %68 = arith.maximumf %66, %67 : vector<64x4xf32>
    %69 = tpu.reciprocal %68 : vector<64x4xf32> -> vector<64x4xf32>
    %cst_49 = arith.constant dense<0.000000e+00> : vector<64x128xf32>
    %70 = tpu.matmul %69, %46, %cst_49 {dimension_numbers = #tpu.dot_dimension_numbers<[1], [0], [0], [1], [0, 0, 1, 1], [], []>} : vector<64x4xf32>, vector<4x128xf32>, vector<64x128xf32> -> vector<64x128xf32>
    %cst_50 = arith.constant dense<0.000000e+00> : vector<64x128xf32>
    %71 = tpu.matmul %65, %50, %cst_50 {dimension_numbers = #tpu.dot_dimension_numbers<[1], [0], [0], [1], [0, 0, 1, 1], [], []>} : vector<64x256xf32>, vector<256x128xf32>, vector<64x128xf32> -> vector<64x128xf32>
    %72 = arith.mulf %71, %70 : vector<64x128xf32>
    %cst_51 = arith.constant 0.000000e+00 : f32
    %73 = vector.broadcast %cst_51 : f32 to vector<64x128xf32>
    %74 = arith.cmpf ogt, %72, %73 : vector<64x128xf32>
    %cst_52 = arith.constant 0.000000e+00 : f32
    %75 = vector.broadcast %cst_52 : f32 to vector<64x128xf32>
    %76 = arith.minimumf %72, %75 : vector<64x128xf32>
    %77 = math.exp %76 : vector<64x128xf32>
    %cst_53 = arith.constant 1.000000e+00 : f32
    %78 = vector.broadcast %cst_53 : f32 to vector<64x128xf32>
    %79 = arith.subf %77, %78 : vector<64x128xf32>
    %80 = arith.select %74, %72, %79 : vector<64x128xi1>, vector<64x128xf32>
    %c0_54 = arith.constant 0 : index
    %c0_55 = arith.constant 0 : index
    %81 = vector.load %arg15[%c0_54, %c0_55] : memref<128x8xf32, #tpu.memory_space<vmem>>, vector<128x8xf32>
    %c0_56 = arith.constant 0 : index
    %c0_57 = arith.constant 0 : index
    %82 = vector.load %arg16[%c0_56, %c0_57] : memref<1x8xf32, #tpu.memory_space<vmem>>, vector<1x8xf32>
    %cst_58 = arith.constant dense<0.000000e+00> : vector<64x8xf32>
    %83 = tpu.matmul %80, %81, %cst_58 {dimension_numbers = #tpu.dot_dimension_numbers<[1], [0], [0], [1], [0, 0, 1, 1], [], []>} : vector<64x128xf32>, vector<128x8xf32>, vector<64x8xf32> -> vector<64x8xf32>
    %84 = vector.broadcast %82 : vector<1x8xf32> to vector<64x8xf32>
    %85 = arith.addf %83, %84 : vector<64x8xf32>
    %cst_59 = arith.constant dense<0xFF800000> : vector<64xf32>
    %86 = vector.multi_reduction <maximumf>, %85, %cst_59 [1] : vector<64x8xf32> to vector<64xf32>
    %87 = vector.shape_cast %86 : vector<64xf32> to vector<64x1xf32>
    %88 = vector.broadcast %87 : vector<64x1xf32> to vector<64x8xf32>
    %89 = arith.subf %85, %88 : vector<64x8xf32>
    %90 = math.exp %89 : vector<64x8xf32>
    %cst_60 = arith.constant dense<0.000000e+00> : vector<64xf32>
    %91 = vector.multi_reduction <add>, %90, %cst_60 [1] : vector<64x8xf32> to vector<64xf32>
    %92 = vector.shape_cast %91 : vector<64xf32> to vector<64x1xf32>
    %93 = math.log %92 : vector<64x1xf32>
    %94 = arith.addf %93, %87 : vector<64x1xf32>
    %95 = vector.broadcast %94 : vector<64x1xf32> to vector<64x8xf32>
    %96 = arith.subf %85, %95 : vector<64x8xf32>
    %c0_61 = arith.constant 0 : index
    %c0_62 = arith.constant 0 : index
    %97 = vector.load %arg17[%c0_61, %c0_62] : memref<64x8xf32, #tpu.memory_space<vmem>>, vector<64x8xf32>
    tpu.vector_store %arg17[%c0_61, %c0_62], %96 {strides = array<i32>} : memref<64x8xf32, #tpu.memory_space<vmem>>, vector<64x8xf32>,
    return
  }
}

</mosaic_0001>

<bundles_post_ra>
// kernel: tile.14
= control target key start
LH: loop header
LB: loop body
LE: loop exit
PB: predicated region body
PF: predicated region fallthrough
CT: control target
= control target key end

     0   :  { %s1116_s22 = smov 3  ;;  %vm322_vm0 = vcmask 523264   ;;  %s1118_s23 = smov 3  ;;  %vm706_vm1 = vcmask 1047556   ;;  %vm710_vm2 = vcmask 1048064   ;;  %s1702_s0 = inlined_call_operand.vmem [shape: f32[64,4,64], index: 0, kind: input, shape index: {}]   ;;  %s1703_s1 = inlined_call_operand.vmem [shape: f32[64,256], index: 1, kind: output, shape index: {}]  }
   0x1   :  { %v995_v0 = vld [vmem:[%s1702_s0 + $0x1c] sm:$0xf]  ;;  %v996_v1 = vld [vmem:[%s1702_s0 + $0x18] sm:$0xf]  ;;  %v997_v2 = vld [vmem:[%s1702_s0 + $0x14] sm:$0xf] }
   0x2   :  { %288 = vst [vmem:[#allocation0 + $0x38] sm:$0xf] %v995_v0  ;;  %293 = vst [vmem:[#allocation0 + $0x30] sm:$0xf] %v996_v1  ;;  %v998_v3 = vld [vmem:[%s1702_s0 + $0x10] sm:$0xf] }
   0x3   :  { %298 = vst [vmem:[#allocation0 + $0x28] sm:$0xf] %v997_v2  ;;  %v999_v4 = vld [vmem:[%s1702_s0 + $0xc] sm:$0xf]  ;;  %v1000_v5 = vld [vmem:[%s1702_s0 + $0x8] sm:$0xf] }
   0x4   :  { %303 = vst [vmem:[#allocation0 + $0x20] sm:$0xf] %v998_v3  ;;  %308 = vst [vmem:[#allocation0 + $0x18] sm:$0xf] %v999_v4  ;;  %v1001_v6 = vld [vmem:[%s1702_s0 + $0x4] sm:$0xf] }
   0x5   :  { %313 = vst [vmem:[#allocation0 + $0x10] sm:$0xf] %v1000_v5  ;;  %v318_v7 = vld [vmem:[%s1702_s0] sm:$0xf]  ;;  %317 = vst [vmem:[#allocation0 + $0x8] sm:$0xf] %v1001_v6 }
   0x6   :  { %319 = vst [vmem:[#allocation0] sm:$0xf] %v318_v7  ;;  %s1120_s24 = smov 3  ;;  %v994_v8 = vld [vmem:[%s1702_s0 + $0x20] sm:$0xf]  ;;  %s337_s27 = smov 3 }
   0x7   :  { %s343_s28 = smov 3  ;;  %283 = vst [vmem:[#allocation0 + $0x40] sm:$0xf] %v994_v8  ;;  %v963_v9 = vld [vmem:[%s1702_s0 + $0x9c] sm:$0xf]  ;;  %s349_s4 = smov 3 }
   0x8   :  { %v964_v10 = vld [vmem:[%s1702_s0 + $0x98] sm:$0xf]  ;;  %s355_s5 = smov 3  ;;  %128 = vst [vmem:[#allocation0 + $0x138] sm:$0xf] %v963_v9  ;;  %s1137_s10 = smov 3 }
   0x9   :  { %133 = vst [vmem:[#allocation0 + $0x130] sm:$0xf] %v964_v10  ;;  %v965_v11 = vld [vmem:[%s1702_s0 + $0x94] sm:$0xf]  ;;  %v966_v12 = vld [vmem:[%s1702_s0 + $0x90] sm:$0xf] }
   0xa   :  { %138 = vst [vmem:[#allocation0 + $0x128] sm:$0xf] %v965_v11  ;;  %143 = vst [vmem:[#allocation0 + $0x120] sm:$0xf] %v966_v12  ;;  %v967_v13 = vld [vmem:[%s1702_s0 + $0x8c] sm:$0xf] }
   0xb   :  { %v968_v14 = vld [vmem:[%s1702_s0 + $0x88] sm:$0xf]  ;;  %148 = vst [vmem:[#allocation0 + $0x118] sm:$0xf] %v967_v13  ;;  %v969_v15 = vld [vmem:[%s1702_s0 + $0x84] sm:$0xf] }
   0xc   :  { %153 = vst [vmem:[#allocation0 + $0x110] sm:$0xf] %v968_v14  ;;  %v970_v16 = vld [vmem:[%s1702_s0 + $0x80] sm:$0xf]  ;;  %v971_v17 = vld [vmem:[%s1702_s0 + $0x7c] sm:$0xf] }
   0xd   :  { %v350_v18 = vld [vmem:[#allocation0 + $0x28] ss:$2 sm:%s349_s4]   ;;  %158 = vst [vmem:[#allocation0 + $0x108] sm:$0xf] %v969_v15  ;;  %163 = vst [vmem:[#allocation0 + $0x100] sm:$0xf] %v970_v16 }
   0xe   :  { %v356_v19 = vld [vmem:[#allocation0 + $0x30] ss:$2 sm:%s355_s5]   ;;  %168 = vst [vmem:[#allocation0 + $0xf8] sm:$0xf] %v971_v17  ;;  %s1154_s21 = smov 3  ;;  %s1156_s25 = smov 3 }
   0xf   :  { %v332_v20 = vld [vmem:[#allocation0 + $0x10] ss:$2 sm:%s1120_s24]   ;;  %v344_v22 = vld [vmem:[#allocation0 + $0x20] ss:$2 sm:%s343_s28]   ;;  %s517_s4 = smov 3  ;;  %s523_s5 = smov 3 }
  0x10   :  { %v338_v21 = vld [vmem:[#allocation0 + $0x18] ss:$2 sm:%s337_s27]   ;;  %1006 = vst.msk [vmem:[%s1703_s1 + $0x5] ss:$8 sm:$0x3] %vm322_vm0, %v350_v18   ;;  %s535_s11 = smov 3 }
  0x11   :  { %1007 = vst.msk [vmem:[%s1703_s1 + $0x6] ss:$8 sm:$0x3] %vm322_vm0, %v356_v19   ;;  %v321_v23 = vld [vmem:[#allocation0] ss:$2 sm:%s1116_s22]   ;;  %s1081_s14 = smov 64  }
  0x12   :  { %v326_v24 = vld [vmem:[#allocation0 + $0x8] ss:$2 sm:%s1118_s23]   ;;  %1003 = vst.msk [vmem:[%s1703_s1 + $0x2] ss:$8 sm:$0x3] %vm322_vm0, %v332_v20   ;;  %s541_s17 = smov 3 }
  0x13   :  { %1004 = vst.msk [vmem:[%s1703_s1 + $0x3] ss:$8 sm:$0x3] %vm322_vm0, %v338_v21   ;;  %1005 = vst.msk [vmem:[%s1703_s1 + $0x4] ss:$8 sm:$0x3] %vm322_vm0, %v344_v22  }
  0x14   :  { %323 = vst.msk [vmem:[%s1703_s1] ss:$8 sm:$0x3] %vm322_vm0, %v321_v23   ;;  %1002 = vst.msk [vmem:[%s1703_s1 + $0x1] ss:$8 sm:$0x3] %vm322_vm0, %v326_v24  }
  0x15   :  { %v703_v25 = vld [vmem:[#allocation0 + $0x1] ss:$8 sm:$0xf]   ;;  %v362_v28 = vld [vmem:[#allocation0 + $0x38] ss:$2 sm:%s1137_s10]   ;;  %s529_s10 = smov 3 }
  0x16   :  { %v705_v26 = vld [vmem:[#allocation0 + $0x1] ss:$8 sm:$0xf0]   ;;  %1008 = vst.msk [vmem:[%s1703_s1 + $0x7] ss:$8 sm:$0x3] %vm322_vm0, %v362_v28  }
  0x17   :  { %v707_v27 = vsel %vm706_vm1, %v705_v26, %v703_v25  ;;  %v962_v29 = vld [vmem:[%s1702_s0 + $0xa0] sm:$0xf]  ;;  %s547_s18 = smov 3  ;;  %v979_v31 = vld [vmem:[%s1702_s0 + $0x5c] sm:$0xf]  ;;  %s553_s6 = smov 3 }
  0x18   :  { %708 = vrot.lane.b32.xlu0 %v707_v27, %s1081_s14  ;;  %v536_v30 = vld [vmem:[#allocation0 + $0x120] ss:$2 sm:%s535_s11]   ;;  %123 = vst [vmem:[#allocation0 + $0x140] sm:$0xf] %v962_v29  ;;  %v524_v32 = vld [vmem:[#allocation0 + $0x110] ss:$2 sm:%s523_s5]  }
  0x19   :  { %v530_v33 = vld [vmem:[#allocation0 + $0x118] ss:$2 sm:%s529_s10]   ;;  %1037 = vst.msk [vmem:[%s1703_s1 + $0x44] ss:$8 sm:$0x3] %vm322_vm0, %v536_v30   ;;  %s1239_s11 = smov 3 }
  0x1a   :  { %v542_v34 = vld [vmem:[#allocation0 + $0x128] ss:$2 sm:%s541_s17]   ;;  %208 = vst [vmem:[#allocation0 + $0xb8] sm:$0xf] %v979_v31  ;;  %v506_v35 = vld [vmem:[#allocation0 + $0xf8] ss:$2 sm:%s1154_s21]  }
  0x1b   :  { %v512_v36 = vld [vmem:[#allocation0 + $0x100] ss:$2 sm:%s1156_s25]   ;;  %1035 = vst.msk [vmem:[%s1703_s1 + $0x42] ss:$8 sm:$0x3] %vm322_vm0, %v524_v32   ;;  %s1261_s27 = smov 3 }
  0x1c   :  { %v518_v37 = vld [vmem:[#allocation0 + $0x108] ss:$2 sm:%s517_s4]   ;;  %1036 = vst.msk [vmem:[%s1703_s1 + $0x43] ss:$8 sm:$0x3] %vm322_vm0, %v530_v33   ;;  %s1263_s28 = smov 3 }
  0x1d   :  { %1038 = vst.msk [vmem:[%s1703_s1 + $0x45] ss:$8 sm:$0x3] %vm322_vm0, %v542_v34   ;;  %1032 = vst.msk [vmem:[%s1703_s1 + $0x37] ss:$8 sm:$0x3] %vm322_vm0, %v506_v35  }
  0x1e   :  { %1033 = vst.msk [vmem:[%s1703_s1 + $0x40] ss:$8 sm:$0x3] %vm322_vm0, %v512_v36   ;;  %1034 = vst.msk [vmem:[%s1703_s1 + $0x41] ss:$8 sm:$0x3] %vm322_vm0, %v518_v37  }
  0x1f   :  { %v724_v38 = vld [vmem:[#allocation0 + $0x101] ss:$8 sm:$0xf]   ;;  %v548_v39 = vld [vmem:[#allocation0 + $0x130] ss:$2 sm:%s547_s18]   ;;  %s433_s2 = smov 3 }
  0x20   :  { %v726_v40 = vld [vmem:[#allocation0 + $0x101] ss:$8 sm:$0xf0]   ;;  %1039 = vst.msk [vmem:[%s1703_s1 + $0x46] ss:$8 sm:$0x3] %vm322_vm0, %v548_v39  }
  0x21   :  { %v980_v41 = vld [vmem:[%s1702_s0 + $0x58] sm:$0xf]  ;;  %v728_v42 = vsel %vm706_vm1, %v726_v40, %v724_v38  ;;  %v981_v43 = vld [vmem:[%s1702_s0 + $0x54] sm:$0xf]  ;;  %v982_v44 = vld [vmem:[%s1702_s0 + $0x50] sm:$0xf] }
  0x22   :  { %213 = vst [vmem:[#allocation0 + $0xb0] sm:$0xf] %v980_v41  ;;  %v983_v45 = vld [vmem:[%s1702_s0 + $0x4c] sm:$0xf]  ;;  %729 = vrot.lane.b32.xlu1 %v728_v42, %s1081_s14  ;;  %218 = vst [vmem:[#allocation0 + $0xa8] sm:$0xf] %v981_v43 }
  0x23   :  { %223 = vst [vmem:[#allocation0 + $0xa0] sm:$0xf] %v982_v44  ;;  %228 = vst [vmem:[#allocation0 + $0x98] sm:$0xf] %v983_v45  ;;  %v984_v46 = vld [vmem:[%s1702_s0 + $0x48] sm:$0xf] }
  0x24   :  { %v985_v47 = vld [vmem:[%s1702_s0 + $0x44] sm:$0xf]  ;;  %v986_v48 = vld [vmem:[%s1702_s0 + $0x40] sm:$0xf]  ;;  %233 = vst [vmem:[#allocation0 + $0x90] sm:$0xf] %v984_v46 }
  0x25   :  { %v554_v49 = vld [vmem:[#allocation0 + $0x138] ss:$2 sm:%s553_s6]   ;;  %238 = vst [vmem:[#allocation0 + $0x88] sm:$0xf] %v985_v47  ;;  %243 = vst [vmem:[#allocation0 + $0x80] sm:$0xf] %v986_v48 }
  0x26   :  { %v978_v50 = vld [vmem:[%s1702_s0 + $0x60] sm:$0xf]  ;;  %1040 = vst.msk [vmem:[%s1703_s1 + $0x47] ss:$8 sm:$0x3] %vm322_vm0, %v554_v49   ;;  %s439_s3 = smov 3 }
  0x27   :  { %203 = vst [vmem:[#allocation0 + $0xc0] sm:$0xf] %v978_v50  ;;  %v947_v51 = vld [vmem:[%s1702_s0 + $0xdc] sm:$0xf]  ;;  %v948_v52 = vld [vmem:[%s1702_s0 + $0xd8] sm:$0xf] }
  0x28   :  { %s445_s8 = smov 3  ;;  %s451_s9 = smov 3  ;;  %48 = vst [vmem:[#allocation0 + $0x1b8] sm:$0xf] %v947_v51  ;;  %53 = vst [vmem:[#allocation0 + $0x1b0] sm:$0xf] %v948_v52 }
  0x29   :  { %v949_v53 = vld [vmem:[%s1702_s0 + $0xd4] sm:$0xf]  ;;  %v950_v54 = vld [vmem:[%s1702_s0 + $0xd0] sm:$0xf]  ;;  %s1284_s16 = smov 3  ;;  %s1292_s24 = smov 3 }
  0x2a   :  { %58 = vst [vmem:[#allocation0 + $0x1a8] sm:$0xf] %v949_v53  ;;  %63 = vst [vmem:[#allocation0 + $0x1a0] sm:$0xf] %v950_v54  ;;  %v951_v55 = vld [vmem:[%s1702_s0 + $0xcc] sm:$0xf] }
  0x2b   :  { %v952_v56 = vld [vmem:[%s1702_s0 + $0xc8] sm:$0xf]  ;;  %68 = vst [vmem:[#allocation0 + $0x198] sm:$0xf] %v951_v55  ;;  %v953_v57 = vld [vmem:[%s1702_s0 + $0xc4] sm:$0xf] }
  0x2c   :  { %73 = vst [vmem:[#allocation0 + $0x190] sm:$0xf] %v952_v56  ;;  %v954_v58 = vld [vmem:[%s1702_s0 + $0xc0] sm:$0xf]  ;;  %v955_v59 = vld [vmem:[%s1702_s0 + $0xbc] sm:$0xf] }
  0x2d   :  { %v452_v60 = vld [vmem:[#allocation0 + $0xb0] ss:$2 sm:%s451_s9]   ;;  %78 = vst [vmem:[#allocation0 + $0x188] sm:$0xf] %v953_v57  ;;  %83 = vst [vmem:[#allocation0 + $0x180] sm:$0xf] %v954_v58 }
  0x2e   :  { %88 = vst [vmem:[#allocation0 + $0x178] sm:$0xf] %v955_v59  ;;  %s1303_s30 = smov 3  ;;  %s1305_s4 = smov 3  ;;  %v946_v61 = vld [vmem:[%s1702_s0 + $0xe0] sm:$0xf] }
  0x2f   :  { %v434_v62 = vld [vmem:[#allocation0 + $0x98] ss:$2 sm:%s433_s2]   ;;  %v446_v0 = vld [vmem:[#allocation0 + $0xa8] ss:$2 sm:%s445_s8]   ;;  %43 = vst [vmem:[#allocation0 + $0x1c0] sm:$0xf] %v946_v61 }
  0x30   :  { %v440_v63 = vld [vmem:[#allocation0 + $0xa0] ss:$2 sm:%s439_s3]   ;;  %1023 = vst.msk [vmem:[%s1703_s1 + $0x26] ss:$8 sm:$0x3] %vm322_vm0, %v452_v60   ;;  %s625_s19 = smov 3 }
  0x31   :  { %v416_v1 = vld [vmem:[#allocation0 + $0x80] ss:$2 sm:%s1239_s11]   ;;  %v428_v3 = vld [vmem:[#allocation0 + $0x90] ss:$2 sm:%s1263_s28]   ;;  %s631_s22 = smov 3  ;;  %s637_s23 = smov 3 }
  0x32   :  { %v422_v2 = vld [vmem:[#allocation0 + $0x88] ss:$2 sm:%s1261_s27]   ;;  %1020 = vst.msk [vmem:[%s1703_s1 + $0x23] ss:$8 sm:$0x3] %vm322_vm0, %v434_v62   ;;  %s643_s8 = smov 3 }
  0x33   :  { %1021 = vst.msk [vmem:[%s1703_s1 + $0x24] ss:$8 sm:$0x3] %vm322_vm0, %v440_v63   ;;  %1022 = vst.msk [vmem:[%s1703_s1 + $0x25] ss:$8 sm:$0x3] %vm322_vm0, %v446_v0  }
  0x34   :  { %1017 = vst.msk [vmem:[%s1703_s1 + $0x20] ss:$8 sm:$0x3] %vm322_vm0, %v416_v1   ;;  %1018 = vst.msk [vmem:[%s1703_s1 + $0x21] ss:$8 sm:$0x3] %vm322_vm0, %v422_v2  }
  0x35   :  { %1019 = vst.msk [vmem:[%s1703_s1 + $0x22] ss:$8 sm:$0x3] %vm322_vm0, %v428_v3   ;;  %v713_v4 = vld [vmem:[#allocation0 + $0x81] ss:$8 sm:$0xf]  }
  0x36   :  { %v715_v5 = vld [vmem:[#allocation0 + $0x81] ss:$8 sm:$0xf0]   ;;  %v458_v7 = vld [vmem:[#allocation0 + $0xb8] ss:$2 sm:%s1284_s16]   ;;  %s619_s16 = smov 3 }
  0x37   :  { %v717_v6 = vsel %vm706_vm1, %v715_v5, %v713_v4  ;;  %v987_v8 = vld [vmem:[%s1702_s0 + $0x3c] sm:$0xf]  ;;  %1024 = vst.msk [vmem:[%s1703_s1 + $0x27] ss:$8 sm:$0x3] %vm322_vm0, %v458_v7   ;;  %s649_s9 = smov 3 }
  0x38   :  { %718 = vrot.lane.b32.xlu0 %v717_v6, %s1081_s14  ;;  %v737_v9 = vld [vmem:[#allocation0 + $0x181] ss:$8 sm:$0xf0]   ;;  %248 = vst [vmem:[#allocation0 + $0x78] sm:$0xf] %v987_v8  ;;  %s1385_s17 = smov 3 }
  0x39   :  { %v620_v10 = vld [vmem:[#allocation0 + $0x190] ss:$2 sm:%s619_s16]   ;;  %v632_v12 = vld [vmem:[#allocation0 + $0x1a0] ss:$2 sm:%s631_s22]   ;;  %s1406_s22 = smov 3  ;;  %s1422_s3 = smov 3 }
  0x3a   :  { %v626_v11 = vld [vmem:[#allocation0 + $0x198] ss:$2 sm:%s625_s19]   ;;  %v614_v15 = vld [vmem:[#allocation0 + $0x188] ss:$2 sm:%s1305_s4]   ;;  %s1392_s19 = smov 3  ;;  %s1424_s11 = smov 3 }
  0x3b   :  { %v602_v13 = vld [vmem:[#allocation0 + $0x178] ss:$2 sm:%s1292_s24]   ;;  %1051 = vst.msk [vmem:[%s1703_s1 + $0x62] ss:$8 sm:$0x3] %vm322_vm0, %v620_v10   ;;  %s1430_s7 = smov 3 }
  0x3c   :  { %v608_v14 = vld [vmem:[#allocation0 + $0x180] ss:$2 sm:%s1303_s30]   ;;  %1052 = vst.msk [vmem:[%s1703_s1 + $0x63] ss:$8 sm:$0x3] %vm322_vm0, %v626_v11   ;;  %s409_s15 = smov 3 }
  0x3d   :  { %1053 = vst.msk [vmem:[%s1703_s1 + $0x64] ss:$8 sm:$0x3] %vm322_vm0, %v632_v12   ;;  %1048 = vst.msk [vmem:[%s1703_s1 + $0x57] ss:$8 sm:$0x3] %vm322_vm0, %v602_v13  }
  0x3e   :  { %1049 = vst.msk [vmem:[%s1703_s1 + $0x60] ss:$8 sm:$0x3] %vm322_vm0, %v608_v14   ;;  %1050 = vst.msk [vmem:[%s1703_s1 + $0x61] ss:$8 sm:$0x3] %vm322_vm0, %v614_v15  }
  0x3f   :  { %v638_v16 = vld [vmem:[#allocation0 + $0x1a8] ss:$2 sm:%s637_s23]   ;;  %v988_v17 = vld [vmem:[%s1702_s0 + $0x38] sm:$0xf]  ;;  %v993_v38 = vld [vmem:[%s1702_s0 + $0x24] sm:$0xf] }
  0x40   :  { %1054 = vst.msk [vmem:[%s1703_s1 + $0x65] ss:$8 sm:$0x3] %vm322_vm0, %v638_v16   ;;  %v735_v18 = vld [vmem:[#allocation0 + $0x181] ss:$8 sm:$0xf]  }
  0x41   :  { %v644_v19 = vld [vmem:[#allocation0 + $0x1b0] ss:$2 sm:%s643_s8]   ;;  %253 = vst [vmem:[#allocation0 + $0x70] sm:$0xf] %v988_v17  ;;  %v739_v20 = vsel %vm706_vm1, %v737_v9, %v735_v18  ;;  %v991_v35 = vld [vmem:[%s1702_s0 + $0x2c] sm:$0xf] }
  0x42   :  { %1055 = vst.msk [vmem:[%s1703_s1 + $0x66] ss:$8 sm:$0x3] %vm322_vm0, %v644_v19   ;;  %v650_v21 = vld [vmem:[#allocation0 + $0x1b8] ss:$2 sm:%s649_s9]   ;;  %740 = vrot.lane.b32.xlu1 %v739_v20, %s1081_s14  ;;  %s403_s8 = smov 3 }
  0x43   :  { %v746_v22 = vld [vmem:[#allocation0 + $0x3] ss:$8 sm:$0xf]   ;;  %1056 = vst.msk [vmem:[%s1703_s1 + $0x67] ss:$8 sm:$0x3] %vm322_vm0, %v650_v21  }
  0x44   :  { %v748_v23 = vld [vmem:[#allocation0 + $0x3] ss:$8 sm:$0xf0]   ;;  %v989_v33 = vld [vmem:[%s1702_s0 + $0x34] sm:$0xf]  ;;  %s1441_s20 = smov 3 }
  0x45   :  { %v757_v24 = vld [vmem:[#allocation0 + $0x83] ss:$8 sm:$0xf]   ;;  %v750_v25 = vsel %vm706_vm1, %v748_v23, %v746_v22  ;;  %258 = vst [vmem:[#allocation0 + $0x68] sm:$0xf] %v989_v33  ;;  %s1458_s5 = smov 3 }
  0x46   :  { %v759_v26 = vld [vmem:[#allocation0 + $0x83] ss:$8 sm:$0xf0]   ;;  %751 = vrot.lane.b32.xlu0 %v750_v25, %s1081_s14  ;;  %268 = vst [vmem:[#allocation0 + $0x58] sm:$0xf] %v991_v35  ;;  %s1460_s6 = smov 3 }
  0x47   :  { %v768_v27 = vld [vmem:[#allocation0 + $0x103] ss:$8 sm:$0xf]   ;;  %v761_v28 = vsel %vm706_vm1, %v759_v26, %v757_v24  ;;  %278 = vst [vmem:[#allocation0 + $0x48] sm:$0xf] %v993_v38  ;;  %s481_s9 = smov 3 }
  0x48   :  { %v770_v29 = vld [vmem:[#allocation0 + $0x103] ss:$8 sm:$0xf0]   ;;  %762 = vrot.lane.b32.xlu1 %v761_v28, %s1081_s14  ;;  %v973_v40 = vld [vmem:[%s1702_s0 + $0x74] sm:$0xf]  ;;  %s487_s10 = smov 3 }
  0x49   :  { %v779_v30 = vld [vmem:[#allocation0 + $0x183] ss:$8 sm:$0xf]   ;;  %v772_v31 = vsel %vm706_vm1, %v770_v29, %v768_v27  ;;  %v404_v42 = vld [vmem:[#allocation0 + $0x70] ss:$2 sm:%s403_s8]   ;;  %s499_s16 = smov 3 }
  0x4a   :  { %v781_v32 = vld [vmem:[#allocation0 + $0x183] ss:$8 sm:$0xf0]   ;;  %773 = vrot.lane.b32.xlu0 %v772_v31, %s1081_s14  ;;  %178 = vst [vmem:[#allocation0 + $0xe8] sm:$0xf] %v973_v40  ;;  %s565_s18 = smov 3 }
  0x4b   :  { %v990_v34 = vld [vmem:[%s1702_s0 + $0x30] sm:$0xf]  ;;  %v992_v36 = vld [vmem:[%s1702_s0 + $0x28] sm:$0xf]  ;;  %v783_v37 = vsel %vm706_vm1, %v781_v32, %v779_v30  ;;  %v972_v39 = vld [vmem:[%s1702_s0 + $0x78] sm:$0xf] }
  0x4c   :  { %263 = vst [vmem:[#allocation0 + $0x60] sm:$0xf] %v990_v34  ;;  %273 = vst [vmem:[#allocation0 + $0x50] sm:$0xf] %v992_v36  ;;  %v974_v41 = vld [vmem:[%s1702_s0 + $0x70] sm:$0xf]  ;;  %784 = vrot.lane.b32.xlu1 %v783_v37, %s1081_s14 }
  0x4d   :  { %173 = vst [vmem:[#allocation0 + $0xf0] sm:$0xf] %v972_v39  ;;  %183 = vst [vmem:[#allocation0 + $0xe0] sm:$0xf] %v974_v41  ;;  %v975_v43 = vld [vmem:[%s1702_s0 + $0x6c] sm:$0xf] }
  0x4e   :  { %1015 = vst.msk [vmem:[%s1703_s1 + $0x16] ss:$8 sm:$0x3] %vm322_vm0, %v404_v42   ;;  %v410_v44 = vld [vmem:[#allocation0 + $0x78] ss:$2 sm:%s409_s15]   ;;  %s655_s26 = smov 3 }
  0x4f   :  { %188 = vst [vmem:[#allocation0 + $0xd8] sm:$0xf] %v975_v43  ;;  %v976_v45 = vld [vmem:[%s1702_s0 + $0x68] sm:$0xf]  ;;  %v977_v46 = vld [vmem:[%s1702_s0 + $0x64] sm:$0xf] }
  0x50   :  { %1016 = vst.msk [vmem:[%s1703_s1 + $0x17] ss:$8 sm:$0x3] %vm322_vm0, %v410_v44   ;;  %193 = vst [vmem:[#allocation0 + $0xd0] sm:$0xf] %v976_v45  ;;  %s661_s24 = smov 3 }
  0x51   :  { %198 = vst [vmem:[#allocation0 + $0xc8] sm:$0xf] %v977_v46  ;;  %v956_v47 = vld [vmem:[%s1702_s0 + $0xb8] sm:$0xf]  ;;  %v957_v48 = vld [vmem:[%s1702_s0 + $0xb4] sm:$0xf] }
  0x52   :  { %93 = vst [vmem:[#allocation0 + $0x170] sm:$0xf] %v956_v47  ;;  %98 = vst [vmem:[#allocation0 + $0x168] sm:$0xf] %v957_v48  ;;  %v958_v49 = vld [vmem:[%s1702_s0 + $0xb0] sm:$0xf] }
  0x53   :  { %v959_v50 = vld [vmem:[%s1702_s0 + $0xac] sm:$0xf]  ;;  %103 = vst [vmem:[#allocation0 + $0x160] sm:$0xf] %v958_v49  ;;  %v960_v52 = vld [vmem:[%s1702_s0 + $0xa8] sm:$0xf] }
  0x54   :  { %v398_v51 = vld [vmem:[#allocation0 + $0x68] ss:$2 sm:%s1430_s7]   ;;  %s493_s7 = smov 3  ;;  %108 = vst [vmem:[#allocation0 + $0x158] sm:$0xf] %v959_v50  ;;  %s667_s29 = smov 3 }
  0x55   :  { %v380_v53 = vld [vmem:[#allocation0 + $0x50] ss:$2 sm:%s1406_s22]   ;;  %v392_v55 = vld [vmem:[#allocation0 + $0x60] ss:$2 sm:%s1424_s11]   ;;  %113 = vst [vmem:[#allocation0 + $0x150] sm:$0xf] %v960_v52 }
  0x56   :  { %v386_v54 = vld [vmem:[#allocation0 + $0x58] ss:$2 sm:%s1422_s3]   ;;  %1014 = vst.msk [vmem:[%s1703_s1 + $0x15] ss:$8 sm:$0x3] %vm322_vm0, %v398_v51   ;;  %s583_s22 = smov 3 }
  0x57   :  { %v368_v56 = vld [vmem:[#allocation0 + $0x40] ss:$2 sm:%s1385_s17]   ;;  %1011 = vst.msk [vmem:[%s1703_s1 + $0x12] ss:$8 sm:$0x3] %vm322_vm0, %v380_v53   ;;  %s589_s3 = smov 3 }
  0x58   :  { %v374_v57 = vld [vmem:[#allocation0 + $0x48] ss:$2 sm:%s1392_s19]   ;;  %1012 = vst.msk [vmem:[%s1703_s1 + $0x13] ss:$8 sm:$0x3] %vm322_vm0, %v386_v54   ;;  %s595_s11 = smov 3 }
  0x59   :  { %1013 = vst.msk [vmem:[%s1703_s1 + $0x14] ss:$8 sm:$0x3] %vm322_vm0, %v392_v55   ;;  %v500_v58 = vld [vmem:[#allocation0 + $0xf0] ss:$2 sm:%s499_s16]   ;;  %s577_s16 = smov 3 }
  0x5a   :  { %1009 = vst.msk [vmem:[%s1703_s1 + $0x10] ss:$8 sm:$0x3] %vm322_vm0, %v368_v56   ;;  %1010 = vst.msk [vmem:[%s1703_s1 + $0x11] ss:$8 sm:$0x3] %vm322_vm0, %v374_v57  }
  0x5b   :  { %v790_v59 = vld [vmem:[#allocation0 + $0x41] ss:$8 sm:$0xf]   ;;  %1031 = vst.msk [vmem:[%s1703_s1 + $0x36] ss:$8 sm:$0x3] %vm322_vm0, %v500_v58  }
  0x5c   :  { %v792_v60 = vld [vmem:[#allocation0 + $0x41] ss:$8 sm:$0xf0]   ;;  %v482_v62 = vld [vmem:[#allocation0 + $0xd8] ss:$2 sm:%s481_s9]   ;;  %s673_s30 = smov 3 }
  0x5d   :  { %v794_v61 = vsel %vm706_vm1, %v792_v60, %v790_v59  ;;  %v488_v63 = vld [vmem:[#allocation0 + $0xe0] ss:$2 sm:%s487_s10]   ;;  %v476_v3 = vld [vmem:[#allocation0 + $0xd0] ss:$2 sm:%s1460_s6]   ;;  %s679_s4 = smov 3  ;;  %s685_s2 = smov 3 }
  0x5e   :  { %v494_v0 = vld [vmem:[#allocation0 + $0xe8] ss:$2 sm:%s493_s7]   ;;  %795 = vrot.lane.b32.xlu0 %v794_v61, %s1081_s14  ;;  %1028 = vst.msk [vmem:[%s1703_s1 + $0x33] ss:$8 sm:$0x3] %vm322_vm0, %v482_v62   ;;  %s571_s7 = smov 3 }
  0x5f   :  { %v464_v1 = vld [vmem:[#allocation0 + $0xc0] ss:$2 sm:%s1441_s20]   ;;  %1029 = vst.msk [vmem:[%s1703_s1 + $0x34] ss:$8 sm:$0x3] %vm322_vm0, %v488_v63   ;;  %s691_s12 = smov 3 }
  0x60   :  { %v470_v2 = vld [vmem:[#allocation0 + $0xc8] ss:$2 sm:%s1458_s5]   ;;  %1030 = vst.msk [vmem:[%s1703_s1 + $0x35] ss:$8 sm:$0x3] %vm322_vm0, %v494_v0   ;;  %s697_s13 = smov 3 }
  0x61   :  { %1025 = vst.msk [vmem:[%s1703_s1 + $0x30] ss:$8 sm:$0x3] %vm322_vm0, %v464_v1   ;;  %1026 = vst.msk [vmem:[%s1703_s1 + $0x31] ss:$8 sm:$0x3] %vm322_vm0, %v470_v2  }
  0x62   :  { %1027 = vst.msk [vmem:[%s1703_s1 + $0x32] ss:$8 sm:$0x3] %vm322_vm0, %v476_v3   ;;  %v801_v4 = vld [vmem:[#allocation0 + $0xc1] ss:$8 sm:$0xf]  }
  0x63   :  { %v803_v5 = vld [vmem:[#allocation0 + $0xc1] ss:$8 sm:$0xf0]   ;;  %v961_v7 = vld [vmem:[%s1702_s0 + $0xa4] sm:$0xf] }
  0x64   :  { %v805_v6 = vsel %vm706_vm1, %v803_v5, %v801_v4  ;;  %v939_v8 = vld [vmem:[%s1702_s0 + $0xfc] sm:$0xf]  ;;  %118 = vst [vmem:[#allocation0 + $0x148] sm:$0xf] %v961_v7  ;;  %v584_v9 = vld [vmem:[#allocation0 + $0x160] ss:$2 sm:%s583_s22]  }
  0x65   :  { %806 = vrot.lane.b32.xlu1 %v805_v6, %s1081_s14  ;;  %v590_v10 = vld [vmem:[#allocation0 + $0x168] ss:$2 sm:%s589_s3]   ;;  %8 = vst [vmem:[#allocation0 + $0x1f8] sm:$0xf] %v939_v8  ;;  %v940_v12 = vld [vmem:[%s1702_s0 + $0xf8] sm:$0xf] }
  0x66   :  { %1045 = vst.msk [vmem:[%s1703_s1 + $0x54] ss:$8 sm:$0x3] %vm322_vm0, %v584_v9   ;;  %1046 = vst.msk [vmem:[%s1703_s1 + $0x55] ss:$8 sm:$0x3] %vm322_vm0, %v590_v10  }
  0x67   :  { %v596_v11 = vld [vmem:[#allocation0 + $0x170] ss:$2 sm:%s595_s11]   ;;  %13 = vst [vmem:[#allocation0 + $0x1f0] sm:$0xf] %v940_v12  ;;  %v943_v15 = vld [vmem:[%s1702_s0 + $0xec] sm:$0xf] }
  0x68   :  { %1047 = vst.msk [vmem:[%s1703_s1 + $0x56] ss:$8 sm:$0x3] %vm322_vm0, %v596_v11   ;;  %v941_v13 = vld [vmem:[%s1702_s0 + $0xf4] sm:$0xf] }
  0x69   :  { %v942_v14 = vld [vmem:[%s1702_s0 + $0xf0] sm:$0xf]  ;;  %18 = vst [vmem:[#allocation0 + $0x1e8] sm:$0xf] %v941_v13  ;;  %v944_v16 = vld [vmem:[%s1702_s0 + $0xe8] sm:$0xf] }
  0x6a   :  { %23 = vst [vmem:[#allocation0 + $0x1e0] sm:$0xf] %v942_v14  ;;  %v945_v17 = vld [vmem:[%s1702_s0 + $0xe4] sm:$0xf]  ;;  %28 = vst [vmem:[#allocation0 + $0x1d8] sm:$0xf] %v943_v15 }
  0x6b   :  { %v814_v18 = vld [vmem:[#allocation0 + $0x141] ss:$8 sm:$0xf0]   ;;  %33 = vst [vmem:[#allocation0 + $0x1d0] sm:$0xf] %v944_v16  ;;  %s559_s0 = smov 3 }
  0x6c   :  { %38 = vst [vmem:[#allocation0 + $0x1c8] sm:$0xf] %v945_v17  ;;  %v834_v19 = vld [vmem:[#allocation0 + $0x43] ss:$8 sm:$0xf]  }
  0x6d   :  { %v836_v20 = vld [vmem:[#allocation0 + $0x43] ss:$8 sm:$0xf0]   ;;  %v812_v21 = vld [vmem:[#allocation0 + $0x141] ss:$8 sm:$0xf]  }
  0x6e   :  { %v560_v22 = vld [vmem:[#allocation0 + $0x140] ss:$2 sm:%s559_s0]   ;;  %v816_v23 = vsel %vm706_vm1, %v814_v18, %v812_v21  ;;  %v572_v25 = vld [vmem:[#allocation0 + $0x150] ss:$2 sm:%s571_s7]   ;;  %v838_v32 = vsel %vm706_vm1, %v836_v20, %v834_v19 }
  0x6f   :  { %1041 = vst.msk [vmem:[%s1703_s1 + $0x50] ss:$8 sm:$0x3] %vm322_vm0, %v560_v22   ;;  %v566_v24 = vld [vmem:[#allocation0 + $0x148] ss:$2 sm:%s565_s18]   ;;  %817 = vrot.lane.b32.xlu0 %v816_v23, %s1081_s14 }
  0x70   :  { %v578_v26 = vld [vmem:[#allocation0 + $0x158] ss:$2 sm:%s577_s16]   ;;  %v845_v27 = vld [vmem:[#allocation0 + $0xc3] ss:$8 sm:$0xf]  }
  0x71   :  { %v847_v28 = vld [vmem:[#allocation0 + $0xc3] ss:$8 sm:$0xf0]   ;;  %1042 = vst.msk [vmem:[%s1703_s1 + $0x51] ss:$8 sm:$0x3] %vm322_vm0, %v566_v24  }
  0x72   :  { %1043 = vst.msk [vmem:[%s1703_s1 + $0x52] ss:$8 sm:$0x3] %vm322_vm0, %v572_v25   ;;  %1044 = vst.msk [vmem:[%s1703_s1 + $0x53] ss:$8 sm:$0x3] %vm322_vm0, %v578_v26   ;;  %v849_v41 = vsel %vm706_vm1, %v847_v28, %v845_v27 }
  0x73   :  { %v856_v29 = vld [vmem:[#allocation0 + $0x143] ss:$8 sm:$0xf]   ;;  %v825_v31 = vld [vmem:[#allocation0 + $0x1c1] ss:$8 sm:$0xf0]   ;;  %839 = vrot.lane.b32.xlu0 %v838_v32, %s1081_s14 }
  0x74   :  { %v858_v30 = vld [vmem:[#allocation0 + $0x143] ss:$8 sm:$0xf0]   ;;  %v823_v33 = vld [vmem:[#allocation0 + $0x1c1] ss:$8 sm:$0xf]  }
  0x75   :  { %v656_v34 = vld [vmem:[#allocation0 + $0x1c0] ss:$2 sm:%s655_s26]   ;;  %v827_v35 = vsel %vm706_vm1, %v825_v31, %v823_v33  ;;  %v668_v37 = vld [vmem:[#allocation0 + $0x1d0] ss:$2 sm:%s667_s29]   ;;  %v860_v42 = vsel %vm706_vm1, %v858_v30, %v856_v29 }
  0x76   :  { %1057 = vst.msk [vmem:[%s1703_s1 + $0x70] ss:$8 sm:$0x3] %vm322_vm0, %v656_v34   ;;  %v662_v36 = vld [vmem:[#allocation0 + $0x1c8] ss:$2 sm:%s661_s24]   ;;  %828 = vrot.lane.b32.xlu1 %v827_v35, %s1081_s14 }
  0x77   :  { %v674_v38 = vld [vmem:[#allocation0 + $0x1d8] ss:$2 sm:%s673_s30]   ;;  %1058 = vst.msk [vmem:[%s1703_s1 + $0x71] ss:$8 sm:$0x3] %vm322_vm0, %v662_v36   ;;  %861 = vrot.lane.b32.xlu0 %v860_v42, %s1081_s14 }
  0x78   :  { %1059 = vst.msk [vmem:[%s1703_s1 + $0x72] ss:$8 sm:$0x3] %vm322_vm0, %v668_v37   ;;  %1060 = vst.msk [vmem:[%s1703_s1 + $0x73] ss:$8 sm:$0x3] %vm322_vm0, %v674_v38  }
  0x79   :  { %v680_v39 = vld [vmem:[#allocation0 + $0x1e0] ss:$2 sm:%s679_s4]   ;;  %v867_v43 = vld [vmem:[#allocation0 + $0x1c3] ss:$8 sm:$0xf]  }
  0x7a   :  { %v686_v40 = vld [vmem:[#allocation0 + $0x1e8] ss:$2 sm:%s685_s2]   ;;  %1061 = vst.msk [vmem:[%s1703_s1 + $0x74] ss:$8 sm:$0x3] %vm322_vm0, %v680_v39   ;;  %850 = vrot.lane.b32.xlu1 %v849_v41, %s1081_s14 }
  0x7b   :  { %1062 = vst.msk [vmem:[%s1703_s1 + $0x75] ss:$8 sm:$0x3] %vm322_vm0, %v686_v40   ;;  %v869_v44 = vld [vmem:[#allocation0 + $0x1c3] ss:$8 sm:$0xf0]  }
  0x7c   :  { %v692_v45 = vld [vmem:[#allocation0 + $0x1f0] ss:$2 sm:%s691_s12]   ;;  %v871_v47 = vsel %vm706_vm1, %v869_v44, %v867_v43 }
  0x7d   :  { %v698_v46 = vld [vmem:[#allocation0 + $0x1f8] ss:$2 sm:%s697_s13]   ;;  %1063 = vst.msk [vmem:[%s1703_s1 + $0x76] ss:$8 sm:$0x3] %vm322_vm0, %v692_v45  }
  0x7e   :  { %1064 = vst.msk [vmem:[%s1703_s1 + $0x77] ss:$8 sm:$0x3] %vm322_vm0, %v698_v46   ;;  %872 = vrot.lane.b32.xlu1 %v871_v47, %s1081_s14 }
  0x8a   :  { %v709_v48 = vpop.permute.xlu0 %708  }
  0x8b   :  { %711 = vst.msk [vmem:[%s1703_s1] sm:$0xff] %vm710_vm2, %v709_v48  }
  0x94   :  { %v730_v49 = vpop.permute.xlu1 %729  }
  0x95   :  { %1066 = vst.msk [vmem:[%s1703_s1 + $0x40] sm:$0xff] %vm710_vm2, %v730_v49  }
  0xaa   :  { %v719_v50 = vpop.permute.xlu0 %718  }
  0xab   :  { %1065 = vst.msk [vmem:[%s1703_s1 + $0x20] sm:$0xff] %vm710_vm2, %v719_v50  }
  0xb4   :  { %v741_v51 = vpop.permute.xlu1 %740  }
  0xb5   :  { %1067 = vst.msk [vmem:[%s1703_s1 + $0x60] sm:$0xff] %vm710_vm2, %v741_v51  }
  0xb8   :  { %v752_v52 = vpop.permute.xlu0 %751  }
  0xb9   :  { %1068 = vst.msk [vmem:[%s1703_s1 + $0x8] sm:$0xff] %vm710_vm2, %v752_v52  }
  0xba   :  { %v763_v53 = vpop.permute.xlu1 %762  }
  0xbb   :  { %1069 = vst.msk [vmem:[%s1703_s1 + $0x28] sm:$0xff] %vm710_vm2, %v763_v53  }
  0xbc   :  { %v774_v54 = vpop.permute.xlu0 %773  }
  0xbd   :  { %1070 = vst.msk [vmem:[%s1703_s1 + $0x48] sm:$0xff] %vm710_vm2, %v774_v54  }
  0xbe   :  { %v785_v55 = vpop.permute.xlu1 %784  }
  0xbf   :  { %1071 = vst.msk [vmem:[%s1703_s1 + $0x68] sm:$0xff] %vm710_vm2, %v785_v55  }
  0xd0   :  { %v796_v56 = vpop.permute.xlu0 %795  }
  0xd1   :  { %1072 = vst.msk [vmem:[%s1703_s1 + $0x10] sm:$0xff] %vm710_vm2, %v796_v56  }
  0xd7   :  { %v807_v57 = vpop.permute.xlu1 %806  }
  0xd8   :  { %1073 = vst.msk [vmem:[%s1703_s1 + $0x30] sm:$0xff] %vm710_vm2, %v807_v57  }
  0xe1   :  { %v818_v58 = vpop.permute.xlu0 %817  }
  0xe2   :  { %1074 = vst.msk [vmem:[%s1703_s1 + $0x50] sm:$0xff] %vm710_vm2, %v818_v58  }
  0xe5   :  { %v840_v60 = vpop.permute.xlu0 %839  }
  0xe6   :  { %1076 = vst.msk [vmem:[%s1703_s1 + $0x18] sm:$0xff] %vm710_vm2, %v840_v60  }
  0xe8   :  { %v829_v59 = vpop.permute.xlu1 %828  }
  0xe9   :  { %1075 = vst.msk [vmem:[%s1703_s1 + $0x70] sm:$0xff] %vm710_vm2, %v829_v59   ;;  %v862_v62 = vpop.permute.xlu0 %861  }
  0xea   :  { %1078 = vst.msk [vmem:[%s1703_s1 + $0x58] sm:$0xff] %vm710_vm2, %v862_v62  }
  0xec   :  { %v851_v61 = vpop.permute.xlu1 %850  }
  0xed   :  { %1077 = vst.msk [vmem:[%s1703_s1 + $0x38] sm:$0xff] %vm710_vm2, %v851_v61  }
  0xf0   :  { %v873_v63 = vpop.permute.xlu1 %872  }
  0xf1   :  { %1079 = vst.msk [vmem:[%s1703_s1 + $0x78] sm:$0xff] %vm710_vm2, %v873_v63  }

// kernel: gat_forward.1
= control target key start
LH: loop header
LB: loop body
LE: loop exit
PB: predicated region body
PF: predicated region fallthrough
CT: control target
= control target key end

     0   :  { %vm182_vm0 = vcmask 261120   ;;  %v3380_v62 = vmov 0.0   ;;  %vm818_vm1 = vcmask 1043456   ;;  %s4930_s1 = inlined_call_operand.vmem [shape: f32[32,128], index: 1, kind: input, shape index: {}]   ;;  %s4931_s0 = inlined_call_operand.vmem [shape: f32[64,32], index: 0, kind: input, shape index: {}]   ;;  %s4932_s2 = inlined_call_operand.vmem [shape: f32[128,256], index: 2, kind: input, shape index: {}]   ;;  %s4933_s3 = inlined_call_operand.vmem [shape: f32[1,128], index: 3, kind: input, shape index: {}]   ;;  %s4934_s4 = inlined_call_operand.vmem [shape: f32[256,128], index: 4, kind: input, shape index: {}]   ;;  %s4935_s6 = inlined_call_operand.vmem [shape: f32[4,128], index: 6, kind: input, shape index: {}]   ;;  %s4936_s5 = inlined_call_operand.vmem [shape: f32[256,4], index: 5, kind: input, shape index: {}]   ;;  %s4937_s7 = inlined_call_operand.vmem [shape: f32[64,256], index: 7, kind: input, shape index: {}, may-alias: {7,14}]   ;;  %s4938_s8 = inlined_call_operand.vmem [shape: f32[128,128], index: 8, kind: input, shape index: {}]   ;;  %s4939_s9 = inlined_call_operand.vmem [shape: f32[128,256], index: 9, kind: input, shape index: {}]   ;;  %s4940_s12 = inlined_call_operand.vmem [shape: f32[256,4], index: 12, kind: input, shape index: {}]   ;;  %s4941_s10 = inlined_call_operand.vmem [shape: f32[1,128], index: 10, kind: input, shape index: {}]   ;;  %s4942_s11 = inlined_call_operand.vmem [shape: f32[256,128], index: 11, kind: input, shape index: {}]   ;;  %s4943_s14 = inlined_call_operand.vmem [shape: f32[64,256], index: 14, kind: input, shape index: {}, may-alias: {7,14}]   ;;  %s4944_s13 = inlined_call_operand.vmem [shape: f32[4,128], index: 13, kind: input, shape index: {}]   ;;  %s4945_s15 = inlined_call_operand.vmem [shape: f32[128,8], index: 15, kind: input, shape index: {}]   ;;  %s4946_s16 = inlined_call_operand.vmem [shape: f32[1,8], index: 16, kind: input, shape index: {}]   ;;  %s4947_s17 = inlined_call_operand.vmem [shape: f32[64,8], index: 17, kind: output, shape index: {}]  }
   0x1   :  { %4950 = sst [smem:[#allocation2_spill]] %s4930_s1  ;;  %v69_v7 = vld [vmem:[%s4932_s2 + $0x8] sm:$0xff]  ;;  %v71_v8 = vld [vmem:[%s4932_s2 + $0x18] sm:$0xff]  ;;  %v68_v9 = vld [vmem:[%s4932_s2] sm:$0xff]  ;;  %487 = vmatprep.mubr.f32.mxu0 %v3380_v62 }
   0x2   :  { %4951 = sst [smem:[#allocation3_spill]] %s4931_s0  ;;  %s4952_s26 = sld [smem:[#allocation2_spill]]  ;;  %v2931_v10 = vpack.c.bf16 %v71_v8, %v69_v7  ;;  %v70_v11 = vld [vmem:[%s4932_s2 + $0x10] sm:$0xff]  ;;  %v73_v12 = vld [vmem:[%s4932_s2 + $0x28] sm:$0xff]  ;;  %v75_v13 = vld [vmem:[%s4932_s2 + $0x38] sm:$0xff] }
   0x3   :  { %s4953_s20 = sld [smem:[#allocation3_spill]]  ;;  %v2933_v14 = vpack.c.bf16 %v70_v11, %v68_v9  ;;  %v2935_v15 = vpack.c.bf16 %v75_v13, %v73_v12  ;;  %v72_v16 = vld [vmem:[%s4932_s2 + $0x20] sm:$0xff]  ;;  %v74_v17 = vld [vmem:[%s4932_s2 + $0x30] sm:$0xff]  ;;  %v77_v18 = vld [vmem:[%s4932_s2 + $0x48] sm:$0xff] }
   0x4   :  { %2932 = vmatprep.subr.bf16.mxu0 %v2931_v10  ;;  %v79_v19 = vld [vmem:[%s4932_s2 + $0x58] sm:$0xff]  ;;  %v2937_v21 = vpack.c.bf16 %v74_v17, %v72_v16  ;;  %v76_v24 = vld [vmem:[%s4932_s2 + $0x40] sm:$0xff]  ;;  %v78_v25 = vld [vmem:[%s4932_s2 + $0x50] sm:$0xff] }
   0x5   :  { %2934 = vmatpush1.bf16.msra.mxu0 %v2933_v14  ;;  %v2939_v23 = vpack.c.bf16 %v79_v19, %v77_v18  ;;  %v81_v26 = vld [vmem:[%s4932_s2 + $0x68] sm:$0xff]  ;;  %v83_v27 = vld [vmem:[%s4932_s2 + $0x78] sm:$0xff]  ;;  %v2941_v29 = vpack.c.bf16 %v78_v25, %v76_v24  ;;  %v80_v32 = vld [vmem:[%s4932_s2 + $0x60] sm:$0xff] }
   0x6   :  { %2936 = vmatprep.subr.bf16.mxu0 %v2935_v15  ;;  %v2943_v31 = vpack.c.bf16 %v83_v27, %v81_v26  ;;  %v82_v33 = vld [vmem:[%s4932_s2 + $0x70] sm:$0xff]  ;;  %v85_v34 = vld [vmem:[%s4932_s2 + $0x88] sm:$0xff]  ;;  %v87_v35 = vld [vmem:[%s4932_s2 + $0x98] sm:$0xff] }
   0x7   :  { %v2945_v37 = vpack.c.bf16 %v82_v33, %v80_v32  ;;  %v2947_v39 = vpack.c.bf16 %v87_v35, %v85_v34  ;;  %v84_v40 = vld [vmem:[%s4932_s2 + $0x80] sm:$0xff]  ;;  %v86_v41 = vld [vmem:[%s4932_s2 + $0x90] sm:$0xff]  ;;  %v89_v42 = vld [vmem:[%s4932_s2 + $0xa8] sm:$0xff] }
   0x8   :  { %v64_v0 = vld [vmem:[%s4952_s26] sm:$0xff]  ;;  %v65_v1 = vld [vmem:[%s4952_s26 + $0x8] sm:$0xff]  ;;  %v66_v2 = vld [vmem:[%s4952_s26 + $0x10] sm:$0xff]  ;;  %v2949_v45 = vpack.c.bf16 %v86_v41, %v84_v40 }
   0x9   :  { %v2891_v3 = vpack.c.bf16 %v65_v1, %v64_v0  ;;  %v67_v4 = vld [vmem:[%s4952_s26 + $0x18] sm:$0xff]  ;;  %v56_v5 = vld [vmem:[%s4953_s20] sm:$0xff]  ;;  %v57_v20 = vld [vmem:[%s4953_s20 + $0x8] sm:$0xff]  ;;  %2938 = vmatpush1.bf16.msra.mxu0 %v2937_v21 }
   0xa   :  { %v2895_v6 = vpack.c.bf16 %v67_v4, %v66_v2  ;;  %2763 = vmatprep.mubr.msk.f32.mxu1 %vm182_vm0, %v56_v5  ;;  %v58_v22 = vld [vmem:[%s4953_s20 + $0x10] sm:$0xff]  ;;  %v59_v28 = vld [vmem:[%s4953_s20 + $0x18] sm:$0xff]  ;;  %v60_v30 = vld [vmem:[%s4953_s20 + $0x20] sm:$0xff]  ;;  %2940 = vmatprep.subr.bf16.mxu0 %v2939_v23 }
   0xb   :  { %2892 = vmatprep.subr.bf16.mxu1 %v2891_v3  ;;  %v61_v36 = vld [vmem:[%s4953_s20 + $0x28] sm:$0xff]  ;;  %v62_v38 = vld [vmem:[%s4953_s20 + $0x30] sm:$0xff]  ;;  %v91_v43 = vld [vmem:[%s4932_s2 + $0xb8] sm:$0xff] }
   0xc   :  { %2894 = vmatpush3.bf16.msra.mxu1 %v2891_v3  ;;  %v63_v44 = vld [vmem:[%s4953_s20 + $0x38] sm:$0xff]  ;;  %v2951_v46 = vpack.c.bf16 %v91_v43, %v89_v42  ;;  %v88_v47 = vld [vmem:[%s4932_s2 + $0xa0] sm:$0xff]  ;;  %v90_v48 = vld [vmem:[%s4932_s2 + $0xb0] sm:$0xff] }
   0xd   :  { %2896 = vmatprep.subr.bf16.mxu1 %v2895_v6  ;;  %2942 = vmatpush1.bf16.msra.mxu0 %v2941_v29  ;;  %v93_v49 = vld [vmem:[%s4932_s2 + $0xc8] sm:$0xff]  ;;  %v95_v50 = vld [vmem:[%s4932_s2 + $0xd8] sm:$0xff]  ;;  %v2953_v51 = vpack.c.bf16 %v90_v48, %v88_v47  ;;  %v92_v53 = vld [vmem:[%s4932_s2 + $0xc0] sm:$0xff] }
   0xe   :  { %2944 = vmatprep.subr.bf16.mxu0 %v2943_v31  ;;  %v2955_v52 = vpack.c.bf16 %v95_v50, %v93_v49  ;;  %v94_v54 = vld [vmem:[%s4932_s2 + $0xd0] sm:$0xff]  ;;  %v97_v55 = vld [vmem:[%s4932_s2 + $0xe8] sm:$0xff]  ;;  %v99_v56 = vld [vmem:[%s4932_s2 + $0xf8] sm:$0xff] }
   0xf   :  { %v2957_v57 = vpack.c.bf16 %v94_v54, %v92_v53  ;;  %v2959_v58 = vpack.c.bf16 %v99_v56, %v97_v55  ;;  %v96_v59 = vld [vmem:[%s4932_s2 + $0xe0] sm:$0xff]  ;;  %v98_v60 = vld [vmem:[%s4932_s2 + $0xf0] sm:$0xff]  ;;  %v102_v0 = vld [vmem:[%s4934_s4 + $0x8] sm:$0xff] }
  0x10   :  { %2898 = vmatpush3.bf16.msra.mxu1 %v2895_v6  ;;  %v2961_v61 = vpack.c.bf16 %v98_v60, %v96_v59  ;;  %v3615_v63 = vld [vmem:[%s4933_s3] sm:$0x1]  ;;  %v110_v1 = vld [vmem:[%s4934_s4 + $0x48] sm:$0xff]  ;;  %v104_v13 = vld [vmem:[%s4934_s4 + $0x18] sm:$0xff] }
  0x11   :  { %2946 = vmatpush1.bf16.msra.mxu0 %v2945_v37  ;;  %v101_v2 = vld [vmem:[%s4934_s4] sm:$0xff]  ;;  %v118_v3 = vld [vmem:[%s4934_s4 + $0x88] sm:$0xff]  ;;  %v112_v18 = vld [vmem:[%s4934_s4 + $0x58] sm:$0xff] }
  0x12   :  { %2948 = vmatprep.subr.bf16.mxu0 %v2947_v39  ;;  %v126_v4 = vld [vmem:[%s4934_s4 + $0xc8] sm:$0xff]  ;;  %v109_v5 = vld [vmem:[%s4934_s4 + $0x40] sm:$0xff]  ;;  %v120_v19 = vld [vmem:[%s4934_s4 + $0x98] sm:$0xff] }
  0x13   :  { %2764 = vmatmul.mubr.msk.f32.vlgmr.msra.gmra.mrb[0].mxu1 %vm182_vm0, %v57_v20  ;;  %v117_v6 = vld [vmem:[%s4934_s4 + $0x80] sm:$0xff]  ;;  %v128_v21 = vld [vmem:[%s4934_s4 + $0xd8] sm:$0xff]  ;;  %v111_v23 = vld [vmem:[%s4934_s4 + $0x50] sm:$0xff] }
  0x14   :  { %2766 = vmatprep.mubr.msk.f32.mxu1 %vm182_vm0, %v58_v22  ;;  %v125_v7 = vld [vmem:[%s4934_s4 + $0xc0] sm:$0xff]  ;;  %v103_v22 = vld [vmem:[%s4934_s4 + $0x10] sm:$0xff]  ;;  %v106_v39 = vld [vmem:[%s4934_s4 + $0x28] sm:$0xff] }
  0x15   :  { %2950 = vmatpush1.bf16.msra.mxu0 %v2949_v45  ;;  %v119_v24 = vld [vmem:[%s4934_s4 + $0x90] sm:$0xff]  ;;  %v114_v40 = vld [vmem:[%s4934_s4 + $0x68] sm:$0xff]  ;;  %v105_v42 = vld [vmem:[%s4934_s4 + $0x20] sm:$0xff] }
  0x16   :  { %2952 = vmatprep.subr.bf16.mxu0 %v2951_v46  ;;  %v122_v41 = vld [vmem:[%s4934_s4 + $0xa8] sm:$0xff]  ;;  %v113_v43 = vld [vmem:[%s4934_s4 + $0x60] sm:$0xff]  ;;  %v108_v56 = vld [vmem:[%s4934_s4 + $0x38] sm:$0xff] }
  0x17   :  { %2767 = vmatmul.mubr.msk.f32.gmra.mrb[2].mxu1 %vm182_vm0, %v59_v28  ;;  %v129_v50 = vld [vmem:[%s4934_s4 + $0xe0] sm:$0xff] }
  0x18   :  { %2769 = vmatprep.mubr.msk.f32.mxu1 %vm182_vm0, %v60_v30  ;;  %v127_v30 = vld [vmem:[%s4934_s4 + $0xd0] sm:$0xff] }
  0x19   :  { %2954 = vmatpush1.bf16.msra.mxu0 %v2953_v51  ;;  %v130_v51 = vld [vmem:[%s4934_s4 + $0xe8] sm:$0xff] }
  0x1a   :  { %2956 = vmatprep.subr.bf16.mxu0 %v2955_v52 }
  0x1b   :  { %2770 = vmatmul.mubr.msk.f32.gmra.mrb[4].mxu1 %vm182_vm0, %v61_v36 }
  0x1c   :  { %2772 = vmatprep.mubr.msk.f32.mxu1 %vm182_vm0, %v62_v38 }
  0x1d   :  { %2958 = vmatpush1.bf16.msra.mxu0 %v2957_v57 }
  0x1e   :  { %2960 = vmatprep.subr.bf16.mxu0 %v2959_v58 }
  0x1f   :  { %2773 = vmatmul.mubr.msk.f32.gmra.mrb[6].mxu1 %vm182_vm0, %v63_v44  ;;  %v121_v44 = vld [vmem:[%s4934_s4 + $0xa0] sm:$0xff] }
  0x20   :  { %2429 = vmatprep.mubr.f32.mxu1 %v3615_v63 }
  0x21   :  { %2962 = vmatpush1.bf16.msra.mxu0 %v2961_v61  ;;  %v116_v61 = vld [vmem:[%s4934_s4 + $0x78] sm:$0xff] }
  0xe6   :  { %v2765_v8 = vpop.f32.mrb[0].mxu1 }
  0xe7   :  { %v313_v9 = vmul.f32 %v2765_v8, %v102_v0  ;;  %v321_v10 = vmul.f32 %v2765_v8, %v110_v1  ;;  %v273_v11 = vpop.f32.mrb[1].mxu1  ;;  %v329_v12 = vmul.f32 %v2765_v8, %v118_v3  ;;  %v337_v14 = vmul.f32 %v2765_v8, %v126_v4  ;;  %v107_v0 = vld [vmem:[%s4934_s4 + $0x30] sm:$0xff]  ;;  %v124_v1 = vld [vmem:[%s4934_s4 + $0xb8] sm:$0xff] }
  0xe8   :  { %v312_v15 = vmul.f32 %v273_v11, %v101_v2  ;;  %v320_v16 = vmul.f32 %v273_v11, %v109_v5  ;;  %488 = vmatmul.mubr.f32.vlgmr.msra.gmra.mrb[0].mxu0 %v273_v11  ;;  %v328_v17 = vmul.f32 %v273_v11, %v117_v6  ;;  %v336_v20 = vmul.f32 %v273_v11, %v125_v7  ;;  %v115_v2 = vld [vmem:[%s4934_s4 + $0x70] sm:$0xff]  ;;  %v132_v11 = vld [vmem:[%s4934_s4 + $0xf8] sm:$0xff] }
  0xe9   :  { %493 = vmatprep.mubr.f32.mxu0 %v3380_v62  ;;  %v123_v3 = vld [vmem:[%s4934_s4 + $0xb0] sm:$0xff] }
  0xea   :  { %v3664_v25 = vpack.c.bf16 %v329_v12, %v328_v17  ;;  %v2768_v26 = vpop.f32.mrb[2].mxu1  ;;  %v3666_v27 = vpack.c.bf16 %v313_v9, %v312_v15  ;;  %v3668_v28 = vpack.c.bf16 %v337_v14, %v336_v20  ;;  %v3670_v29 = vpack.c.bf16 %v321_v10, %v320_v16  ;;  %v131_v6 = vld [vmem:[%s4934_s4 + $0xf0] sm:$0xff] }
  0xeb   :  { %v315_v31 = vmul.f32 %v2768_v26, %v104_v13  ;;  %v323_v32 = vmul.f32 %v2768_v26, %v112_v18  ;;  %v283_v33 = vpop.f32.mrb[3].mxu1  ;;  %v331_v34 = vmul.f32 %v2768_v26, %v120_v19  ;;  %v339_v35 = vmul.f32 %v2768_v26, %v128_v21 }
  0xec   :  { %2900 = vmatprep.subr.bf16.mxu1 %v3664_v25  ;;  %494 = vmatmul.mubr.f32.gmra.mrb[2].mxu0 %v2765_v8  ;;  %v314_v36 = vmul.f32 %v283_v33, %v103_v22  ;;  %v322_v37 = vmul.f32 %v283_v33, %v111_v23  ;;  %v330_v38 = vmul.f32 %v283_v33, %v119_v24 }
  0xed   :  { %2902 = vmatpush3.bf16.xpose.msra.mxu1 %v3666_v27  ;;  %499 = vmatprep.mubr.f32.mxu0 %v3380_v62  ;;  %v338_v45 = vmul.f32 %v283_v33, %v127_v30 }
  0xee   :  { %v3696_v46 = vpack.c.bf16 %v331_v34, %v330_v38  ;;  %v2771_v47 = vpop.f32.mrb[4].mxu1  ;;  %v3698_v48 = vpack.c.bf16 %v315_v31, %v314_v36  ;;  %v3700_v49 = vpack.c.bf16 %v323_v32, %v322_v37  ;;  %v149_v31 = vld [vmem:[%s4936_s5 + $0x80] sm:$0xff]  ;;  %v150_v32 = vld [vmem:[%s4936_s5 + $0x88] sm:$0xff]  ;;  %v135_v38 = vld [vmem:[%s4936_s5 + $0x10] sm:$0xff] }
  0xef   :  { %v317_v52 = vmul.f32 %v2771_v47, %v106_v39  ;;  %v325_v53 = vmul.f32 %v2771_v47, %v114_v40  ;;  %v293_v54 = vpop.f32.mrb[5].mxu1  ;;  %v333_v55 = vmul.f32 %v2771_v47, %v122_v41  ;;  %v3711_v57 = vpack.c.bf16 %v339_v35, %v338_v45  ;;  %v152_v35 = vld [vmem:[%s4936_s5 + $0x98] sm:$0xff]  ;;  %v153_v40 = vld [vmem:[%s4936_s5 + $0xa0] sm:$0xff]  ;;  %v154_v41 = vld [vmem:[%s4936_s5 + $0xa8] sm:$0xff] }
  0xf0   :  { %500 = vmatmul.mubr.f32.gmra.mrb[4].mxu0 %v283_v33  ;;  %2904 = vmatprep.subr.bf16.mxu1 %v3696_v46  ;;  %v316_v58 = vmul.f32 %v293_v54, %v105_v42  ;;  %v324_v59 = vmul.f32 %v293_v54, %v113_v43  ;;  %v332_v60 = vmul.f32 %v293_v54, %v121_v44  ;;  %v133_v33 = vld [vmem:[%s4936_s5] sm:$0xff]  ;;  %v136_v39 = vld [vmem:[%s4936_s5 + $0x18] sm:$0xff]  ;;  %v138_v45 = vld [vmem:[%s4936_s5 + $0x28] sm:$0xff] }
  0xf1   :  { %505 = vmatprep.mubr.f32.mxu0 %v3380_v62  ;;  %v340_v4 = vmul.f32 %v293_v54, %v129_v50  ;;  %v341_v5 = vmul.f32 %v2771_v47, %v130_v51  ;;  %v2963_v34 = vpack.c.bf16 %v150_v32, %v149_v31  ;;  %v2969_v42 = vpack.c.bf16 %v136_v39, %v135_v38  ;;  %v137_v44 = vld [vmem:[%s4936_s5 + $0x20] sm:$0xff]  ;;  %v156_v50 = vld [vmem:[%s4936_s5 + $0xb8] sm:$0xff]  ;;  %v167_v39 = vld [vmem:[%s4937_s7 + $0x8] sm:$0xff] }
  0xf2   :  { %v3733_v7 = vpack.c.bf16 %v333_v55, %v332_v60  ;;  %v2774_v8 = vpop.f32.mrb[6].mxu1  ;;  %v3735_v9 = vpack.c.bf16 %v317_v52, %v316_v58  ;;  %v3737_v10 = vpack.c.bf16 %v325_v53, %v324_v59  ;;  %v2971_v43 = vpack.c.bf16 %v154_v41, %v153_v40  ;;  %v139_v53 = vld [vmem:[%s4936_s5 + $0x30] sm:$0xff]  ;;  %v157_v55 = vld [vmem:[%s4936_s5 + $0xc0] sm:$0xff] }
  0xf3   :  { %v319_v12 = vmul.f32 %v2774_v8, %v108_v56  ;;  %v327_v13 = vmul.f32 %v2774_v8, %v116_v61  ;;  %v303_v14 = vpop.f32.mrb[7].mxu1  ;;  %v335_v15 = vmul.f32 %v2774_v8, %v124_v1  ;;  %v3742_v16 = vpack.c.bf16 %v341_v5, %v340_v4  ;;  %2964 = vmatprep.subr.bf16.mxu0 %v2963_v34  ;;  %v158_v56 = vld [vmem:[%s4936_s5 + $0xc8] sm:$0xff]  ;;  %v166_v38 = vld [vmem:[%s4937_s7] sm:$0xff] }
  0xf4   :  { %506 = vmatmul.mubr.f32.gmra.mrb[6].mxu0 %v2768_v26  ;;  %v318_v17 = vmul.f32 %v303_v14, %v107_v0  ;;  %v326_v18 = vmul.f32 %v303_v14, %v115_v2  ;;  %v334_v19 = vmul.f32 %v303_v14, %v123_v3  ;;  %v342_v20 = vmul.f32 %v303_v14, %v131_v6  ;;  %v165_v26 = vld [vmem:[%s4935_s6] sm:$0xf] }
  0xf5   :  { %2906 = vmatpush3.bf16.xpose.msra.mxu1 %v3698_v48  ;;  %511 = vmatprep.mubr.f32.mxu0 %v3380_v62  ;;  %v343_v21 = vmul.f32 %v2774_v8, %v132_v11  ;;  %v2973_v51 = vpack.c.bf16 %v138_v45, %v137_v44  ;;  %v2979_v59 = vpack.c.bf16 %v158_v56, %v157_v55  ;;  %v172_v56 = vld [vmem:[%s4937_s7 + $0x30] sm:$0xff] }
  0xf6   :  { %2908 = vmatprep.subr.bf16.mxu1 %v3733_v7  ;;  %v3747_v22 = vpack.c.bf16 %v335_v15, %v334_v19  ;;  %v3749_v23 = vpack.c.bf16 %v319_v12, %v318_v17  ;;  %v3751_v24 = vpack.c.bf16 %v327_v13, %v326_v18  ;;  %v415_v18 = vlaneseq }
  0xf7   :  { %v3753_v30 = vpack.c.bf16 %v343_v21, %v342_v20 }
  0xf8   :  { %512 = vmatmul.mubr.f32.gmra.mrb[8].mxu0 %v293_v54  ;;  %v140_v54 = vld [vmem:[%s4936_s5 + $0x38] sm:$0xff]  ;;  %v416_v19 = vshrl.u32 %v415_v18, 7 }
  0xf9   :  { %517 = vmatprep.mubr.f32.mxu0 %v3380_v62  ;;  %v2977_v58 = vpack.c.bf16 %v140_v54, %v139_v53 }
  0xfa   :  { %v3846_v20 = vsub.s32 0, %v416_v19 }
  0xfc   :  { %518 = vmatmul.mubr.f32.gmra.mrb[10].mxu0 %v2771_v47  ;;  %v155_v47 = vld [vmem:[%s4936_s5 + $0xb0] sm:$0xff] }
  0xfd   :  { %2910 = vmatpush3.bf16.xpose.msra.mxu1 %v3735_v9  ;;  %523 = vmatprep.mubr.f32.mxu0 %v3380_v62  ;;  %v2975_v52 = vpack.c.bf16 %v156_v50, %v155_v47 }
  0xfe   :  { %2912 = vmatprep.subr.bf16.mxu1 %v3747_v22 }
 0x100   :  { %524 = vmatmul.mubr.f32.gmra.mrb[12].mxu0 %v303_v14 }
 0x101   :  { %529 = vmatprep.mubr.f32.mxu0 %v3380_v62 }
 0x104   :  { %530 = vmatmul.mubr.f32.gmra.mrb[14].mxu0 %v2774_v8 }
 0x105   :  { %2914 = vmatpush3.bf16.xpose.msra.mxu1 %v3749_v23 }
 0x106   :  { %2916 = vmatprep.subr.bf16.mxu1 %v3668_v28 }
 0x10d   :  { %2918 = vmatpush3.bf16.xpose.msra.mxu1 %v3670_v29 }
 0x10e   :  { %2920 = vmatprep.subr.bf16.mxu1 %v3711_v57 }
 0x115   :  { %2922 = vmatpush3.bf16.xpose.msra.mxu1 %v3700_v49 }
 0x116   :  { %2924 = vmatprep.subr.bf16.mxu1 %v3742_v16 }
 0x11d   :  { %2926 = vmatpush3.bf16.xpose.msra.mxu1 %v3737_v10 }
 0x11e   :  { %2928 = vmatprep.subr.bf16.mxu1 %v3753_v30 }
 0x125   :  { %2930 = vmatpush3.bf16.xpose.msra.mxu1 %v3751_v24 }
 0x126   :  { %2775 = vmatprep.subr.msk.mxu1 %vm818_vm1, %v165_v26 }
 0x12c   :  { %2430 = vmatmul.mubr.f32.vlgmr.msra.gmra.mrb[8].mxu1 %v3615_v63  ;;  %v134_v63 = vld [vmem:[%s4936_s5 + $0x8] sm:$0xff] }
 0x12d   :  { %2776 = vmatpush3.msk.msra.mxu1 %vm818_vm1, %v165_v26  ;;  %v2965_v36 = vpack.c.bf16 %v134_v63, %v133_v33  ;;  %v170_v33 = vld [vmem:[%s4937_s7 + $0x20] sm:$0xff] }
 0x12e   :  { %2996 = vmatprep.subr.bf16.mxu1 %v3664_v25  ;;  %v151_v25 = vld [vmem:[%s4936_s5 + $0x90] sm:$0xff] }
 0x12f   :  { %v2967_v37 = vpack.c.bf16 %v152_v35, %v151_v25  ;;  %2966 = vmatpush3.bf16.msra.mxu0 %v2965_v36  ;;  %v171_v36 = vld [vmem:[%s4937_s7 + $0x28] sm:$0xff] }
 0x131   :  { %2968 = vmatprep.subr.bf16.mxu0 %v2967_v37 }
 0x133   :  { %2970 = vmatpush3.bf16.msra.mxu0 %v2969_v42 }
 0x134   :  { %2972 = vmatprep.subr.bf16.mxu0 %v2971_v43 }
 0x137   :  { %2974 = vmatpush3.bf16.msra.mxu0 %v2973_v51 }
 0x138   :  { %2976 = vmatprep.subr.bf16.mxu0 %v2975_v52 }
 0x13b   :  { %2978 = vmatpush3.bf16.msra.mxu0 %v2977_v58  ;;  %v173_v58 = vld [vmem:[%s4937_s7 + $0x38] sm:$0xff] }
 0x13c   :  { %2980 = vmatprep.subr.bf16.mxu0 %v2979_v59 }
 0x1bb   :  { %v489_v60 = vpop.f32.mrb[0].mxu0 }
 0x1bc   :  { %v491_v61 = vpop.f32.mrb[1].mxu0 }
 0x1bf   :  { %v495_v0 = vpop.f32.mrb[2].mxu0 }
 0x1c0   :  { %v497_v1 = vpop.f32.mrb[3].mxu0 }
 0x1c3   :  { %v501_v2 = vpop.f32.mrb[4].mxu0 }
 0x1c4   :  { %v503_v3 = vpop.f32.mrb[5].mxu0 }
 0x1c7   :  { %v507_v4 = vpop.f32.mrb[6].mxu0 }
 0x1c8   :  { %v509_v5 = vpop.f32.mrb[7].mxu0 }
 0x1cb   :  { %v3830_v6 = vpop.f32.mrb[8].mxu0 }
 0x1cc   :  { %v3832_v8 = vpop.f32.mrb[9].mxu0 }
 0x1cf   :  { %v3834_v11 = vpop.f32.mrb[10].mxu0 }
 0x1d0   :  { %v3836_v12 = vpop.f32.mrb[11].mxu0 }
 0x1d3   :  { %v3838_v13 = vpop.f32.mrb[12].mxu0 }
 0x1d4   :  { %v3840_v14 = vpop.f32.mrb[13].mxu0 }
 0x1d7   :  { %v3842_v15 = vpop.f32.mrb[14].mxu0 }
 0x1d8   :  { %v3844_v17 = vpop.f32.mrb[15].mxu0 }
 0x1ff   :  { %v410_v21 = vpop.f32.mrb[8].mxu1 }
 0x200   :  { %v3849_v26 = vrot.slane %v410_v21, %v3846_v20  ;;  %v412_v31 = vpop.f32.mrb[9].mxu1 }
 0x201   :  { %v3852_v32 = vrot.slane %v412_v31, %v3846_v20 }
 0x202   :  { %v502_v34 = vadd.f32 %v501_v2, %v3849_v26  ;;  %v490_v63 = vadd.f32 %v489_v60, %v3849_v26  ;;  %v508_v25 = vadd.f32 %v507_v4, %v3849_v26  ;;  %v496_v35 = vadd.f32 %v495_v0, %v3849_v26  ;;  %v169_v2 = vld [vmem:[%s4937_s7 + $0x18] sm:$0xff] }
 0x203   :  { %v504_v37 = vadd.f32 %v503_v3, %v3852_v32  ;;  %v492_v40 = vadd.f32 %v491_v61, %v3852_v32  ;;  %v510_v41 = vadd.f32 %v509_v5, %v3852_v32  ;;  %v498_v42 = vadd.f32 %v497_v1, %v3852_v32  ;;  %v168_v1 = vld [vmem:[%s4937_s7 + $0x10] sm:$0xff] }
 0x204   :  { %vm540_vm2 = vcmp.gt.f32.partialorder %v502_v34, 0.0  ;;  %v556_v43 = vmul.f32 0.2, %v502_v34  ;;  %vm536_vm3 = vcmp.gt.f32.partialorder %v490_v63, 0.0  ;;  %v552_v44 = vmul.f32 0.2, %v490_v63 }
 0x205   :  { %vm541_vm4 = vcmp.gt.f32.partialorder %v504_v37, 0.0  ;;  %v557_v45 = vmul.f32 0.2, %v504_v37  ;;  %vm537_vm5 = vcmp.gt.f32.partialorder %v492_v40, 0.0  ;;  %v553_v47 = vmul.f32 0.2, %v492_v40 }
 0x206   :  { %v572_v50 = vsel %vm540_vm2, %v502_v34, %v556_v43  ;;  %v568_v51 = vsel %vm536_vm3, %v490_v63, %v552_v44  ;;  %vm542_vm6 = vcmp.gt.f32.partialorder %v508_v25, 0.0  ;;  %vm543_vm7 = vcmp.gt.f32.partialorder %v510_v41, 0.0  ;;  %v174_v44 = vld [vmem:[%s4937_s7 + $0x40] sm:$0xff] }
 0x207   :  { %v573_v52 = vsel %vm541_vm4, %v504_v37, %v557_v45  ;;  %v3874_v53 = vadd.f32 %v572_v50, %v170_v33  ;;  %v569_v54 = vsel %vm537_vm5, %v492_v40, %v553_v47  ;;  %v3876_v55 = vadd.f32 %v568_v51, %v166_v38  ;;  %v175_v45 = vld [vmem:[%s4937_s7 + $0x48] sm:$0xff] }
 0x208   :  { %v3884_v59 = vadd.f32 %v573_v52, %v171_v36  ;;  %v3886_v60 = vadd.f32 %v569_v54, %v167_v39  ;;  %v558_v61 = vmul.f32 0.2, %v508_v25  ;;  %v559_v0 = vmul.f32 0.2, %v510_v41  ;;  %v180_v54 = vld [vmem:[%s4937_s7 + $0x70] sm:$0xff] }
 0x209   :  { %vm538_vm8 = vcmp.gt.f32.partialorder %v496_v35, 0.0  ;;  %vm539_vm9 = vcmp.gt.f32.partialorder %v498_v42, 0.0  ;;  %v554_v3 = vmul.f32 0.2, %v496_v35  ;;  %v555_v4 = vmul.f32 0.2, %v498_v42 }
 0x20a   :  { %v606_v5 = vmax.f32 %v3874_v53, %v3884_v59  ;;  %v600_v18 = vmax.f32 %v3876_v55, %v3886_v60  ;;  %v574_v19 = vsel %vm542_vm6, %v508_v25, %v558_v61  ;;  %v575_v21 = vsel %vm543_vm7, %v510_v41, %v559_v0 }
 0x20b   :  { %v3900_v31 = vadd.f32 %v574_v19, %v172_v56  ;;  %v3902_v33 = vadd.f32 %v575_v21, %v173_v58  ;;  %v570_v34 = vsel %vm538_vm8, %v496_v35, %v554_v3  ;;  %v571_v63 = vsel %vm539_vm9, %v498_v42, %v555_v4  ;;  %v176_v42 = vld [vmem:[%s4937_s7 + $0x50] sm:$0xff] }
 0x20c   :  { %607 = vmax.xlane.f32.xlu1 %v606_v5  ;;  %601 = vmax.xlane.f32.xlu0 %v600_v18  ;;  %v3904_v36 = vadd.f32 %v570_v34, %v168_v1  ;;  %v3906_v37 = vadd.f32 %v571_v63, %v169_v2  ;;  %v520_v38 = vadd.f32 %v3834_v11, %v3849_v26  ;;  %vm793_vm3 = vcmask 31744  }
 0x20d   :  { %v609_v25 = vmax.f32 %v3900_v31, %v3902_v33  ;;  %v522_v39 = vadd.f32 %v3836_v12, %v3852_v32  ;;  %v514_v40 = vadd.f32 %v3830_v6, %v3849_v26  ;;  %v516_v35 = vadd.f32 %v3832_v8, %v3852_v32  ;;  %v177_v12 = vld [vmem:[%s4937_s7 + $0x58] sm:$0xff] }
 0x20e   :  { %v603_v41 = vmax.f32 %v3904_v36, %v3906_v37  ;;  %vm546_vm10 = vcmp.gt.f32.partialorder %v520_v38, 0.0  ;;  %v562_v11 = vmul.f32 0.2, %v520_v38  ;;  %v532_v43 = vadd.f32 %v3842_v15, %v3849_v26 }
 0x20f   :  { %vm547_vm11 = vcmp.gt.f32.partialorder %v522_v39, 0.0  ;;  %v563_v6 = vmul.f32 0.2, %v522_v39  ;;  %vm544_vm12 = vcmp.gt.f32.partialorder %v514_v40, 0.0  ;;  %vm545_vm13 = vcmp.gt.f32.partialorder %v516_v35, 0.0 }
 0x210   :  { %610 = vmax.xlane.f32.xlu1 %v609_v25  ;;  %604 = vmax.xlane.f32.xlu0 %v603_v41  ;;  %v578_v8 = vsel %vm546_vm10, %v520_v38, %v562_v11  ;;  %v560_v15 = vmul.f32 0.2, %v514_v40  ;;  %v561_v47 = vmul.f32 0.2, %v516_v35  ;;  %v534_v50 = vadd.f32 %v3844_v17, %v3852_v32  ;;  %v181_v17 = vld [vmem:[%s4937_s7 + $0x78] sm:$0xff]  ;;  %v178_v25 = vld [vmem:[%s4937_s7 + $0x60] sm:$0xff] }
 0x211   :  { %v579_v51 = vsel %vm547_vm11, %v522_v39, %v563_v6  ;;  %v3936_v52 = vadd.f32 %v578_v8, %v176_v42  ;;  %vm550_vm14 = vcmp.gt.f32.partialorder %v532_v43, 0.0  ;;  %v566_v56 = vmul.f32 0.2, %v532_v43  ;;  %v141_v11 = vld [vmem:[%s4936_s5 + $0x40] sm:$0xff]  ;;  %v160_v8 = vld [vmem:[%s4936_s5 + $0xd8] sm:$0xff] }
 0x212   :  { %v3941_v58 = vadd.f32 %v579_v51, %v177_v12  ;;  %v576_v61 = vsel %vm544_vm12, %v514_v40, %v560_v15  ;;  %v577_v0 = vsel %vm545_vm13, %v516_v35, %v561_v47  ;;  %vm551_vm15 = vcmp.gt.f32.partialorder %v534_v50, 0.0  ;;  %v159_v12 = vld [vmem:[%s4936_s5 + $0xd0] sm:$0xff]  ;;  %v144_v15 = vld [vmem:[%s4936_s5 + $0x58] sm:$0xff]  ;;  %v161_v47 = vld [vmem:[%s4936_s5 + $0xe0] sm:$0xff] }
 0x213   :  { %v3945_v1 = vadd.f32 %v576_v61, %v174_v44  ;;  %v3947_v2 = vadd.f32 %v577_v0, %v175_v45  ;;  %v567_v3 = vmul.f32 0.2, %v534_v50  ;;  %v582_v4 = vsel %vm550_vm14, %v532_v43, %v566_v56  ;;  %v142_v43 = vld [vmem:[%s4936_s5 + $0x48] sm:$0xff]  ;;  %v143_v45 = vld [vmem:[%s4936_s5 + $0x50] sm:$0xff]  ;;  %v145_v56 = vld [vmem:[%s4936_s5 + $0x60] sm:$0xff] }
 0x214   :  { %v615_v5 = vmax.f32 %v3936_v52, %v3941_v58  ;;  %v3954_v18 = vadd.f32 %v582_v4, %v180_v54  ;;  %v526_v19 = vadd.f32 %v3838_v13, %v3849_v26  ;;  %v528_v21 = vadd.f32 %v3840_v14, %v3852_v32  ;;  %v179_v13 = vld [vmem:[%s4937_s7 + $0x68] sm:$0xff]  ;;  %v163_v0 = vld [vmem:[%s4936_s5 + $0xf0] sm:$0xff] }
 0x215   :  { %v612_v34 = vmax.f32 %v3945_v1, %v3947_v2  ;;  %v583_v63 = vsel %vm551_vm15, %v534_v50, %v567_v3  ;;  %v2981_v6 = vpack.c.bf16 %v142_v43, %v141_v11  ;;  %v2983_v44 = vpack.c.bf16 %v160_v8, %v159_v12  ;;  %v162_v51 = vld [vmem:[%s4936_s5 + $0xe8] sm:$0xff]  ;;  %v164_v3 = vld [vmem:[%s4936_s5 + $0xf8] sm:$0xff] }
 0x216   :  { %616 = vmax.xlane.f32.xlu1 %v615_v5  ;;  %v3962_v38 = vadd.f32 %v583_v63, %v181_v17  ;;  %vm548_vm0 = vcmp.gt.f32.partialorder %v526_v19, 0.0  ;;  %vm549_vm2 = vcmp.gt.f32.partialorder %v528_v21, 0.0  ;;  %v564_v39 = vmul.f32 0.2, %v526_v19  ;;  %v146_v61 = vld [vmem:[%s4936_s5 + $0x68] sm:$0xff]  ;;  %v147_v5 = vld [vmem:[%s4936_s5 + $0x70] sm:$0xff] }
 0x217   :  { %613 = vmax.xlane.f32.xlu0 %v612_v34  ;;  %v565_v14 = vmul.f32 0.2, %v528_v21  ;;  %2982 = vmatpush3.bf16.msra.mxu0 %v2981_v6  ;;  %v2985_v50 = vpack.c.bf16 %v144_v15, %v143_v45  ;;  %v2987_v54 = vpack.c.bf16 %v162_v51, %v161_v47  ;;  %v2989_v17 = vpack.c.bf16 %v146_v61, %v145_v56 }
 0x218   :  { %v621_v26 = vmax.f32 %v3954_v18, %v3962_v38  ;;  %v580_v32 = vsel %vm548_vm0, %v526_v19, %v564_v39  ;;  %2984 = vmatprep.subr.bf16.mxu0 %v2983_v44  ;;  %v2991_v4 = vpack.c.bf16 %v164_v3, %v163_v0  ;;  %v148_v19 = vld [vmem:[%s4936_s5 + $0x78] sm:$0xff] }
 0x219   :  { %v581_v40 = vsel %vm549_vm2, %v528_v21, %v565_v14  ;;  %v3972_v35 = vadd.f32 %v580_v32, %v178_v25  ;;  %v2993_v21 = vpack.c.bf16 %v148_v19, %v147_v5 }
 0x21a   :  { %622 = vmax.xlane.f32.xlu1 %v621_v26  ;;  %v3974_v41 = vadd.f32 %v581_v40, %v179_v13 }
 0x21b   :  { %2986 = vmatpush3.bf16.msra.mxu0 %v2985_v50 }
 0x21c   :  { %v618_v42 = vmax.f32 %v3972_v35, %v3974_v41  ;;  %2988 = vmatprep.subr.bf16.mxu0 %v2987_v54 }
 0x21e   :  { %619 = vmax.xlane.f32.xlu0 %v618_v42 }
 0x21f   :  { %2990 = vmatpush3.bf16.msra.mxu0 %v2989_v17 }
 0x220   :  { %2992 = vmatprep.subr.bf16.mxu0 %v2991_v4 }
 0x223   :  { %2994 = vmatpush3.bf16.msra.mxu0 %v2993_v21 }
 0x299   :  { %v602_v34 = vpop.xlane.xlu0 %601  ;;  %v608_v63 = vpop.xlane.xlu1 %607 }
 0x29a   :  { %v624_v25 = vsub.f32 %v3876_v55, %v602_v34  ;;  %v625_v39 = vsub.f32 %v3886_v60, %v602_v34  ;;  %v629_v40 = vsub.f32 %v3884_v59, %v608_v63  ;;  %v628_v6 = vsub.f32 %v3874_v53, %v608_v63 }
 0x29c   :  { %v640_v13 = vmul.f32 1.442695, %v624_v25  ;;  %v642_v14 = vmul.f32 1.442695, %v625_v39  ;;  %v650_v8 = vmul.f32 1.442695, %v629_v40 }
 0x29d   :  { %v605_v26 = vpop.xlane.xlu0 %604  ;;  %v611_v11 = vpop.xlane.xlu1 %610  ;;  %v648_v44 = vmul.f32 1.442695, %v628_v6 }
 0x29e   :  { %v626_v32 = vsub.f32 %v3904_v36, %v605_v26  ;;  %v627_v42 = vsub.f32 %v3906_v37, %v605_v26  ;;  %3220 = vpow2.f32 %v640_v13  ;;  %v631_v55 = vsub.f32 %v3902_v33, %v611_v11 }
 0x29f   :  { %3222 = vpow2.f32 %v642_v14  ;;  %v630_v36 = vsub.f32 %v3900_v31, %v611_v11 }
 0x2a0   :  { %v644_v43 = vmul.f32 1.442695, %v626_v32  ;;  %v646_v12 = vmul.f32 1.442695, %v627_v42  ;;  %v654_v59 = vmul.f32 1.442695, %v631_v55 }
 0x2a1   :  { %v652_v47 = vmul.f32 1.442695, %v630_v36 }
 0x2a2   :  { %3224 = vpow2.f32 %v644_v43 }
 0x2a3   :  { %3226 = vpow2.f32 %v646_v12  ;;  %v617_v45 = vpop.xlane.xlu1 %616 }
 0x2a4   :  { %v614_v60 = vpop.xlane.xlu0 %613  ;;  %3228 = vpow2.f32 %v650_v8  ;;  %v635_v33 = vsub.f32 %v3941_v58, %v617_v45 }
 0x2a5   :  { %v633_v37 = vsub.f32 %v3947_v2, %v614_v60  ;;  %3230 = vpow2.f32 %v648_v44  ;;  %v632_v53 = vsub.f32 %v3945_v1, %v614_v60  ;;  %v634_v2 = vsub.f32 %v3936_v52, %v617_v45 }
 0x2a6   :  { %3232 = vpow2.f32 %v654_v59  ;;  %v662_v1 = vmul.f32 1.442695, %v635_v33 }
 0x2a7   :  { %v658_v51 = vmul.f32 1.442695, %v633_v37  ;;  %3234 = vpow2.f32 %v652_v47  ;;  %v656_v56 = vmul.f32 1.442695, %v632_v53  ;;  %v623_v17 = vpop.xlane.xlu1 %622  ;;  %v660_v3 = vmul.f32 1.442695, %v634_v2 }
 0x2a8   :  { %v4029_v15 = vpop.eup %3220  ;;  %v639_v52 = vsub.f32 %v3962_v38, %v623_v17  ;;  %v638_v21 = vsub.f32 %v3954_v18, %v623_v17 }
 0x2a9   :  { %v4032_v50 = vpop.eup %3222  ;;  %3236 = vpow2.f32 %v658_v51 }
 0x2aa   :  { %736 = vmatprep.mubr.f32.mxu0 %v4032_v50  ;;  %3238 = vpow2.f32 %v656_v56  ;;  %v670_v63 = vmul.f32 1.442695, %v639_v52  ;;  %v668_v38 = vmul.f32 1.442695, %v638_v21 }
 0x2ab   :  { %v620_v54 = vpop.xlane.xlu0 %619  ;;  %737 = vmatmul.mubr.f32.vlgmr.msra.gmra.mrb[16].mxu0 %v4029_v15  ;;  %3240 = vpow2.f32 %v662_v1 }
 0x2ac   :  { %v4037_v31 = vpop.eup %3224  ;;  %v637_v0 = vsub.f32 %v3974_v41, %v620_v54  ;;  %v636_v4 = vsub.f32 %v3972_v35, %v620_v54  ;;  %3242 = vpow2.f32 %v660_v3 }
 0x2ad   :  { %v4040_v61 = vpop.eup %3226 }
 0x2ae   :  { %741 = vmatprep.mubr.f32.mxu0 %v4040_v61  ;;  %v4044_v58 = vpop.eup %3228  ;;  %v666_v5 = vmul.f32 1.442695, %v637_v0  ;;  %v664_v34 = vmul.f32 1.442695, %v636_v4 }
 0x2af   :  { %742 = vmatmul.mubr.f32.gmra.mrb[18].mxu0 %v4037_v31  ;;  %v4050_v19 = vpop.eup %3230 }
 0x2b0   :  { %746 = vmatprep.mubr.f32.mxu0 %v4044_v58  ;;  %v4052_v41 = vpop.eup %3232  ;;  %3244 = vpow2.f32 %v666_v5 }
 0x2b1   :  { %v4057_v35 = vpop.eup %3234  ;;  %3246 = vpow2.f32 %v664_v34 }
 0x2b2   :  { %3248 = vpow2.f32 %v670_v63 }
 0x2b3   :  { %747 = vmatmul.mubr.f32.gmra.mrb[20].mxu0 %v4050_v19  ;;  %v4059_v25 = vpop.eup %3236  ;;  %3250 = vpow2.f32 %v668_v38 }
 0x2b4   :  { %751 = vmatprep.mubr.f32.mxu0 %v4052_v41  ;;  %v4063_v39 = vpop.eup %3238 }
 0x2b5   :  { %v4065_v13 = vpop.eup %3240 }
 0x2b6   :  { %v4069_v18 = vpop.eup %3242 }
 0x2b7   :  { %752 = vmatmul.mubr.f32.gmra.mrb[22].mxu0 %v4057_v35 }
 0x2b8   :  { %756 = vmatprep.mubr.f32.mxu0 %v4059_v25 }
 0x2ba   :  { %v4071_v14 = vpop.eup %3244 }
 0x2bb   :  { %757 = vmatmul.mubr.f32.gmra.mrb[24].mxu0 %v4063_v39  ;;  %v4075_v26 = vpop.eup %3246 }
 0x2bc   :  { %761 = vmatprep.mubr.f32.mxu0 %v4065_v13  ;;  %v4077_v32 = vpop.eup %3248 }
 0x2bd   :  { %v4081_v40 = vpop.eup %3250 }
 0x2bf   :  { %762 = vmatmul.mubr.f32.gmra.mrb[26].mxu0 %v4069_v18 }
 0x2c0   :  { %766 = vmatprep.mubr.f32.mxu0 %v4071_v14 }
 0x2c3   :  { %767 = vmatmul.mubr.f32.gmra.mrb[28].mxu0 %v4075_v26 }
 0x2c4   :  { %771 = vmatprep.mubr.f32.mxu0 %v4077_v32 }
 0x2c7   :  { %772 = vmatmul.mubr.f32.gmra.mrb[30].mxu0 %v4081_v40 }
 0x37e   :  { %v2463_v42 = vpop.f32.mrb[16].mxu0 }
 0x37f   :  { %v2464_v11 = vpop.f32.mrb[17].mxu0 }
 0x380   :  { %v2465_v43 = vadd.f32 %v2464_v11, %v2463_v42 }
 0x382   :  { %v777_v12 = vmax.f32 %v2465_v43, 1e-30  ;;  %v2466_v6 = vpop.f32.mrb[18].mxu0 }
 0x383   :  { %v2467_v8 = vpop.f32.mrb[19].mxu0 }
 0x384   :  { %3252 = vrcp.f32 %v777_v12  ;;  %v2468_v55 = vadd.f32 %v2467_v8, %v2466_v6 }
 0x386   :  { %v778_v60 = vmax.f32 %v2468_v55, 1e-30  ;;  %v2469_v44 = vpop.f32.mrb[20].mxu0 }
 0x387   :  { %v2470_v36 = vpop.f32.mrb[21].mxu0 }
 0x388   :  { %3254 = vrcp.f32 %v778_v60  ;;  %v2471_v59 = vadd.f32 %v2470_v36, %v2469_v44 }
 0x38a   :  { %v779_v37 = vmax.f32 %v2471_v59, 1e-30  ;;  %v2472_v45 = vpop.f32.mrb[22].mxu0 }
 0x38b   :  { %v2473_v47 = vpop.f32.mrb[23].mxu0 }
 0x38c   :  { %3256 = vrcp.f32 %v779_v37  ;;  %v2474_v53 = vadd.f32 %v2473_v47, %v2472_v45 }
 0x38e   :  { %v3253_v33 = vpop.eup %3252  ;;  %v780_v51 = vmax.f32 %v2474_v53, 1e-30  ;;  %v2475_v54 = vpop.f32.mrb[24].mxu0 }
 0x38f   :  { %v2476_v2 = vpop.f32.mrb[25].mxu0  ;;  %2777 = vmatprep.mubr.msk.f32.mxu1 %vm793_vm3, %v3253_v33 }
 0x390   :  { %3258 = vrcp.f32 %v780_v51  ;;  %v2477_v56 = vadd.f32 %v2476_v2, %v2475_v54 }
 0x392   :  { %v3255_v1 = vpop.eup %3254  ;;  %v781_v0 = vmax.f32 %v2477_v56, 1e-30  ;;  %v2478_v17 = vpop.f32.mrb[26].mxu0 }
 0x393   :  { %v2479_v3 = vpop.f32.mrb[27].mxu0  ;;  %2778 = vmatmul.mubr.msk.f32.vlgmr.msra.gmra.mrb[10].mxu1 %vm793_vm3, %v3255_v1 }
 0x394   :  { %3260 = vrcp.f32 %v781_v0  ;;  %v2480_v4 = vadd.f32 %v2479_v3, %v2478_v17  ;;  %2998 = vmatpush3.bf16.msra.mxu1 %v3666_v27 }
 0x395   :  { %3000 = vmatprep.subr.bf16.mxu1 %v3696_v46 }
 0x396   :  { %v3257_v52 = vpop.eup %3256  ;;  %v782_v5 = vmax.f32 %v2480_v4, 1e-30  ;;  %v2481_v21 = vpop.f32.mrb[28].mxu0 }
 0x397   :  { %v2482_v34 = vpop.f32.mrb[29].mxu0  ;;  %2780 = vmatprep.mubr.msk.f32.mxu1 %vm793_vm3, %v3257_v52 }
 0x398   :  { %3262 = vrcp.f32 %v782_v5  ;;  %v2483_v63 = vadd.f32 %v2482_v34, %v2481_v21  ;;  %3002 = vmatpush3.bf16.msra.mxu1 %v3698_v48 }
 0x399   :  { %3004 = vmatprep.subr.bf16.mxu1 %v3733_v7 }
 0x39a   :  { %v3259_v38 = vpop.eup %3258  ;;  %v783_v42 = vmax.f32 %v2483_v63, 1e-30  ;;  %v2484_v11 = vpop.f32.mrb[30].mxu0 }
 0x39b   :  { %v2485_v43 = vpop.f32.mrb[31].mxu0  ;;  %2781 = vmatmul.mubr.msk.f32.gmra.mrb[12].mxu1 %vm793_vm3, %v3259_v38 }
 0x39c   :  { %3264 = vrcp.f32 %v783_v42  ;;  %v2486_v27 = vadd.f32 %v2485_v43, %v2484_v11  ;;  %3006 = vmatpush3.bf16.msra.mxu1 %v3735_v9 }
 0x39d   :  { %3008 = vmatprep.subr.bf16.mxu1 %v3747_v22  ;;  %v1092_v22 = vld [vmem:[%s4938_s8 + $0x20] sm:$0xff] }
 0x39e   :  { %v3261_v46 = vpop.eup %3260  ;;  %v784_v12 = vmax.f32 %v2486_v27, 1e-30 }
 0x39f   :  { %2783 = vmatprep.mubr.msk.f32.mxu1 %vm793_vm3, %v3261_v46 }
 0x3a0   :  { %3266 = vrcp.f32 %v784_v12  ;;  %3010 = vmatpush3.bf16.msra.mxu1 %v3749_v23  ;;  %v1093_v23 = vld [vmem:[%s4938_s8 + $0x28] sm:$0xff] }
 0x3a1   :  { %3012 = vmatprep.subr.bf16.mxu1 %v3668_v28  ;;  %v1088_v28 = vld [vmem:[%s4938_s8] sm:$0xff] }
 0x3a2   :  { %v3263_v48 = vpop.eup %3262 }
 0x3a3   :  { %2784 = vmatmul.mubr.msk.f32.gmra.mrb[14].mxu1 %vm793_vm3, %v3263_v48 }
 0x3a4   :  { %3014 = vmatpush3.bf16.msra.mxu1 %v3670_v29  ;;  %v1089_v29 = vld [vmem:[%s4938_s8 + $0x8] sm:$0xff] }
 0x3a5   :  { %3016 = vmatprep.subr.bf16.mxu1 %v3711_v57  ;;  %v3027_v57 = vpack.c.bf16 %v1089_v29, %v1088_v28 }
 0x3a6   :  { %v3265_v7 = vpop.eup %3264 }
 0x3a7   :  { %2786 = vmatprep.mubr.msk.f32.mxu1 %vm793_vm3, %v3265_v7  ;;  %3028 = vmatprep.subr.bf16.mxu0 %v3027_v57 }
 0x3a8   :  { %3018 = vmatpush3.bf16.msra.mxu1 %v3700_v49  ;;  %v1090_v49 = vld [vmem:[%s4938_s8 + $0x10] sm:$0xff]  ;;  %3030 = vmatpush3.bf16.msra.mxu0 %v3027_v57 }
 0x3a9   :  { %3020 = vmatprep.subr.bf16.mxu1 %v3742_v16 }
 0x3aa   :  { %v3267_v9 = vpop.eup %3266 }
 0x3ab   :  { %2787 = vmatmul.mubr.msk.f32.gmra.mrb[16].mxu1 %vm793_vm3, %v3267_v9 }
 0x3ac   :  { %3022 = vmatpush3.bf16.msra.mxu1 %v3737_v10  ;;  %991 = vmatprep.mubr.f32.mxu1 %v4032_v50  ;;  %v1091_v10 = vld [vmem:[%s4938_s8 + $0x18] sm:$0xff] }
 0x3ad   :  { %3024 = vmatprep.subr.bf16.mxu1 %v3753_v30  ;;  %v3031_v16 = vpack.c.bf16 %v1091_v10, %v1090_v49  ;;  %v1094_v30 = vld [vmem:[%s4938_s8 + $0x30] sm:$0xff] }
 0x3af   :  { %3032 = vmatprep.subr.bf16.mxu0 %v3031_v16 }
 0x3b0   :  { %3026 = vmatpush3.bf16.msra.mxu1 %v3751_v24  ;;  %3034 = vmatpush3.bf16.msra.mxu0 %v3031_v16  ;;  %v3035_v24 = vpack.c.bf16 %v1093_v23, %v1092_v22  ;;  %v1104_v16 = vld [vmem:[%s4939_s9] sm:$0xff] }
 0x3b2   :  { %3036 = vmatprep.subr.bf16.mxu0 %v3035_v24 }
 0x3b3   :  { %992 = vmatmul.mubr.f32.vlgmr.msra.gmra.mrb[18].mxu1 %v4029_v15  ;;  %v1095_v15 = vld [vmem:[%s4938_s8 + $0x38] sm:$0xff] }
 0x3b4   :  { %996 = vmatprep.mubr.f32.mxu1 %v4040_v61  ;;  %3038 = vmatpush3.bf16.msra.mxu0 %v3035_v24  ;;  %v3039_v50 = vpack.c.bf16 %v1095_v15, %v1094_v30  ;;  %v1097_v61 = vld [vmem:[%s4938_s8 + $0x48] sm:$0xff]  ;;  %v1106_v24 = vld [vmem:[%s4939_s9 + $0x10] sm:$0xff]  ;;  %v1111_v15 = vld [vmem:[%s4939_s9 + $0x38] sm:$0xff] }
 0x3b5   :  { %v1109_v30 = vld [vmem:[%s4939_s9 + $0x28] sm:$0xff] }
 0x3b6   :  { %3040 = vmatprep.subr.bf16.mxu0 %v3039_v50 }
 0x3b7   :  { %997 = vmatmul.mubr.f32.gmra.mrb[20].mxu1 %v4037_v31  ;;  %v1096_v31 = vld [vmem:[%s4938_s8 + $0x40] sm:$0xff] }
 0x3b8   :  { %1001 = vmatprep.mubr.f32.mxu1 %v4044_v58  ;;  %3042 = vmatpush3.bf16.msra.mxu0 %v3039_v50  ;;  %v3043_v58 = vpack.c.bf16 %v1097_v61, %v1096_v31 }
 0x3ba   :  { %3044 = vmatprep.subr.bf16.mxu0 %v3043_v58 }
 0x3bb   :  { %1002 = vmatmul.mubr.f32.gmra.mrb[22].mxu1 %v4050_v19  ;;  %v1098_v19 = vld [vmem:[%s4938_s8 + $0x50] sm:$0xff] }
 0x3bc   :  { %1006 = vmatprep.mubr.f32.mxu1 %v4052_v41  ;;  %3046 = vmatpush3.bf16.msra.mxu0 %v3043_v58  ;;  %v1099_v41 = vld [vmem:[%s4938_s8 + $0x58] sm:$0xff] }
 0x3bf   :  { %1007 = vmatmul.mubr.f32.gmra.mrb[24].mxu1 %v4057_v35  ;;  %v3047_v35 = vpack.c.bf16 %v1099_v41, %v1098_v19 }
 0x3c0   :  { %1011 = vmatprep.mubr.f32.mxu1 %v4059_v25  ;;  %v1100_v25 = vld [vmem:[%s4938_s8 + $0x60] sm:$0xff] }
 0x3c1   :  { %3048 = vmatprep.subr.bf16.mxu0 %v3047_v35 }
 0x3c2   :  { %3050 = vmatpush3.bf16.msra.mxu0 %v3047_v35 }
 0x3c3   :  { %1012 = vmatmul.mubr.f32.gmra.mrb[26].mxu1 %v4063_v39  ;;  %v1101_v39 = vld [vmem:[%s4938_s8 + $0x68] sm:$0xff] }
 0x3c4   :  { %1016 = vmatprep.mubr.f32.mxu1 %v4065_v13  ;;  %v3051_v13 = vpack.c.bf16 %v1101_v39, %v1100_v25  ;;  %v3093_v25 = vpack.c.bf16 %v1106_v24, %v1104_v16  ;;  %v3095_v39 = vpack.c.bf16 %v1111_v15, %v1109_v30  ;;  %v1129_v30 = vld [vmem:[%s4939_s9 + $0xc8] sm:$0xff]  ;;  %v1131_v15 = vld [vmem:[%s4939_s9 + $0xd8] sm:$0xff] }
 0x3c6   :  { %3052 = vmatprep.subr.bf16.mxu0 %v3051_v13 }
 0x3c7   :  { %1017 = vmatmul.mubr.f32.gmra.mrb[28].mxu1 %v4069_v18  ;;  %3054 = vmatpush3.bf16.msra.mxu0 %v3051_v13  ;;  %v1102_v18 = vld [vmem:[%s4938_s8 + $0x70] sm:$0xff]  ;;  %v1108_v13 = vld [vmem:[%s4939_s9 + $0x20] sm:$0xff] }
 0x3c8   :  { %1021 = vmatprep.mubr.f32.mxu1 %v4071_v14  ;;  %v1103_v14 = vld [vmem:[%s4938_s8 + $0x78] sm:$0xff] }
 0x3cb   :  { %1022 = vmatmul.mubr.f32.gmra.mrb[30].mxu1 %v4075_v26  ;;  %v3055_v26 = vpack.c.bf16 %v1103_v14, %v1102_v18 }
 0x3cc   :  { %1026 = vmatprep.mubr.f32.mxu1 %v4077_v32  ;;  %v1105_v32 = vld [vmem:[%s4939_s9 + $0x8] sm:$0xff] }
 0x3cd   :  { %3056 = vmatprep.subr.bf16.mxu0 %v3055_v26 }
 0x3ce   :  { %3058 = vmatpush3.bf16.msra.mxu0 %v3055_v26  ;;  %v1110_v26 = vld [vmem:[%s4939_s9 + $0x30] sm:$0xff] }
 0x3cf   :  { %1027 = vmatmul.mubr.f32.gmra.mrb[32].mxu1 %v4081_v40  ;;  %v1107_v40 = vld [vmem:[%s4939_s9 + $0x18] sm:$0xff] }
 0x3d0   :  { %v3091_v6 = vpack.c.bf16 %v1107_v40, %v1105_v32  ;;  %v1113_v32 = vld [vmem:[%s4939_s9 + $0x48] sm:$0xff]  ;;  %v1115_v40 = vld [vmem:[%s4939_s9 + $0x58] sm:$0xff] }
 0x3d2   :  { %3092 = vmatprep.subr.bf16.mxu0 %v3091_v6 }
 0x466   :  { %v2779_v8 = vpop.f32.mrb[10].mxu1 }
 0x467   :  { %v888_v55 = vpop.f32.mrb[11].mxu1 }
 0x46e   :  { %v2782_v60 = vpop.f32.mrb[12].mxu1 }
 0x46f   :  { %v898_v44 = vpop.f32.mrb[13].mxu1 }
 0x476   :  { %v2785_v36 = vpop.f32.mrb[14].mxu1 }
 0x477   :  { %v908_v59 = vpop.f32.mrb[15].mxu1 }
 0x47e   :  { %v4177_v37 = vpop.f32.mrb[16].mxu1 }
 0x47f   :  { %v4179_v45 = vpop.f32.mrb[17].mxu1 }
 0x486   :  { %v2528_v47 = vpop.f32.mrb[18].mxu1 }
 0x487   :  { %v2529_v53 = vpop.f32.mrb[19].mxu1 }
 0x488   :  { %v2530_v33 = vadd.f32 %v2529_v53, %v2528_v47  ;;  %v3097_v47 = vpack.c.bf16 %v1110_v26, %v1108_v13  ;;  %v3099_v53 = vpack.c.bf16 %v1115_v40, %v1113_v32  ;;  %v1132_v32 = vld [vmem:[%s4939_s9 + $0xe0] sm:$0xff]  ;;  %v1134_v40 = vld [vmem:[%s4939_s9 + $0xf0] sm:$0xff] }
 0x48a   :  { %v1032_v51 = vmul.f32 %v2530_v33, %v888_v55  ;;  %v2531_v54 = vpop.f32.mrb[20].mxu1 }
 0x48b   :  { %v2532_v2 = vpop.f32.mrb[21].mxu1 }
 0x48c   :  { %v1048_v56 = vmin.f32 %v1032_v51, 0.0  ;;  %v2533_v1 = vadd.f32 %v2532_v2, %v2531_v54  ;;  %vm1040_vm4 = vcmp.gt.f32.partialorder %v1032_v51, 0.0  ;;  %v1112_v54 = vld [vmem:[%s4939_s9 + $0x40] sm:$0xff] }
 0x48e   :  { %v1056_v0 = vmul.f32 1.442695, %v1048_v56  ;;  %v1033_v17 = vmul.f32 %v2779_v8, %v2533_v1  ;;  %v2534_v3 = vpop.f32.mrb[22].mxu1  ;;  %v1117_v56 = vld [vmem:[%s4939_s9 + $0x68] sm:$0xff]  ;;  %v1119_v1 = vld [vmem:[%s4939_s9 + $0x78] sm:$0xff] }
 0x48f   :  { %v2535_v4 = vpop.f32.mrb[23].mxu1 }
 0x490   :  { %3268 = vpow2.f32 %v1056_v0  ;;  %v1049_v52 = vmin.f32 %v1033_v17, 0.0  ;;  %v2536_v5 = vadd.f32 %v2535_v4, %v2534_v3  ;;  %vm1041_vm5 = vcmp.gt.f32.partialorder %v1033_v17, 0.0 }
 0x492   :  { %v1058_v21 = vmul.f32 1.442695, %v1049_v52  ;;  %v4181_v34 = vmul.f32 %v2536_v5, %v898_v44  ;;  %v2537_v63 = vpop.f32.mrb[24].mxu1 }
 0x493   :  { %v2538_v38 = vpop.f32.mrb[25].mxu1 }
 0x494   :  { %3270 = vpow2.f32 %v1058_v21  ;;  %v1050_v42 = vmin.f32 %v4181_v34, 0.0  ;;  %v2539_v11 = vadd.f32 %v2538_v38, %v2537_v63  ;;  %vm1042_vm6 = vcmp.gt.f32.partialorder %v4181_v34, 0.0  ;;  %v1121_v38 = vld [vmem:[%s4939_s9 + $0x88] sm:$0xff] }
 0x495   :  { %v3103_v21 = vpack.c.bf16 %v1119_v1, %v1117_v56  ;;  %v1154_v56 = vld [vmem:[%s4942_s11 + $0x88] sm:$0xff] }
 0x496   :  { %v1060_v43 = vmul.f32 1.442695, %v1050_v42  ;;  %v4184_v27 = vmul.f32 %v2782_v60, %v2539_v11  ;;  %v2540_v46 = vpop.f32.mrb[26].mxu1  ;;  %v1123_v42 = vld [vmem:[%s4939_s9 + $0x98] sm:$0xff]  ;;  %v1162_v1 = vld [vmem:[%s4942_s11 + $0xc8] sm:$0xff] }
 0x497   :  { %v2541_v12 = vpop.f32.mrb[27].mxu1 }
 0x498   :  { %3272 = vpow2.f32 %v1060_v43  ;;  %v1051_v48 = vmin.f32 %v4184_v27, 0.0  ;;  %v2542_v7 = vadd.f32 %v2541_v12, %v2540_v46  ;;  %vm1043_vm7 = vcmp.gt.f32.partialorder %v4184_v27, 0.0 }
 0x49a   :  { %v3269_v9 = vpop.eup %3268  ;;  %v1062_v28 = vmul.f32 1.442695, %v1051_v48  ;;  %v4187_v29 = vmul.f32 %v2542_v7, %v908_v59  ;;  %v2543_v49 = vpop.f32.mrb[28].mxu1  ;;  %v3107_v48 = vpack.c.bf16 %v1123_v42, %v1121_v38  ;;  %v1122_v7 = vld [vmem:[%s4939_s9 + $0x90] sm:$0xff] }
 0x49b   :  { %v2544_v57 = vpop.f32.mrb[29].mxu1  ;;  %v2359_v10 = vadd.f32 -1.0, %v3269_v9 }
 0x49c   :  { %3274 = vpow2.f32 %v1062_v28  ;;  %v1052_v22 = vmin.f32 %v4187_v29, 0.0  ;;  %v2545_v23 = vadd.f32 %v2544_v57, %v2543_v49  ;;  %vm1044_vm8 = vcmp.gt.f32.partialorder %v4187_v29, 0.0  ;;  %v1125_v28 = vld [vmem:[%s4939_s9 + $0xa8] sm:$0xff]  ;;  %v1127_v49 = vld [vmem:[%s4939_s9 + $0xb8] sm:$0xff] }
 0x49d   :  { %v1080_v50 = vsel %vm1040_vm4, %v1032_v51, %v2359_v10 }
 0x49e   :  { %v3271_v31 = vpop.eup %3270  ;;  %v1064_v61 = vmul.f32 1.442695, %v1052_v22  ;;  %v4202_v58 = vmul.f32 %v2785_v36, %v2545_v23  ;;  %v2546_v19 = vpop.f32.mrb[30].mxu1  ;;  %2821 = vmatprep.mubr.f32.mxu0 %v1080_v50  ;;  %v3111_v22 = vpack.c.bf16 %v1127_v49, %v1125_v28  ;;  %v1126_v23 = vld [vmem:[%s4939_s9 + $0xb0] sm:$0xff] }
 0x49f   :  { %v2547_v41 = vpop.f32.mrb[31].mxu1  ;;  %v2360_v35 = vadd.f32 -1.0, %v3271_v31 }
 0x4a0   :  { %3276 = vpow2.f32 %v1064_v61  ;;  %v1053_v18 = vmin.f32 %v4202_v58, 0.0  ;;  %v2548_v14 = vadd.f32 %v2547_v41, %v2546_v19  ;;  %vm1045_vm9 = vcmp.gt.f32.partialorder %v4202_v58, 0.0  ;;  %v1130_v41 = vld [vmem:[%s4939_s9 + $0xd0] sm:$0xff] }
 0x4a1   :  { %v1081_v6 = vsel %vm1041_vm5, %v1033_v17, %v2360_v35  ;;  %v3115_v19 = vpack.c.bf16 %v1131_v15, %v1129_v30  ;;  %v1191_v30 = vld [vmem:[%s4940_s12 + $0xb0] sm:$0xff]  ;;  %v1192_v15 = vld [vmem:[%s4940_s12 + $0xb8] sm:$0xff] }
 0x4a2   :  { %v3273_v8 = vpop.eup %3272  ;;  %v1066_v55 = vmul.f32 1.442695, %v1053_v18  ;;  %v4218_v60 = vmul.f32 %v2548_v14, %v4179_v45  ;;  %v2549_v44 = vpop.f32.mrb[32].mxu1  ;;  %2822 = vmatmul.mubr.f32.vlgmr.msra.gmra.mrb[32].mxu0 %v1081_v6  ;;  %v1114_v45 = vld [vmem:[%s4939_s9 + $0x50] sm:$0xff] }
 0x4a3   :  { %v2550_v36 = vpop.f32.mrb[33].mxu1  ;;  %v2361_v59 = vadd.f32 -1.0, %v3273_v8  ;;  %3094 = vmatpush1.bf16.msra.mxu0 %v3093_v25  ;;  %v3101_v52 = vpack.c.bf16 %v1114_v45, %v1112_v54  ;;  %v1133_v25 = vld [vmem:[%s4939_s9 + $0xe8] sm:$0xff]  ;;  %v3121_v8 = vpack.c.bf16 %v1134_v40, %v1132_v32  ;;  %v1187_v54 = vld [vmem:[%s4940_s12 + $0x90] sm:$0xff]  ;;  %v1188_v45 = vld [vmem:[%s4940_s12 + $0x98] sm:$0xff] }
 0x4a4   :  { %3278 = vpow2.f32 %v1066_v55  ;;  %v1054_v33 = vmin.f32 %v4218_v60, 0.0  ;;  %v2551_v51 = vadd.f32 %v2550_v36, %v2549_v44  ;;  %3096 = vmatprep.subr.bf16.mxu0 %v3095_v39  ;;  %vm1046_vm10 = vcmp.gt.f32.partialorder %v4218_v60, 0.0  ;;  %v1135_v39 = vld [vmem:[%s4939_s9 + $0xf8] sm:$0xff]  ;;  %v1185_v55 = vld [vmem:[%s4940_s12 + $0x80] sm:$0xff] }
 0x4a5   :  { %v1082_v2 = vsel %vm1042_vm6, %v4181_v34, %v2361_v59  ;;  %v1116_v34 = vld [vmem:[%s4939_s9 + $0x60] sm:$0xff]  ;;  %v3119_v26 = vpack.c.bf16 %v1135_v39, %v1133_v25  ;;  %v1138_v59 = vld [vmem:[%s4942_s11 + $0x8] sm:$0xff]  ;;  %v3135_v39 = vpack.c.bf16 %v1192_v15, %v1191_v30 }
 0x4a6   :  { %v3275_v0 = vpop.eup %3274  ;;  %v1068_v17 = vmul.f32 1.442695, %v1054_v33  ;;  %v4236_v3 = vmul.f32 %v4177_v37, %v2551_v51  ;;  %2824 = vmatprep.mubr.f32.mxu0 %v1082_v2  ;;  %v1118_v37 = vld [vmem:[%s4939_s9 + $0x70] sm:$0xff]  ;;  %v4313_v36 = vld [vmem:[%s4941_s10] sm:$0x1]  ;;  %v1170_v33 = vld [vmem:[%s4940_s12 + $0x8] sm:$0xff] }
 0x4a7   :  { %v2362_v4 = vadd.f32 -1.0, %v3275_v0  ;;  %3098 = vmatpush1.bf16.msra.mxu0 %v3097_v47  ;;  %v3105_v12 = vpack.c.bf16 %v1118_v37, %v1116_v34  ;;  %2608 = vmatprep.mubr.f32.mxu1 %v4313_v36  ;;  %v1146_v47 = vld [vmem:[%s4942_s11 + $0x48] sm:$0xff]  ;;  %v1137_v51 = vld [vmem:[%s4942_s11] sm:$0xff] }
 0x4a8   :  { %3280 = vpow2.f32 %v1068_v17  ;;  %v1055_v5 = vmin.f32 %v4236_v3, 0.0  ;;  %3100 = vmatprep.subr.bf16.mxu0 %v3099_v53  ;;  %vm1047_vm11 = vcmp.gt.f32.partialorder %v4236_v3, 0.0  ;;  %v1169_v53 = vld [vmem:[%s4940_s12] sm:$0xff]  ;;  %v1190_v37 = vld [vmem:[%s4940_s12 + $0xa8] sm:$0xff] }
 0x4a9   :  { %v1083_v63 = vsel %vm1043_vm7, %v4184_v27, %v2362_v4  ;;  %v1120_v27 = vld [vmem:[%s4939_s9 + $0x80] sm:$0xff]  ;;  %v3125_v0 = vpack.c.bf16 %v1170_v33, %v1169_v53 }
 0x4aa   :  { %v3277_v11 = vpop.eup %3276  ;;  %v1070_v43 = vmul.f32 1.442695, %v1055_v5  ;;  %2825 = vmatmul.mubr.f32.gmra.mrb[34].mxu0 %v1083_v63  ;;  %v3109_v16 = vpack.c.bf16 %v1122_v7, %v1120_v27  ;;  %v1145_v2 = vld [vmem:[%s4942_s11 + $0x40] sm:$0xff]  ;;  %v3127_v5 = vpack.c.bf16 %v1188_v45, %v1187_v54  ;;  %v1142_v54 = vld [vmem:[%s4942_s11 + $0x28] sm:$0xff] }
 0x4ab   :  { %v2363_v46 = vadd.f32 -1.0, %v3277_v11  ;;  %3102 = vmatpush1.bf16.msra.mxu0 %v3101_v52  ;;  %v1153_v17 = vld [vmem:[%s4942_s11 + $0x80] sm:$0xff]  ;;  %v1150_v45 = vld [vmem:[%s4942_s11 + $0x68] sm:$0xff] }
 0x4ac   :  { %3282 = vpow2.f32 %v1070_v43  ;;  %3104 = vmatprep.subr.bf16.mxu0 %v3103_v21  ;;  %v1161_v4 = vld [vmem:[%s4942_s11 + $0xc0] sm:$0xff]  ;;  %v1172_v21 = vld [vmem:[%s4940_s12 + $0x18] sm:$0xff] }
 0x4ad   :  { %v1084_v9 = vsel %vm1044_vm8, %v4187_v29, %v2363_v46  ;;  %v1124_v29 = vld [vmem:[%s4939_s9 + $0xa0] sm:$0xff] }
 0x4ae   :  { %v3279_v57 = vpop.eup %3278  ;;  %2827 = vmatprep.mubr.f32.mxu0 %v1084_v9  ;;  %v3113_v61 = vpack.c.bf16 %v1126_v23, %v1124_v29  ;;  %v1189_v34 = vld [vmem:[%s4940_s12 + $0xa0] sm:$0xff] }
 0x4af   :  { %v2364_v10 = vadd.f32 -1.0, %v3279_v57  ;;  %3106 = vmatpush1.bf16.msra.mxu0 %v3105_v12  ;;  %v3131_v9 = vpack.c.bf16 %v1190_v37, %v1189_v34  ;;  %v1140_v57 = vld [vmem:[%s4942_s11 + $0x18] sm:$0xff]  ;;  %v1157_v37 = vld [vmem:[%s4942_s11 + $0xa0] sm:$0xff] }
 0x4b0   :  { %3108 = vmatprep.subr.bf16.mxu0 %v3107_v48 }
 0x4b1   :  { %v1085_v24 = vsel %vm1045_vm9, %v4202_v58, %v2364_v10  ;;  %v1128_v58 = vld [vmem:[%s4939_s9 + $0xc0] sm:$0xff]  ;;  %v1148_v10 = vld [vmem:[%s4942_s11 + $0x58] sm:$0xff] }
 0x4b2   :  { %v3281_v50 = vpop.eup %3280  ;;  %2828 = vmatmul.mubr.f32.gmra.mrb[36].mxu0 %v1085_v24  ;;  %v3117_v14 = vpack.c.bf16 %v1130_v41, %v1128_v58  ;;  %v1139_v24 = vld [vmem:[%s4942_s11 + $0x10] sm:$0xff] }
 0x4b3   :  { %v2365_v31 = vadd.f32 -1.0, %v3281_v50  ;;  %3110 = vmatpush1.bf16.msra.mxu0 %v3109_v16  ;;  %v1173_v16 = vld [vmem:[%s4940_s12 + $0x20] sm:$0xff]  ;;  %v1147_v50 = vld [vmem:[%s4942_s11 + $0x50] sm:$0xff] }
 0x4b4   :  { %3112 = vmatprep.subr.bf16.mxu0 %v3111_v22  ;;  %v1174_v22 = vld [vmem:[%s4940_s12 + $0x28] sm:$0xff]  ;;  %v1155_v58 = vld [vmem:[%s4942_s11 + $0x90] sm:$0xff] }
 0x4b5   :  { %v1086_v35 = vsel %vm1046_vm10, %v4218_v60, %v2365_v31  ;;  %v1186_v60 = vld [vmem:[%s4940_s12 + $0x88] sm:$0xff]  ;;  %v1156_v31 = vld [vmem:[%s4942_s11 + $0x98] sm:$0xff]  ;;  %v1175_v41 = vld [vmem:[%s4940_s12 + $0x30] sm:$0xff] }
 0x4b6   :  { %v3283_v13 = vpop.eup %3282  ;;  %2830 = vmatprep.mubr.f32.mxu0 %v1086_v35  ;;  %v3123_v44 = vpack.c.bf16 %v1186_v60, %v1185_v55  ;;  %v1163_v35 = vld [vmem:[%s4942_s11 + $0xd0] sm:$0xff] }
 0x4b7   :  { %v2366_v18 = vadd.f32 -1.0, %v3283_v13  ;;  %3114 = vmatpush1.bf16.msra.mxu0 %v3113_v61  ;;  %v1164_v61 = vld [vmem:[%s4942_s11 + $0xd8] sm:$0xff] }
 0x4b8   :  { %3116 = vmatprep.subr.bf16.mxu0 %v3115_v19  ;;  %v3133_v19 = vpack.c.bf16 %v1174_v22, %v1173_v16  ;;  %v1176_v13 = vld [vmem:[%s4940_s12 + $0x38] sm:$0xff] }
 0x4b9   :  { %v1087_v6 = vsel %vm1047_vm11, %v4236_v3, %v2366_v18  ;;  %v1171_v3 = vld [vmem:[%s4940_s12 + $0x10] sm:$0xff]  ;;  %v1193_v18 = vld [vmem:[%s4940_s12 + $0xc0] sm:$0xff] }
 0x4ba   :  { %2831 = vmatmul.mubr.f32.gmra.mrb[38].mxu0 %v1087_v6  ;;  %v3129_v7 = vpack.c.bf16 %v1172_v21, %v1171_v3  ;;  %v1195_v3 = vld [vmem:[%s4940_s12 + $0xd0] sm:$0xff]  ;;  %v1166_v21 = vld [vmem:[%s4942_s11 + $0xe8] sm:$0xff] }
 0x4bb   :  { %3118 = vmatpush1.bf16.msra.mxu0 %v3117_v14  ;;  %1498 = vmatprep.mubr.f32.mxu0 %v3380_v62  ;;  %v1194_v14 = vld [vmem:[%s4940_s12 + $0xc8] sm:$0xff] }
 0x4bc   :  { %3120 = vmatprep.subr.bf16.mxu0 %v3119_v26  ;;  %v3139_v53 = vpack.c.bf16 %v1194_v14, %v1193_v18  ;;  %v1143_v18 = vld [vmem:[%s4942_s11 + $0x30] sm:$0xff]  ;;  %v1160_v14 = vld [vmem:[%s4942_s11 + $0xb8] sm:$0xff] }
 0x4bf   :  { %3122 = vmatpush1.bf16.msra.mxu0 %v3121_v8 }
 0x4c0   :  { %3124 = vmatprep.subr.bf16.mxu0 %v3123_v44 }
 0x575   :  { %v2823_v52 = vpop.f32.mrb[32].mxu0 }
 0x576   :  { %v1324_v63 = vmul.f32 %v2823_v52, %v1138_v59  ;;  %v1332_v38 = vmul.f32 %v2823_v52, %v1146_v47  ;;  %v1284_v42 = vpop.f32.mrb[33].mxu0  ;;  %v1340_v11 = vmul.f32 %v2823_v52, %v1154_v56  ;;  %v1348_v43 = vmul.f32 %v2823_v52, %v1162_v1  ;;  %v1178_v56 = vld [vmem:[%s4940_s12 + $0x48] sm:$0xff] }
 0x577   :  { %v1323_v46 = vmul.f32 %v1284_v42, %v1137_v51  ;;  %v1331_v12 = vmul.f32 %v1284_v42, %v1145_v2  ;;  %1499 = vmatmul.mubr.f32.vlgmr.msra.gmra.mrb[40].mxu0 %v1284_v42  ;;  %v1339_v48 = vmul.f32 %v1284_v42, %v1153_v17  ;;  %v1347_v27 = vmul.f32 %v1284_v42, %v1161_v4  ;;  %v1177_v2 = vld [vmem:[%s4940_s12 + $0x40] sm:$0xff]  ;;  %v1196_v4 = vld [vmem:[%s4940_s12 + $0xd8] sm:$0xff] }
 0x578   :  { %3126 = vmatpush3.bf16.msra.mxu0 %v3125_v0  ;;  %1504 = vmatprep.mubr.f32.mxu0 %v3380_v62  ;;  %v3137_v47 = vpack.c.bf16 %v1176_v13, %v1175_v41  ;;  %v1141_v17 = vld [vmem:[%s4942_s11 + $0x20] sm:$0xff]  ;;  %v3141_v34 = vpack.c.bf16 %v1178_v56, %v1177_v2  ;;  %v1200_v13 = vld [vmem:[%s4940_s12 + $0xf8] sm:$0xff] }
 0x579   :  { %3128 = vmatprep.subr.bf16.mxu0 %v3127_v5  ;;  %v4365_v28 = vpack.c.bf16 %v1340_v11, %v1339_v48  ;;  %v4367_v49 = vpack.c.bf16 %v1324_v63, %v1323_v46  ;;  %v4381_v29 = vpack.c.bf16 %v1348_v43, %v1347_v27  ;;  %v4383_v23 = vpack.c.bf16 %v1332_v38, %v1331_v12  ;;  %v1158_v5 = vld [vmem:[%s4942_s11 + $0xa8] sm:$0xff]  ;;  %v1179_v63 = vld [vmem:[%s4940_s12 + $0x50] sm:$0xff]  ;;  %v1165_v38 = vld [vmem:[%s4942_s11 + $0xe0] sm:$0xff] }
 0x57a   :  { %v3143_v11 = vpack.c.bf16 %v1196_v4, %v1195_v3  ;;  %v1180_v43 = vld [vmem:[%s4940_s12 + $0x58] sm:$0xff]  ;;  %v1197_v46 = vld [vmem:[%s4940_s12 + $0xe0] sm:$0xff]  ;;  %v1198_v12 = vld [vmem:[%s4940_s12 + $0xe8] sm:$0xff] }
 0x57b   :  { %3060 = vmatprep.subr.bf16.mxu1 %v4365_v28  ;;  %1505 = vmatmul.mubr.f32.gmra.mrb[42].mxu0 %v2823_v52  ;;  %v1149_v52 = vld [vmem:[%s4942_s11 + $0x60] sm:$0xff]  ;;  %v3145_v30 = vpack.c.bf16 %v1180_v43, %v1179_v63  ;;  %v3147_v15 = vpack.c.bf16 %v1198_v12, %v1197_v46 }
 0x57c   :  { %3130 = vmatpush3.bf16.msra.mxu0 %v3129_v7  ;;  %3062 = vmatpush3.bf16.xpose.msra.mxu1 %v4367_v49 }
 0x57d   :  { %v2826_v25 = vpop.f32.mrb[34].mxu0  ;;  %1510 = vmatprep.mubr.f32.mxu0 %v3380_v62  ;;  %3132 = vmatprep.subr.bf16.mxu0 %v3131_v9 }
 0x57e   :  { %v1326_v26 = vmul.f32 %v2826_v25, %v1140_v57  ;;  %v1334_v32 = vmul.f32 %v2826_v25, %v1148_v10  ;;  %v1294_v40 = vpop.f32.mrb[35].mxu0  ;;  %v1342_v6 = vmul.f32 %v2826_v25, %v1156_v31  ;;  %v1350_v8 = vmul.f32 %v2826_v25, %v1164_v61  ;;  %v1144_v61 = vld [vmem:[%s4942_s11 + $0x38] sm:$0xff] }
 0x57f   :  { %v1325_v55 = vmul.f32 %v1294_v40, %v1139_v24  ;;  %v1333_v60 = vmul.f32 %v1294_v40, %v1147_v50  ;;  %1511 = vmatmul.mubr.f32.gmra.mrb[44].mxu0 %v1294_v40  ;;  %v1341_v44 = vmul.f32 %v1294_v40, %v1155_v58  ;;  %v1349_v59 = vmul.f32 %v1294_v40, %v1163_v35  ;;  %v1182_v58 = vld [vmem:[%s4940_s12 + $0x68] sm:$0xff] }
 0x580   :  { %3134 = vmatpush3.bf16.msra.mxu0 %v3133_v19  ;;  %1516 = vmatprep.mubr.f32.mxu0 %v3380_v62  ;;  %v1181_v19 = vld [vmem:[%s4940_s12 + $0x60] sm:$0xff] }
 0x581   :  { %3136 = vmatprep.subr.bf16.mxu0 %v3135_v39  ;;  %v4425_v33 = vpack.c.bf16 %v1342_v6, %v1341_v44  ;;  %v4427_v51 = vpack.c.bf16 %v1326_v26, %v1325_v55  ;;  %v4441_v1 = vpack.c.bf16 %v1350_v8, %v1349_v59  ;;  %v4443_v0 = vpack.c.bf16 %v1334_v32, %v1333_v60  ;;  %v1199_v39 = vld [vmem:[%s4940_s12 + $0xf0] sm:$0xff]  ;;  %v1168_v26 = vld [vmem:[%s4942_s11 + $0xf8] sm:$0xff] }
 0x582   :  { %v1151_v32 = vld [vmem:[%s4942_s11 + $0x70] sm:$0xff]  ;;  %v3149_v40 = vpack.c.bf16 %v1182_v58, %v1181_v19  ;;  %v3151_v60 = vpack.c.bf16 %v1200_v13, %v1199_v39  ;;  %v1184_v59 = vld [vmem:[%s4940_s12 + $0x78] sm:$0xff] }
 0x583   :  { %3064 = vmatprep.subr.bf16.mxu1 %v4425_v33  ;;  %1517 = vmatmul.mubr.f32.gmra.mrb[46].mxu0 %v2826_v25  ;;  %v1152_v25 = vld [vmem:[%s4942_s11 + $0x78] sm:$0xff]  ;;  %v1159_v6 = vld [vmem:[%s4942_s11 + $0xb0] sm:$0xff] }
 0x584   :  { %3138 = vmatpush3.bf16.msra.mxu0 %v3137_v47  ;;  %3066 = vmatpush3.bf16.xpose.msra.mxu1 %v4427_v51  ;;  %v1167_v8 = vld [vmem:[%s4942_s11 + $0xf0] sm:$0xff]  ;;  %v1205_v39 = vld [vmem:[%s4943_s14 + $0x18] sm:$0xff] }
 0x585   :  { %v2829_v42 = vpop.f32.mrb[36].mxu0  ;;  %1522 = vmatprep.mubr.f32.mxu0 %v3380_v62  ;;  %3140 = vmatprep.subr.bf16.mxu0 %v3139_v53  ;;  %v1183_v44 = vld [vmem:[%s4940_s12 + $0x70] sm:$0xff] }
 0x586   :  { %v1328_v48 = vmul.f32 %v2829_v42, %v1142_v54  ;;  %v1336_v27 = vmul.f32 %v2829_v42, %v1150_v45  ;;  %v1304_v7 = vpop.f32.mrb[37].mxu0  ;;  %v1344_v9 = vmul.f32 %v2829_v42, %v1158_v5  ;;  %v1352_v57 = vmul.f32 %v2829_v42, %v1166_v21 }
 0x587   :  { %v1327_v10 = vmul.f32 %v1304_v7, %v1141_v17  ;;  %v1335_v16 = vmul.f32 %v1304_v7, %v1149_v52  ;;  %1523 = vmatmul.mubr.f32.gmra.mrb[48].mxu0 %v1304_v7  ;;  %v1343_v22 = vmul.f32 %v1304_v7, %v1157_v37  ;;  %v1351_v24 = vmul.f32 %v1304_v7, %v1165_v38 }
 0x588   :  { %3142 = vmatpush3.bf16.msra.mxu0 %v3141_v34  ;;  %1528 = vmatprep.mubr.f32.mxu0 %v3380_v62  ;;  %v3153_v52 = vpack.c.bf16 %v1184_v59, %v1183_v44 }
 0x589   :  { %3144 = vmatprep.subr.bf16.mxu0 %v3143_v11  ;;  %v4485_v50 = vpack.c.bf16 %v1344_v9, %v1343_v22  ;;  %v4487_v31 = vpack.c.bf16 %v1328_v48, %v1327_v10  ;;  %v4498_v41 = vpack.c.bf16 %v1352_v57, %v1351_v24  ;;  %v4500_v35 = vpack.c.bf16 %v1336_v27, %v1335_v16 }
 0x58b   :  { %3068 = vmatprep.subr.bf16.mxu1 %v4485_v50  ;;  %1529 = vmatmul.mubr.f32.gmra.mrb[50].mxu0 %v2829_v42 }
 0x58c   :  { %3146 = vmatpush3.bf16.msra.mxu0 %v3145_v30  ;;  %3070 = vmatpush3.bf16.xpose.msra.mxu1 %v4487_v31 }
 0x58d   :  { %v2832_v55 = vpop.f32.mrb[38].mxu0  ;;  %1534 = vmatprep.mubr.f32.mxu0 %v3380_v62  ;;  %3148 = vmatprep.subr.bf16.mxu0 %v3147_v15  ;;  %v1204_v15 = vld [vmem:[%s4943_s14 + $0x10] sm:$0xff] }
 0x58e   :  { %v1330_v47 = vmul.f32 %v2832_v55, %v1144_v61  ;;  %v1338_v53 = vmul.f32 %v2832_v55, %v1152_v25  ;;  %v1314_v54 = vpop.f32.mrb[39].mxu0  ;;  %v1346_v45 = vmul.f32 %v2832_v55, %v1160_v14  ;;  %v1354_v2 = vmul.f32 %v2832_v55, %v1168_v26 }
 0x58f   :  { %v1329_v56 = vmul.f32 %v1314_v54, %v1143_v18  ;;  %v1337_v17 = vmul.f32 %v1314_v54, %v1151_v32  ;;  %1535 = vmatmul.mubr.f32.gmra.mrb[52].mxu0 %v1314_v54  ;;  %v1345_v3 = vmul.f32 %v1314_v54, %v1159_v6  ;;  %v1353_v4 = vmul.f32 %v1314_v54, %v1167_v8  ;;  %v1203_v18 = vld [vmem:[%s4943_s14 + $0x8] sm:$0xff] }
 0x590   :  { %3150 = vmatpush3.bf16.msra.mxu0 %v3149_v40  ;;  %1540 = vmatprep.mubr.f32.mxu0 %v3380_v62 }
 0x591   :  { %3152 = vmatprep.subr.bf16.mxu0 %v3151_v60  ;;  %v4539_v5 = vpack.c.bf16 %v1346_v45, %v1345_v3  ;;  %v4541_v21 = vpack.c.bf16 %v1330_v47, %v1329_v56  ;;  %v4543_v34 = vpack.c.bf16 %v1354_v2, %v1353_v4  ;;  %v4545_v37 = vpack.c.bf16 %v1338_v53, %v1337_v17  ;;  %v1208_v45 = vld [vmem:[%s4943_s14 + $0x30] sm:$0xff]  ;;  %v1209_v2 = vld [vmem:[%s4943_s14 + $0x38] sm:$0xff] }
 0x593   :  { %3072 = vmatprep.subr.bf16.mxu1 %v4539_v5  ;;  %1541 = vmatmul.mubr.f32.gmra.mrb[54].mxu0 %v2832_v55 }
 0x594   :  { %3154 = vmatpush3.bf16.msra.mxu0 %v3153_v52  ;;  %3074 = vmatpush3.bf16.xpose.msra.mxu1 %v4541_v21  ;;  %v1206_v52 = vld [vmem:[%s4943_s14 + $0x20] sm:$0xff] }
 0x595   :  { %3156 = vmatprep.subr.bf16.mxu0 %v4365_v28  ;;  %3076 = vmatprep.subr.bf16.mxu1 %v4381_v29 }
 0x59c   :  { %3078 = vmatpush3.bf16.xpose.msra.mxu1 %v4383_v23 }
 0x59d   :  { %3080 = vmatprep.subr.bf16.mxu1 %v4441_v1 }
 0x5a4   :  { %3082 = vmatpush3.bf16.xpose.msra.mxu1 %v4443_v0 }
 0x5a5   :  { %3084 = vmatprep.subr.bf16.mxu1 %v4498_v41 }
 0x5ac   :  { %3086 = vmatpush3.bf16.xpose.msra.mxu1 %v4500_v35 }
 0x5ad   :  { %3088 = vmatprep.subr.bf16.mxu1 %v4543_v34 }
 0x5b4   :  { %3090 = vmatpush3.bf16.xpose.msra.mxu1 %v4545_v37 }
 0x5bb   :  { %2609 = vmatmul.mubr.f32.vlgmr.msra.gmra.mrb[34].mxu1 %v4313_v36 }
 0x64a   :  { %v1500_v62 = vpop.f32.mrb[40].mxu0 }
 0x64b   :  { %v1502_v28 = vpop.f32.mrb[41].mxu0 }
 0x64e   :  { %v1506_v63 = vpop.f32.mrb[42].mxu0 }
 0x64f   :  { %v1508_v38 = vpop.f32.mrb[43].mxu0 }
 0x652   :  { %v1512_v42 = vpop.f32.mrb[44].mxu0 }
 0x653   :  { %v1514_v11 = vpop.f32.mrb[45].mxu0 }
 0x656   :  { %v1518_v43 = vpop.f32.mrb[46].mxu0 }
 0x657   :  { %v1520_v46 = vpop.f32.mrb[47].mxu0 }
 0x65a   :  { %v4559_v12 = vpop.f32.mrb[48].mxu0 }
 0x65b   :  { %v4561_v48 = vpop.f32.mrb[49].mxu0 }
 0x65e   :  { %v4563_v27 = vpop.f32.mrb[50].mxu0 }
 0x65f   :  { %v4565_v7 = vpop.f32.mrb[51].mxu0 }
 0x662   :  { %v4567_v9 = vpop.f32.mrb[52].mxu0 }
 0x663   :  { %v4569_v57 = vpop.f32.mrb[53].mxu0 }
 0x666   :  { %v4571_v36 = vpop.f32.mrb[54].mxu0 }
 0x667   :  { %v4573_v10 = vpop.f32.mrb[55].mxu0 }
 0x68e   :  { %v1421_v16 = vpop.f32.mrb[34].mxu1 }
 0x68f   :  { %v4576_v22 = vrot.slane %v1421_v16, %v3846_v20  ;;  %v1423_v24 = vpop.f32.mrb[35].mxu1 }
 0x690   :  { %v4579_v30 = vrot.slane %v1423_v24, %v3846_v20  ;;  %v1202_v20 = vld [vmem:[%s4943_s14] sm:$0xff] }
 0x691   :  { %v1507_v61 = vadd.f32 %v1506_v63, %v4576_v22  ;;  %v1501_v19 = vadd.f32 %v1500_v62, %v4576_v22  ;;  %v1519_v58 = vadd.f32 %v1518_v43, %v4576_v22  ;;  %v1513_v25 = vadd.f32 %v1512_v42, %v4576_v22  ;;  %v1207_v62 = vld [vmem:[%s4943_s14 + $0x28] sm:$0xff] }
 0x692   :  { %v1509_v13 = vadd.f32 %v1508_v38, %v4579_v30  ;;  %v1503_v14 = vadd.f32 %v1502_v28, %v4579_v30  ;;  %v1521_v26 = vadd.f32 %v1520_v46, %v4579_v30  ;;  %v1515_v32 = vadd.f32 %v1514_v11, %v4579_v30 }
 0x693   :  { %vm1549_vm12 = vcmp.gt.f32.partialorder %v1507_v61, 0.0  ;;  %v1565_v40 = vmul.f32 0.2, %v1507_v61  ;;  %vm1547_vm13 = vcmp.gt.f32.partialorder %v1501_v19, 0.0  ;;  %v1563_v6 = vmul.f32 0.2, %v1501_v19 }
 0x694   :  { %vm1550_vm14 = vcmp.gt.f32.partialorder %v1509_v13, 0.0  ;;  %v1566_v8 = vmul.f32 0.2, %v1509_v13  ;;  %vm1548_vm15 = vcmp.gt.f32.partialorder %v1503_v14, 0.0  ;;  %v1564_v55 = vmul.f32 0.2, %v1503_v14 }
 0x695   :  { %v1581_v60 = vsel %vm1549_vm12, %v1507_v61, %v1565_v40  ;;  %v1579_v44 = vsel %vm1547_vm13, %v1501_v19, %v1563_v6  ;;  %vm1553_vm0 = vcmp.gt.f32.partialorder %v1519_v58, 0.0  ;;  %vm1554_vm2 = vcmp.gt.f32.partialorder %v1521_v26, 0.0  ;;  %v1211_v40 = vld [vmem:[%s4943_s14 + $0x48] sm:$0xff] }
 0x696   :  { %v1582_v59 = vsel %vm1550_vm14, %v1509_v13, %v1566_v8  ;;  %v4601_v47 = vadd.f32 %v1581_v60, %v1204_v15  ;;  %v1580_v53 = vsel %vm1548_vm15, %v1503_v14, %v1564_v55  ;;  %v4603_v54 = vadd.f32 %v1579_v44, %v1202_v20  ;;  %v1212_v14 = vld [vmem:[%s4943_s14 + $0x50] sm:$0xff] }
 0x697   :  { %v4611_v56 = vadd.f32 %v1582_v59, %v1205_v39  ;;  %v4613_v17 = vadd.f32 %v1580_v53, %v1203_v18  ;;  %v1569_v3 = vmul.f32 0.2, %v1519_v58  ;;  %v1570_v4 = vmul.f32 0.2, %v1521_v26  ;;  %v1216_v44 = vld [vmem:[%s4943_s14 + $0x70] sm:$0xff] }
 0x698   :  { %vm1551_vm4 = vcmp.gt.f32.partialorder %v1513_v25, 0.0  ;;  %vm1552_vm5 = vcmp.gt.f32.partialorder %v1515_v32, 0.0  ;;  %v1567_v28 = vmul.f32 0.2, %v1513_v25  ;;  %v1568_v63 = vmul.f32 0.2, %v1515_v32 }
 0x699   :  { %v1614_v38 = vmax.f32 %v4601_v47, %v4611_v56  ;;  %v1611_v42 = vmax.f32 %v4603_v54, %v4613_v17  ;;  %v1585_v11 = vsel %vm1553_vm0, %v1519_v58, %v1569_v3  ;;  %v1586_v43 = vsel %vm1554_vm2, %v1521_v26, %v1570_v4 }
 0x69a   :  { %v4627_v46 = vadd.f32 %v1585_v11, %v1208_v45  ;;  %v4629_v16 = vadd.f32 %v1586_v43, %v1209_v2  ;;  %v1583_v24 = vsel %vm1551_vm4, %v1513_v25, %v1567_v28  ;;  %v1584_v15 = vsel %vm1552_vm5, %v1515_v32, %v1568_v63  ;;  %v1210_v32 = vld [vmem:[%s4943_s14 + $0x40] sm:$0xff] }
 0x69b   :  { %1615 = vmax.xlane.f32.xlu1 %v1614_v38  ;;  %1612 = vmax.xlane.f32.xlu0 %v1611_v42  ;;  %v4631_v61 = vadd.f32 %v1583_v24, %v1206_v52  ;;  %v4633_v19 = vadd.f32 %v1584_v15, %v1207_v62  ;;  %v1531_v39 = vadd.f32 %v4563_v27, %v4576_v22  ;;  %v1214_v15 = vld [vmem:[%s4943_s14 + $0x60] sm:$0xff] }
 0x69c   :  { %v1620_v58 = vmax.f32 %v4627_v46, %v4629_v16  ;;  %v1533_v13 = vadd.f32 %v4565_v7, %v4579_v30  ;;  %v1525_v20 = vadd.f32 %v4559_v12, %v4576_v22  ;;  %v1527_v25 = vadd.f32 %v4561_v48, %v4579_v30  ;;  %v1213_v7 = vld [vmem:[%s4943_s14 + $0x58] sm:$0xff] }
 0x69d   :  { %v1617_v18 = vmax.f32 %v4631_v61, %v4633_v19  ;;  %vm1557_vm6 = vcmp.gt.f32.partialorder %v1531_v39, 0.0  ;;  %v1573_v27 = vmul.f32 0.2, %v1531_v39  ;;  %v1543_v26 = vadd.f32 %v4571_v36, %v4576_v22 }
 0x69e   :  { %vm1558_vm7 = vcmp.gt.f32.partialorder %v1533_v13, 0.0  ;;  %v1574_v12 = vmul.f32 0.2, %v1533_v13  ;;  %vm1555_vm8 = vcmp.gt.f32.partialorder %v1525_v20, 0.0  ;;  %vm1556_vm9 = vcmp.gt.f32.partialorder %v1527_v25, 0.0 }
 0x69f   :  { %1621 = vmax.xlane.f32.xlu1 %v1620_v58  ;;  %1618 = vmax.xlane.f32.xlu0 %v1617_v18  ;;  %v1589_v48 = vsel %vm1557_vm6, %v1531_v39, %v1573_v27  ;;  %v1571_v36 = vmul.f32 0.2, %v1525_v20  ;;  %v1572_v6 = vmul.f32 0.2, %v1527_v25  ;;  %v1545_v8 = vadd.f32 %v4573_v10, %v4579_v30  ;;  %v1217_v10 = vld [vmem:[%s4943_s14 + $0x78] sm:$0xff] }
 0x6a0   :  { %v1590_v55 = vsel %vm1558_vm7, %v1533_v13, %v1574_v12  ;;  %v4663_v60 = vadd.f32 %v1589_v48, %v1212_v14  ;;  %vm1561_vm10 = vcmp.gt.f32.partialorder %v1543_v26, 0.0  ;;  %v1577_v59 = vmul.f32 0.2, %v1543_v26 }
 0x6a1   :  { %v4668_v53 = vadd.f32 %v1590_v55, %v1213_v7  ;;  %v1587_v45 = vsel %vm1555_vm8, %v1525_v20, %v1571_v36  ;;  %v1588_v2 = vsel %vm1556_vm9, %v1527_v25, %v1572_v6  ;;  %vm1562_vm11 = vcmp.gt.f32.partialorder %v1545_v8, 0.0 }
 0x6a2   :  { %v4672_v3 = vadd.f32 %v1587_v45, %v1210_v32  ;;  %v1604_v4 = vadd.f32 %v1588_v2, %v1211_v40  ;;  %v1578_v52 = vmul.f32 0.2, %v1545_v8  ;;  %v1593_v62 = vsel %vm1561_vm10, %v1543_v26, %v1577_v59 }
 0x6a3   :  { %v1626_v28 = vmax.f32 %v4663_v60, %v4668_v53  ;;  %v4679_v63 = vadd.f32 %v1593_v62, %v1216_v44  ;;  %v1537_v38 = vadd.f32 %v4567_v9, %v4576_v22  ;;  %v1539_v42 = vadd.f32 %v4569_v57, %v4579_v30  ;;  %v1215_v9 = vld [vmem:[%s4943_s14 + $0x68] sm:$0xff] }
 0x6a4   :  { %v1623_v11 = vmax.f32 %v4672_v3, %v1604_v4  ;;  %v1594_v43 = vsel %vm1562_vm11, %v1545_v8, %v1578_v52  ;;  %vm2225_vm6 = vcmask 64512  }
 0x6a5   :  { %1627 = vmax.xlane.f32.xlu1 %v1626_v28  ;;  %v4686_v24 = vadd.f32 %v1594_v43, %v1217_v10  ;;  %vm1559_vm12 = vcmp.gt.f32.partialorder %v1537_v38, 0.0  ;;  %vm1560_vm13 = vcmp.gt.f32.partialorder %v1539_v42, 0.0  ;;  %v1575_v39 = vmul.f32 0.2, %v1537_v38 }
 0x6a6   :  { %1624 = vmax.xlane.f32.xlu0 %v1623_v11  ;;  %v1576_v22 = vmul.f32 0.2, %v1539_v42 }
 0x6a7   :  { %v1632_v57 = vmax.f32 %v4679_v63, %v4686_v24  ;;  %v1591_v30 = vsel %vm1559_vm12, %v1537_v38, %v1575_v39 }
 0x6a8   :  { %v1592_v58 = vsel %vm1560_vm13, %v1539_v42, %v1576_v22  ;;  %v4696_v13 = vadd.f32 %v1591_v30, %v1214_v15 }
 0x6a9   :  { %1633 = vmax.xlane.f32.xlu1 %v1632_v57  ;;  %v1608_v20 = vadd.f32 %v1592_v58, %v1215_v9 }
 0x6ab   :  { %v1629_v25 = vmax.f32 %v4696_v13, %v1608_v20 }
 0x6ad   :  { %1630 = vmax.xlane.f32.xlu0 %v1629_v25 }
 0x728   :  { %v1616_v18 = vpop.xlane.xlu1 %1615  ;;  %v1613_v14 = vpop.xlane.xlu0 %1612 }
 0x729   :  { %v1635_v27 = vsub.f32 %v4603_v54, %v1613_v14  ;;  %v1636_v26 = vsub.f32 %v4613_v17, %v1613_v14  ;;  %v1638_v7 = vsub.f32 %v4611_v56, %v1616_v18  ;;  %v1637_v40 = vsub.f32 %v4601_v47, %v1616_v18 }
 0x72b   :  { %v1651_v12 = vmul.f32 1.442695, %v1635_v27  ;;  %v1653_v48 = vmul.f32 1.442695, %v1636_v26  ;;  %v1657_v36 = vmul.f32 1.442695, %v1638_v7 }
 0x72c   :  { %v1619_v32 = vpop.xlane.xlu0 %1618  ;;  %v1622_v8 = vpop.xlane.xlu1 %1621  ;;  %v1655_v55 = vmul.f32 1.442695, %v1637_v40 }
 0x72d   :  { %v1640_v6 = vsub.f32 %v4633_v19, %v1619_v32  ;;  %3284 = vpow2.f32 %v1651_v12  ;;  %v1639_v44 = vsub.f32 %v4631_v61, %v1619_v32  ;;  %v1642_v54 = vsub.f32 %v4629_v16, %v1622_v8 }
 0x72e   :  { %3286 = vpow2.f32 %v1653_v48  ;;  %v1641_v56 = vsub.f32 %v4627_v46, %v1622_v8 }
 0x72f   :  { %3288 = vpow2.f32 %v1657_v36  ;;  %v1661_v17 = vmul.f32 1.442695, %v1640_v6  ;;  %v1659_v45 = vmul.f32 1.442695, %v1639_v44  ;;  %v1665_v2 = vmul.f32 1.442695, %v1642_v54 }
 0x730   :  { %3290 = vpow2.f32 %v1655_v55  ;;  %v1663_v52 = vmul.f32 1.442695, %v1641_v56  ;;  %v2099_v54 = vld [vmem:[%s4945_s15 + $0x10] sm:$0xff] }
 0x731   :  { %3292 = vpow2.f32 %v1661_v17  ;;  %v2100_v17 = vld [vmem:[%s4945_s15 + $0x18] sm:$0xff] }
 0x732   :  { %v1628_v10 = vpop.xlane.xlu1 %1627  ;;  %3294 = vpow2.f32 %v1659_v45  ;;  %v3191_v45 = vpack.c.bf16 %v2100_v17, %v2099_v54  ;;  %v2111_v54 = vld [vmem:[%s4945_s15 + $0x70] sm:$0xff]  ;;  %v2112_v17 = vld [vmem:[%s4945_s15 + $0x78] sm:$0xff] }
 0x733   :  { %v1625_v59 = vpop.xlane.xlu0 %1624  ;;  %3296 = vpow2.f32 %v1665_v2  ;;  %v1646_v16 = vsub.f32 %v4668_v53, %v1628_v10 }
 0x734   :  { %v1644_v47 = vsub.f32 %v1604_v4, %v1625_v59  ;;  %v1643_v62 = vsub.f32 %v4672_v3, %v1625_v59  ;;  %3298 = vpow2.f32 %v1663_v52  ;;  %v1645_v4 = vsub.f32 %v4663_v60, %v1628_v10  ;;  %v2102_v52 = vld [vmem:[%s4945_s15 + $0x28] sm:$0xff] }
 0x735   :  { %v1673_v3 = vmul.f32 1.442695, %v1646_v16 }
 0x736   :  { %v1669_v28 = vmul.f32 1.442695, %v1644_v47  ;;  %v1667_v42 = vmul.f32 1.442695, %v1643_v62  ;;  %v1634_v43 = vpop.xlane.xlu1 %1633  ;;  %v1671_v39 = vmul.f32 1.442695, %v1645_v4 }
 0x737   :  { %v4707_v19 = vpop.eup %3284 }
 0x738   :  { %v4710_v61 = vpop.eup %3286  ;;  %3300 = vpow2.f32 %v1669_v28 }
 0x739   :  { %1747 = vmatprep.mubr.f32.mxu0 %v4710_v61  ;;  %v4714_v46 = vpop.eup %3288  ;;  %3302 = vpow2.f32 %v1667_v42 }
 0x73a   :  { %v1631_v38 = vpop.xlane.xlu0 %1630  ;;  %1748 = vmatmul.mubr.f32.vlgmr.msra.gmra.mrb[56].mxu0 %v4707_v19  ;;  %v3291_v53 = vpop.eup %3290  ;;  %3304 = vpow2.f32 %v1673_v3 }
 0x73b   :  { %3158 = vmatpush3.bf16.msra.mxu0 %v4367_v49  ;;  %1752 = vmatprep.mubr.f32.mxu0 %v4714_v46  ;;  %v1648_v11 = vsub.f32 %v1608_v20, %v1631_v38  ;;  %v3293_v15 = vpop.eup %3292  ;;  %v1647_v9 = vsub.f32 %v4696_v13, %v1631_v38  ;;  %v1650_v49 = vsub.f32 %v4686_v24, %v1634_v43  ;;  %3306 = vpow2.f32 %v1671_v39 }
 0x73c   :  { %3160 = vmatprep.subr.bf16.mxu0 %v4425_v33  ;;  %v3295_v22 = vpop.eup %3294  ;;  %v1649_v33 = vsub.f32 %v4679_v63, %v1634_v43 }
 0x73d   :  { %v1677_v60 = vmul.f32 1.442695, %v1648_v11  ;;  %v3297_v57 = vpop.eup %3296  ;;  %v1675_v30 = vmul.f32 1.442695, %v1647_v9  ;;  %v1681_v58 = vmul.f32 1.442695, %v1650_v49 }
 0x73e   :  { %1753 = vmatmul.mubr.f32.gmra.mrb[58].mxu0 %v3291_v53  ;;  %v1679_v24 = vmul.f32 1.442695, %v1649_v33 }
 0x73f   :  { %3162 = vmatpush3.bf16.msra.mxu0 %v4427_v51  ;;  %1757 = vmatprep.mubr.f32.mxu0 %v3293_v15  ;;  %3308 = vpow2.f32 %v1677_v60  ;;  %v3299_v51 = vpop.eup %3298 }
 0x740   :  { %3164 = vmatprep.subr.bf16.mxu0 %v4485_v50  ;;  %3310 = vpow2.f32 %v1675_v30 }
 0x741   :  { %3312 = vpow2.f32 %v1681_v58 }
 0x742   :  { %1758 = vmatmul.mubr.f32.gmra.mrb[60].mxu0 %v3295_v22  ;;  %v3301_v13 = vpop.eup %3300  ;;  %3314 = vpow2.f32 %v1679_v24 }
 0x743   :  { %3166 = vmatpush3.bf16.msra.mxu0 %v4487_v31  ;;  %1762 = vmatprep.mubr.f32.mxu0 %v3297_v57  ;;  %v3303_v50 = vpop.eup %3302 }
 0x744   :  { %3168 = vmatprep.subr.bf16.mxu0 %v4539_v5  ;;  %v3305_v63 = vpop.eup %3304 }
 0x745   :  { %v3307_v31 = vpop.eup %3306 }
 0x746   :  { %1763 = vmatmul.mubr.f32.gmra.mrb[62].mxu0 %v3299_v51 }
 0x747   :  { %3170 = vmatpush3.bf16.msra.mxu0 %v4541_v21  ;;  %1767 = vmatprep.mubr.f32.mxu0 %v3301_v13 }
 0x748   :  { %3172 = vmatprep.subr.bf16.mxu0 %v4381_v29 }
 0x749   :  { %v3309_v5 = vpop.eup %3308 }
 0x74a   :  { %1768 = vmatmul.mubr.f32.gmra.mrb[64].mxu0 %v3303_v50  ;;  %v3311_v21 = vpop.eup %3310 }
 0x74b   :  { %3174 = vmatpush3.bf16.msra.mxu0 %v4383_v23  ;;  %1772 = vmatprep.mubr.f32.mxu0 %v3305_v63  ;;  %v3313_v20 = vpop.eup %3312  ;;  %v1201_v23 = vld [vmem:[%s4944_s13] sm:$0xf] }
 0x74c   :  { %3176 = vmatprep.subr.bf16.mxu0 %v4441_v1  ;;  %v3315_v29 = vpop.eup %3314  ;;  %2833 = vmatprep.subr.msk.mxu1 %vm818_vm1, %v1201_v23  ;;  %v2097_v1 = vld [vmem:[%s4945_s15] sm:$0xff] }
 0x74d   :  { %2834 = vmatpush3.msk.msra.mxu1 %vm818_vm1, %v1201_v23 }
 0x74e   :  { %1773 = vmatmul.mubr.f32.gmra.mrb[66].mxu0 %v3307_v31 }
 0x74f   :  { %3178 = vmatpush3.bf16.msra.mxu0 %v4443_v0  ;;  %1777 = vmatprep.mubr.f32.mxu0 %v3309_v5  ;;  %v2098_v0 = vld [vmem:[%s4945_s15 + $0x8] sm:$0xff] }
 0x750   :  { %3180 = vmatprep.subr.bf16.mxu0 %v4498_v41  ;;  %v3187_v41 = vpack.c.bf16 %v2098_v0, %v2097_v1 }
 0x752   :  { %1778 = vmatmul.mubr.f32.gmra.mrb[68].mxu0 %v3311_v21  ;;  %3188 = vmatprep.subr.bf16.mxu1 %v3187_v41 }
 0x753   :  { %3182 = vmatpush3.bf16.msra.mxu0 %v4500_v35  ;;  %1782 = vmatprep.mubr.f32.mxu0 %v3313_v20 }
 0x754   :  { %3184 = vmatprep.subr.bf16.mxu0 %v4543_v34 }
 0x756   :  { %1783 = vmatmul.mubr.f32.gmra.mrb[70].mxu0 %v3315_v29 }
 0x757   :  { %3186 = vmatpush3.bf16.msra.mxu0 %v4545_v37  ;;  %2000 = vmatprep.mubr.f32.mxu0 %v4710_v61 }
 0x75a   :  { %2001 = vmatmul.mubr.f32.vlgmr.msra.gmra.mrb[72].mxu0 %v4707_v19  ;;  %v2101_v19 = vld [vmem:[%s4945_s15 + $0x20] sm:$0xff] }
 0x75b   :  { %2005 = vmatprep.mubr.f32.mxu0 %v4714_v46  ;;  %v3195_v16 = vpack.c.bf16 %v2102_v52, %v2101_v19 }
 0x75e   :  { %2006 = vmatmul.mubr.f32.gmra.mrb[74].mxu0 %v3291_v53 }
 0x75f   :  { %2010 = vmatprep.mubr.f32.mxu0 %v3293_v15 }
 0x762   :  { %2011 = vmatmul.mubr.f32.gmra.mrb[76].mxu0 %v3295_v22 }
 0x763   :  { %2015 = vmatprep.mubr.f32.mxu0 %v3297_v57 }
 0x766   :  { %2016 = vmatmul.mubr.f32.gmra.mrb[78].mxu0 %v3299_v51 }
 0x767   :  { %2020 = vmatprep.mubr.f32.mxu0 %v3301_v13 }
 0x76a   :  { %2021 = vmatmul.mubr.f32.gmra.mrb[80].mxu0 %v3303_v50 }
 0x76b   :  { %2025 = vmatprep.mubr.f32.mxu0 %v3305_v63 }
 0x76e   :  { %2026 = vmatmul.mubr.f32.gmra.mrb[82].mxu0 %v3307_v31 }
 0x76f   :  { %2030 = vmatprep.mubr.f32.mxu0 %v3309_v5 }
 0x772   :  { %2031 = vmatmul.mubr.f32.gmra.mrb[84].mxu0 %v3311_v21 }
 0x773   :  { %2035 = vmatprep.mubr.f32.mxu0 %v3313_v20 }
 0x776   :  { %2036 = vmatmul.mubr.f32.gmra.mrb[86].mxu0 %v3315_v29 }
 0x80d   :  { %v2642_v35 = vpop.f32.mrb[56].mxu0 }
 0x80e   :  { %v2643_v34 = vpop.f32.mrb[57].mxu0 }
 0x80f   :  { %v2644_v37 = vadd.f32 %v2643_v34, %v2642_v35 }
 0x811   :  { %v1788_v25 = vmax.f32 %v2644_v37, 1e-30  ;;  %v2645_v18 = vpop.f32.mrb[58].mxu0 }
 0x812   :  { %v2646_v14 = vpop.f32.mrb[59].mxu0 }
 0x813   :  { %3316 = vrcp.f32 %v1788_v25  ;;  %v2647_v27 = vadd.f32 %v2646_v14, %v2645_v18 }
 0x815   :  { %v1789_v26 = vmax.f32 %v2647_v27, 1e-30  ;;  %v2648_v7 = vpop.f32.mrb[60].mxu0  ;;  %v2103_v27 = vld [vmem:[%s4945_s15 + $0x30] sm:$0xff] }
 0x816   :  { %v2649_v12 = vpop.f32.mrb[61].mxu0 }
 0x817   :  { %3318 = vrcp.f32 %v1789_v26  ;;  %v2650_v48 = vadd.f32 %v2649_v12, %v2648_v7  ;;  %v2104_v26 = vld [vmem:[%s4945_s15 + $0x38] sm:$0xff]  ;;  %v2105_v12 = vld [vmem:[%s4945_s15 + $0x40] sm:$0xff] }
 0x818   :  { %v3199_v7 = vpack.c.bf16 %v2104_v26, %v2103_v27 }
 0x819   :  { %v1790_v32 = vmax.f32 %v2650_v48, 1e-30  ;;  %v2651_v40 = vpop.f32.mrb[62].mxu0  ;;  %v2106_v48 = vld [vmem:[%s4945_s15 + $0x48] sm:$0xff] }
 0x81a   :  { %v2652_v36 = vpop.f32.mrb[63].mxu0 }
 0x81b   :  { %3320 = vrcp.f32 %v1790_v32  ;;  %v2653_v6 = vadd.f32 %v2652_v36, %v2651_v40  ;;  %v3203_v32 = vpack.c.bf16 %v2106_v48, %v2105_v12  ;;  %v2107_v40 = vld [vmem:[%s4945_s15 + $0x50] sm:$0xff]  ;;  %v2108_v36 = vld [vmem:[%s4945_s15 + $0x58] sm:$0xff] }
 0x81d   :  { %v3317_v8 = vpop.eup %3316  ;;  %v1791_v55 = vmax.f32 %v2653_v6, 1e-30  ;;  %v2654_v44 = vpop.f32.mrb[64].mxu0  ;;  %v3207_v6 = vpack.c.bf16 %v2108_v36, %v2107_v40  ;;  %v2384_v36 = vld [vmem:[%s4946_s16] ss:$0 sm:$0xff] }
 0x81e   :  { %v2655_v59 = vpop.f32.mrb[65].mxu0  ;;  %2835 = vmatprep.mubr.msk.f32.mxu1 %vm793_vm3, %v3317_v8  ;;  %v2109_v8 = vld [vmem:[%s4945_s15 + $0x60] sm:$0xff] }
 0x81f   :  { %3322 = vrcp.f32 %v1791_v55  ;;  %v2656_v56 = vadd.f32 %v2655_v59, %v2654_v44  ;;  %v2110_v55 = vld [vmem:[%s4945_s15 + $0x68] sm:$0xff]  ;;  %v3215_v59 = vpack.c.bf16 %v2112_v17, %v2111_v54 }
 0x820   :  { %v3211_v44 = vpack.c.bf16 %v2110_v55, %v2109_v8 }
 0x821   :  { %v3319_v2 = vpop.eup %3318  ;;  %v1792_v47 = vmax.f32 %v2656_v56, 1e-30  ;;  %v2657_v10 = vpop.f32.mrb[66].mxu0 }
 0x822   :  { %v2658_v62 = vpop.f32.mrb[67].mxu0  ;;  %2836 = vmatmul.mubr.msk.f32.vlgmr.msra.gmra.mrb[36].mxu1 %vm793_vm3, %v3319_v2 }
 0x823   :  { %3324 = vrcp.f32 %v1792_v47  ;;  %v2659_v61 = vadd.f32 %v2658_v62, %v2657_v10  ;;  %3190 = vmatpush3.bf16.msra.mxu1 %v3187_v41 }
 0x824   :  { %3192 = vmatprep.subr.bf16.mxu1 %v3191_v45 }
 0x825   :  { %v3321_v28 = vpop.eup %3320  ;;  %v1793_v38 = vmax.f32 %v2659_v61, 1e-30  ;;  %v2660_v46 = vpop.f32.mrb[68].mxu0 }
 0x826   :  { %v2661_v4 = vpop.f32.mrb[69].mxu0  ;;  %2838 = vmatprep.mubr.msk.f32.mxu1 %vm793_vm3, %v3321_v28 }
 0x827   :  { %3326 = vrcp.f32 %v1793_v38  ;;  %v2662_v42 = vadd.f32 %v2661_v4, %v2660_v46  ;;  %3194 = vmatpush3.bf16.msra.mxu1 %v3191_v45 }
 0x828   :  { %3196 = vmatprep.subr.bf16.mxu1 %v3195_v16 }
 0x829   :  { %v3323_v3 = vpop.eup %3322  ;;  %v1794_v11 = vmax.f32 %v2662_v42, 1e-30  ;;  %v2663_v53 = vpop.f32.mrb[70].mxu0 }
 0x82a   :  { %v2664_v43 = vpop.f32.mrb[71].mxu0  ;;  %2839 = vmatmul.mubr.msk.f32.gmra.mrb[38].mxu1 %vm793_vm3, %v3323_v3 }
 0x82b   :  { %3328 = vrcp.f32 %v1794_v11  ;;  %v2665_v15 = vadd.f32 %v2664_v43, %v2663_v53  ;;  %3198 = vmatpush3.bf16.msra.mxu1 %v3195_v16 }
 0x82c   :  { %3200 = vmatprep.subr.bf16.mxu1 %v3199_v7 }
 0x82d   :  { %v3325_v39 = vpop.eup %3324  ;;  %v1795_v9 = vmax.f32 %v2665_v15, 1e-30  ;;  %v2707_v49 = vpop.f32.mrb[72].mxu0 }
 0x82e   :  { %2841 = vmatprep.mubr.msk.f32.mxu1 %vm793_vm3, %v3325_v39  ;;  %v2708_v60 = vpop.f32.mrb[73].mxu0 }
 0x82f   :  { %3330 = vrcp.f32 %v1795_v9  ;;  %v2709_v22 = vadd.f32 %v2708_v60, %v2707_v49  ;;  %3202 = vmatpush3.bf16.msra.mxu1 %v3199_v7 }
 0x830   :  { %3204 = vmatprep.subr.bf16.mxu1 %v3203_v32 }
 0x831   :  { %v3327_v57 = vpop.eup %3326  ;;  %v2710_v33 = vpop.f32.mrb[74].mxu0 }
 0x832   :  { %2842 = vmatmul.mubr.msk.f32.gmra.mrb[40].mxu1 %vm793_vm3, %v3327_v57  ;;  %v2711_v30 = vpop.f32.mrb[75].mxu0 }
 0x833   :  { %v2712_v58 = vadd.f32 %v2711_v30, %v2710_v33  ;;  %3206 = vmatpush3.bf16.msra.mxu1 %v3203_v32 }
 0x834   :  { %3208 = vmatprep.subr.bf16.mxu1 %v3207_v6 }
 0x835   :  { %v3329_v51 = vpop.eup %3328  ;;  %v2713_v13 = vpop.f32.mrb[76].mxu0 }
 0x836   :  { %2844 = vmatprep.mubr.msk.f32.mxu1 %vm793_vm3, %v3329_v51  ;;  %v2714_v24 = vpop.f32.mrb[77].mxu0 }
 0x837   :  { %v2715_v50 = vadd.f32 %v2714_v24, %v2713_v13  ;;  %3210 = vmatpush3.bf16.msra.mxu1 %v3207_v6 }
 0x838   :  { %3212 = vmatprep.subr.bf16.mxu1 %v3211_v44 }
 0x839   :  { %v3331_v63 = vpop.eup %3330  ;;  %v2716_v31 = vpop.f32.mrb[78].mxu0 }
 0x83a   :  { %2845 = vmatmul.mubr.msk.f32.gmra.mrb[42].mxu1 %vm793_vm3, %v3331_v63  ;;  %v2717_v5 = vpop.f32.mrb[79].mxu0 }
 0x83b   :  { %v2718_v21 = vadd.f32 %v2717_v5, %v2716_v31  ;;  %3214 = vmatpush3.bf16.msra.mxu1 %v3211_v44 }
 0x83c   :  { %3216 = vmatprep.subr.bf16.mxu1 %v3215_v59 }
 0x83d   :  { %v2719_v20 = vpop.f32.mrb[80].mxu0 }
 0x83e   :  { %v2720_v29 = vpop.f32.mrb[81].mxu0 }
 0x83f   :  { %v2721_v23 = vadd.f32 %v2720_v29, %v2719_v20  ;;  %3218 = vmatpush3.bf16.msra.mxu1 %v3215_v59 }
 0x841   :  { %v2722_v1 = vpop.f32.mrb[82].mxu0 }
 0x842   :  { %v2723_v0 = vpop.f32.mrb[83].mxu0 }
 0x843   :  { %v2724_v41 = vadd.f32 %v2723_v0, %v2722_v1 }
 0x845   :  { %v2725_v35 = vpop.f32.mrb[84].mxu0 }
 0x846   :  { %v2726_v34 = vpop.f32.mrb[85].mxu0 }
 0x847   :  { %v4771_v37 = vadd.f32 %v2726_v34, %v2725_v35 }
 0x849   :  { %v2728_v25 = vpop.f32.mrb[86].mxu0 }
 0x84a   :  { %v2729_v18 = vpop.f32.mrb[87].mxu0 }
 0x84b   :  { %v4773_v14 = vadd.f32 %v2729_v18, %v2728_v25 }
 0x8f5   :  { %v2837_v56 = vpop.f32.mrb[36].mxu1 }
 0x8f6   :  { %v2042_v45 = vmul.f32 %v2837_v56, %v2712_v58  ;;  %v1897_v2 = vpop.f32.mrb[37].mxu1 }
 0x8f7   :  { %v2041_v47 = vmul.f32 %v2709_v22, %v1897_v2 }
 0x8f8   :  { %v2058_v10 = vmin.f32 %v2042_v45, 0.0  ;;  %vm2050_vm3 = vcmp.gt.f32.partialorder %v2042_v45, 0.0 }
 0x8f9   :  { %v2057_v19 = vmin.f32 %v2041_v47, 0.0  ;;  %vm2049_vm1 = vcmp.gt.f32.partialorder %v2041_v47, 0.0 }
 0x8fa   :  { %v2067_v52 = vmul.f32 1.442695, %v2058_v10 }
 0x8fb   :  { %v2065_v62 = vmul.f32 1.442695, %v2057_v19 }
 0x8fc   :  { %3332 = vpow2.f32 %v2067_v52 }
 0x8fd   :  { %3334 = vpow2.f32 %v2065_v62  ;;  %v2840_v61 = vpop.f32.mrb[38].mxu1 }
 0x8fe   :  { %v2044_v16 = vmul.f32 %v2840_v61, %v2718_v21  ;;  %v1907_v28 = vpop.f32.mrb[39].mxu1 }
 0x8ff   :  { %v2043_v38 = vmul.f32 %v2715_v50, %v1907_v28 }
 0x900   :  { %v2060_v46 = vmin.f32 %v2044_v16, 0.0  ;;  %vm2052_vm15 = vcmp.gt.f32.partialorder %v2044_v16, 0.0 }
 0x901   :  { %v2059_v4 = vmin.f32 %v2043_v38, 0.0  ;;  %vm2051_vm14 = vcmp.gt.f32.partialorder %v2043_v38, 0.0 }
 0x902   :  { %v2071_v42 = vmul.f32 1.442695, %v2060_v46 }
 0x903   :  { %v2069_v3 = vmul.f32 1.442695, %v2059_v4 }
 0x904   :  { %3336 = vpow2.f32 %v2071_v42 }
 0x905   :  { %3338 = vpow2.f32 %v2069_v3  ;;  %v2843_v11 = vpop.f32.mrb[40].mxu1 }
 0x906   :  { %v3333_v53 = vpop.eup %3332  ;;  %v2046_v43 = vmul.f32 %v2843_v11, %v2724_v41  ;;  %v1917_v15 = vpop.f32.mrb[41].mxu1 }
 0x907   :  { %v3335_v39 = vpop.eup %3334  ;;  %v2377_v9 = vadd.f32 -1.0, %v3333_v53  ;;  %v2045_v49 = vmul.f32 %v2721_v23, %v1917_v15 }
 0x908   :  { %v2062_v60 = vmin.f32 %v2046_v43, 0.0  ;;  %v2376_v22 = vadd.f32 -1.0, %v3335_v39  ;;  %vm2054_vm2 = vcmp.gt.f32.partialorder %v2046_v43, 0.0 }
 0x909   :  { %v2061_v57 = vmin.f32 %v2045_v49, 0.0  ;;  %v2090_v58 = vsel %vm2050_vm3, %v2042_v45, %v2377_v9  ;;  %vm2053_vm0 = vcmp.gt.f32.partialorder %v2045_v49, 0.0 }
 0x90a   :  { %v2075_v33 = vmul.f32 1.442695, %v2062_v60  ;;  %v2089_v30 = vsel %vm2049_vm1, %v2041_v47, %v2376_v22 }
 0x90b   :  { %v2073_v51 = vmul.f32 1.442695, %v2061_v57  ;;  %2879 = vmatprep.mubr.f32.mxu1 %v2089_v30 }
 0x90c   :  { %3340 = vpow2.f32 %v2075_v33  ;;  %2880 = vmatmul.mubr.f32.vlgmr.msra.gmra.mrb[44].mxu1 %v2090_v58 }
 0x90d   :  { %3342 = vpow2.f32 %v2073_v51  ;;  %v2846_v13 = vpop.f32.mrb[42].mxu1 }
 0x90e   :  { %v3337_v24 = vpop.eup %3336  ;;  %v2048_v50 = vmul.f32 %v2846_v13, %v4773_v14  ;;  %v1927_v63 = vpop.f32.mrb[43].mxu1 }
 0x90f   :  { %v3339_v31 = vpop.eup %3338  ;;  %v2047_v5 = vmul.f32 %v4771_v37, %v1927_v63  ;;  %v2379_v21 = vadd.f32 -1.0, %v3337_v24 }
 0x910   :  { %v2064_v20 = vmin.f32 %v2048_v50, 0.0  ;;  %v2378_v29 = vadd.f32 -1.0, %v3339_v31  ;;  %vm2056_vm5 = vcmp.gt.f32.partialorder %v2048_v50, 0.0 }
 0x911   :  { %v2063_v23 = vmin.f32 %v2047_v5, 0.0  ;;  %v2092_v35 = vsel %vm2052_vm15, %v2044_v16, %v2379_v21  ;;  %vm2055_vm4 = vcmp.gt.f32.partialorder %v2047_v5, 0.0 }
 0x912   :  { %v2079_v1 = vmul.f32 1.442695, %v2064_v20  ;;  %v2091_v0 = vsel %vm2051_vm14, %v2043_v38, %v2378_v29 }
 0x913   :  { %v2077_v41 = vmul.f32 1.442695, %v2063_v23  ;;  %2882 = vmatprep.mubr.f32.mxu1 %v2091_v0 }
 0x914   :  { %3344 = vpow2.f32 %v2079_v1  ;;  %2883 = vmatmul.mubr.f32.gmra.mrb[46].mxu1 %v2092_v35 }
 0x915   :  { %3346 = vpow2.f32 %v2077_v41 }
 0x916   :  { %v3341_v34 = vpop.eup %3340 }
 0x917   :  { %v3343_v25 = vpop.eup %3342  ;;  %v2381_v18 = vadd.f32 -1.0, %v3341_v34 }
 0x918   :  { %v2380_v14 = vadd.f32 -1.0, %v3343_v25 }
 0x919   :  { %v2094_v27 = vsel %vm2054_vm2, %v2046_v43, %v2381_v18 }
 0x91a   :  { %v2093_v37 = vsel %vm2053_vm0, %v2045_v49, %v2380_v14 }
 0x91b   :  { %2885 = vmatprep.mubr.f32.mxu1 %v2093_v37 }
 0x91c   :  { %2886 = vmatmul.mubr.f32.gmra.mrb[48].mxu1 %v2094_v27 }
 0x91e   :  { %v3345_v26 = vpop.eup %3344 }
 0x91f   :  { %v3347_v7 = vpop.eup %3346  ;;  %v2383_v12 = vadd.f32 -1.0, %v3345_v26 }
 0x920   :  { %v2382_v48 = vadd.f32 -1.0, %v3347_v7 }
 0x921   :  { %v2096_v40 = vsel %vm2056_vm5, %v2048_v50, %v2383_v12 }
 0x922   :  { %v2095_v32 = vsel %vm2055_vm4, %v2047_v5, %v2382_v48 }
 0x923   :  { %2888 = vmatprep.mubr.f32.mxu1 %v2095_v32 }
 0x924   :  { %2889 = vmatmul.mubr.f32.gmra.mrb[50].mxu1 %v2096_v40 }
 0x9df   :  { %v2881_v6 = vpop.f32.mrb[44].mxu1 }
 0x9e0   :  { %v4810_v8 = vadd.f32 %v2881_v6, %v2384_v36  ;;  %v2186_v55 = vpop.f32.mrb[45].mxu1 }
 0x9e1   :  { %v4812_v44 = vadd.f32 %v2384_v36, %v2186_v55 }
 0x9e2   :  { %v2229_v54 = vsel %vm2225_vm6, %v4810_v8, -inf }
 0x9e3   :  { %2230 = vmax.xlane.f32.xlu1 %v2229_v54  ;;  %v2226_v17 = vsel %vm2225_vm6, %v4812_v44, -inf }
 0x9e4   :  { %2227 = vmax.xlane.f32.xlu0 %v2226_v17 }
 0x9e7   :  { %v2884_v59 = vpop.f32.mrb[46].mxu1 }
 0x9e8   :  { %v4818_v56 = vadd.f32 %v2884_v59, %v2384_v36  ;;  %v2196_v45 = vpop.f32.mrb[47].mxu1 }
 0x9e9   :  { %v4820_v2 = vadd.f32 %v2384_v36, %v2196_v45 }
 0x9ea   :  { %v2235_v47 = vsel %vm2225_vm6, %v4818_v56, -inf }
 0x9eb   :  { %2236 = vmax.xlane.f32.xlu1 %v2235_v47  ;;  %v2232_v10 = vsel %vm2225_vm6, %v4820_v2, -inf }
 0x9ec   :  { %2233 = vmax.xlane.f32.xlu0 %v2232_v10 }
 0x9ef   :  { %v2887_v19 = vpop.f32.mrb[48].mxu1 }
 0x9f0   :  { %v4826_v52 = vadd.f32 %v2887_v19, %v2384_v36  ;;  %v2206_v62 = vpop.f32.mrb[49].mxu1 }
 0x9f1   :  { %v4828_v61 = vadd.f32 %v2384_v36, %v2206_v62 }
 0x9f2   :  { %v2241_v16 = vsel %vm2225_vm6, %v4826_v52, -inf }
 0x9f3   :  { %2242 = vmax.xlane.f32.xlu1 %v2241_v16  ;;  %v2238_v28 = vsel %vm2225_vm6, %v4828_v61, -inf }
 0x9f4   :  { %2239 = vmax.xlane.f32.xlu0 %v2238_v28 }
 0x9f7   :  { %v2890_v38 = vpop.f32.mrb[50].mxu1 }
 0x9f8   :  { %v4834_v46 = vadd.f32 %v2890_v38, %v2384_v36  ;;  %v2216_v4 = vpop.f32.mrb[51].mxu1 }
 0x9f9   :  { %v4836_v42 = vadd.f32 %v2384_v36, %v2216_v4 }
 0x9fa   :  { %v2247_v3 = vsel %vm2225_vm6, %v4834_v46, -inf }
 0x9fb   :  { %2248 = vmax.xlane.f32.xlu1 %v2247_v3  ;;  %v2244_v11 = vsel %vm2225_vm6, %v4836_v42, -inf }
 0x9fc   :  { %2245 = vmax.xlane.f32.xlu0 %v2244_v11 }
 0xa70   :  { %v4842_v53 = vpop.xlane.xlu1 %2230 }
 0xa71   :  { %v2251_v43 = vsub.f32 %v4810_v8, %v4842_v53  ;;  %v4846_v15 = vpop.xlane.xlu0 %2227 }
 0xa72   :  { %v2250_v39 = vsub.f32 %v4812_v44, %v4846_v15 }
 0xa73   :  { %v2260_v9 = vmul.f32 1.442695, %v2251_v43 }
 0xa74   :  { %v2258_v49 = vmul.f32 1.442695, %v2250_v39 }
 0xa75   :  { %3348 = vpow2.f32 %v2260_v9 }
 0xa76   :  { %3350 = vpow2.f32 %v2258_v49 }
 0xa78   :  { %v4850_v60 = vpop.xlane.xlu1 %2236 }
 0xa79   :  { %v2253_v22 = vsub.f32 %v4818_v56, %v4850_v60  ;;  %v4854_v57 = vpop.xlane.xlu0 %2233 }
 0xa7a   :  { %v2252_v33 = vsub.f32 %v4820_v2, %v4854_v57 }
 0xa7b   :  { %v2264_v30 = vmul.f32 1.442695, %v2253_v22 }
 0xa7c   :  { %v2262_v58 = vmul.f32 1.442695, %v2252_v33 }
 0xa7d   :  { %3352 = vpow2.f32 %v2264_v30 }
 0xa7e   :  { %3354 = vpow2.f32 %v2262_v58 }
 0xa7f   :  { %v3349_v51 = vpop.eup %3348 }
 0xa80   :  { %v3351_v13 = vpop.eup %3350  ;;  %v4858_v24 = vpop.xlane.xlu1 %2242  ;;  %v2277_v50 = vsel %vm2225_vm6, %v3349_v51, 0.0 }
 0xa81   :  { %v2255_v63 = vsub.f32 %v4826_v52, %v4858_v24  ;;  %v4863_v31 = vpop.xlane.xlu0 %2239  ;;  %2278 = vadd.xlane.f32.xlu1 %v2277_v50  ;;  %v2274_v5 = vsel %vm2225_vm6, %v3351_v13, 0.0 }
 0xa82   :  { %v2254_v21 = vsub.f32 %v4828_v61, %v4863_v31  ;;  %2275 = vadd.xlane.f32.xlu0 %v2274_v5 }
 0xa83   :  { %v2268_v20 = vmul.f32 1.442695, %v2255_v63 }
 0xa84   :  { %v2266_v29 = vmul.f32 1.442695, %v2254_v21 }
 0xa85   :  { %3356 = vpow2.f32 %v2268_v20 }
 0xa86   :  { %3358 = vpow2.f32 %v2266_v29 }
 0xa87   :  { %v3353_v23 = vpop.eup %3352 }
 0xa88   :  { %v3355_v1 = vpop.eup %3354  ;;  %v4868_v0 = vpop.xlane.xlu1 %2248  ;;  %v2283_v41 = vsel %vm2225_vm6, %v3353_v23, 0.0 }
 0xa89   :  { %v2257_v35 = vsub.f32 %v4834_v46, %v4868_v0  ;;  %2284 = vadd.xlane.f32.xlu1 %v2283_v41  ;;  %v4873_v34 = vpop.xlane.xlu0 %2245  ;;  %v2280_v25 = vsel %vm2225_vm6, %v3355_v1, 0.0 }
 0xa8a   :  { %v2256_v18 = vsub.f32 %v4836_v42, %v4873_v34  ;;  %2281 = vadd.xlane.f32.xlu0 %v2280_v25 }
 0xa8b   :  { %v2272_v14 = vmul.f32 1.442695, %v2257_v35 }
 0xa8c   :  { %v2270_v37 = vmul.f32 1.442695, %v2256_v18 }
 0xa8d   :  { %3360 = vpow2.f32 %v2272_v14 }
 0xa8e   :  { %3362 = vpow2.f32 %v2270_v37 }
 0xa8f   :  { %v3357_v27 = vpop.eup %3356 }
 0xa90   :  { %v3359_v26 = vpop.eup %3358  ;;  %v2289_v7 = vsel %vm2225_vm6, %v3357_v27, 0.0 }
 0xa91   :  { %2290 = vadd.xlane.f32.xlu1 %v2289_v7  ;;  %v2286_v12 = vsel %vm2225_vm6, %v3359_v26, 0.0 }
 0xa92   :  { %2287 = vadd.xlane.f32.xlu0 %v2286_v12 }
 0xa97   :  { %v3361_v48 = vpop.eup %3360 }
 0xa98   :  { %v3363_v32 = vpop.eup %3362  ;;  %v2295_v40 = vsel %vm2225_vm6, %v3361_v48, 0.0 }
 0xa99   :  { %2296 = vadd.xlane.f32.xlu1 %v2295_v40  ;;  %v2292_v36 = vsel %vm2225_vm6, %v3363_v32, 0.0 }
 0xa9a   :  { %2293 = vadd.xlane.f32.xlu0 %v2292_v36 }
 0xb0e   :  { %v2279_v6 = vpop.xlane.xlu1 %2278 }
 0xb0f   :  { %3364 = vlog2.f32 %v2279_v6  ;;  %v2276_v55 = vpop.xlane.xlu0 %2275 }
 0xb10   :  { %3366 = vlog2.f32 %v2276_v55 }
 0xb16   :  { %v2285_v54 = vpop.xlane.xlu1 %2284 }
 0xb17   :  { %3368 = vlog2.f32 %v2285_v54  ;;  %v2282_v17 = vpop.xlane.xlu0 %2281 }
 0xb18   :  { %3370 = vlog2.f32 %v2282_v17 }
 0xb19   :  { %v3365_v59 = vpop.eup %3364 }
 0xb1a   :  { %v3367_v45 = vpop.eup %3366  ;;  %v2301_v47 = vmul.f32 0.6931472, %v3365_v59 }
 0xb1b   :  { %v2299_v10 = vmul.f32 0.6931472, %v3367_v45 }
 0xb1c   :  { %v2315_v19 = vadd.f32 %v2301_v47, %v4842_v53 }
 0xb1d   :  { %v2314_v62 = vadd.f32 %v2299_v10, %v4846_v15 }
 0xb1e   :  { %v2323_v16 = vsub.f32 %v4810_v8, %v2315_v19  ;;  %v2291_v28 = vpop.xlane.xlu1 %2290 }
 0xb1f   :  { %v2322_v38 = vsub.f32 %v4812_v44, %v2314_v62  ;;  %3372 = vlog2.f32 %v2291_v28  ;;  %v2288_v4 = vpop.xlane.xlu0 %2287 }
 0xb20   :  { %2331 = vst.msk [vmem:[%s4947_s17 + $0x8] sm:$0xff] %vm2225_vm6, %v2323_v16  ;;  %3374 = vlog2.f32 %v2288_v4 }
 0xb21   :  { %v3369_v3 = vpop.eup %3368  ;;  %2330 = vst.msk [vmem:[%s4947_s17] sm:$0xff] %vm2225_vm6, %v2322_v38 }
 0xb22   :  { %v3371_v11 = vpop.eup %3370  ;;  %v2305_v53 = vmul.f32 0.6931472, %v3369_v3 }
 0xb23   :  { %v2303_v8 = vmul.f32 0.6931472, %v3371_v11 }
 0xb24   :  { %v2317_v43 = vadd.f32 %v2305_v53, %v4850_v60 }
 0xb25   :  { %v2316_v44 = vadd.f32 %v2303_v8, %v4854_v57 }
 0xb26   :  { %v2325_v15 = vsub.f32 %v4818_v56, %v2317_v43  ;;  %v2297_v39 = vpop.xlane.xlu1 %2296 }
 0xb27   :  { %v2324_v9 = vsub.f32 %v4820_v2, %v2316_v44  ;;  %3376 = vlog2.f32 %v2297_v39  ;;  %v2294_v49 = vpop.xlane.xlu0 %2293 }
 0xb28   :  { %2333 = vst.msk [vmem:[%s4947_s17 + $0x18] sm:$0xff] %vm2225_vm6, %v2325_v15  ;;  %3378 = vlog2.f32 %v2294_v49 }
 0xb29   :  { %v3373_v22 = vpop.eup %3372  ;;  %2332 = vst.msk [vmem:[%s4947_s17 + $0x10] sm:$0xff] %vm2225_vm6, %v2324_v9 }
 0xb2a   :  { %v3375_v60 = vpop.eup %3374  ;;  %v2309_v57 = vmul.f32 0.6931472, %v3373_v22 }
 0xb2b   :  { %v2307_v56 = vmul.f32 0.6931472, %v3375_v60 }
 0xb2c   :  { %v2319_v33 = vadd.f32 %v2309_v57, %v4858_v24 }
 0xb2d   :  { %v2318_v2 = vadd.f32 %v2307_v56, %v4863_v31 }
 0xb2e   :  { %v2327_v30 = vsub.f32 %v4826_v52, %v2319_v33 }
 0xb2f   :  { %v2326_v58 = vsub.f32 %v4828_v61, %v2318_v2 }
 0xb30   :  { %2335 = vst.msk [vmem:[%s4947_s17 + $0x28] sm:$0xff] %vm2225_vm6, %v2327_v30 }
 0xb31   :  { %v3377_v51 = vpop.eup %3376  ;;  %2334 = vst.msk [vmem:[%s4947_s17 + $0x20] sm:$0xff] %vm2225_vm6, %v2326_v58 }
 0xb32   :  { %v3379_v13 = vpop.eup %3378  ;;  %v2313_v50 = vmul.f32 0.6931472, %v3377_v51 }
 0xb33   :  { %v2311_v24 = vmul.f32 0.6931472, %v3379_v13 }
 0xb34   :  { %v2321_v63 = vadd.f32 %v2313_v50, %v4868_v0 }
 0xb35   :  { %v2320_v52 = vadd.f32 %v2311_v24, %v4873_v34 }
 0xb36   :  { %v2329_v61 = vsub.f32 %v4834_v46, %v2321_v63 }
 0xb37   :  { %v2328_v31 = vsub.f32 %v4836_v42, %v2320_v52 }
 0xb38   :  { %2337 = vst.msk [vmem:[%s4947_s17 + $0x38] sm:$0xff] %vm2225_vm6, %v2329_v61 }
 0xb39   :  { %2336 = vst.msk [vmem:[%s4947_s17 + $0x30] sm:$0xff] %vm2225_vm6, %v2328_v31 }

</bundles_post_ra>
